<compile_context>
chip_gen: v5e
topology: v5e:2x2
jax: 0.10.0
libtpu: 0.0.40
codegen_flags: <defaults>
</compile_context>

<pallas_src>
import functools

import jax
import jax.numpy as jnp
import numpy as np
from jax.experimental import pallas as pl
from jax.experimental.pallas import tpu as pltpu

MATMUL_DTYPE = jnp.bfloat16   # jnp.float32 -> exact PyTorch fp32 numerics
A_PAD = 128                   # lane-dense padded width for the Q output


# ---------------------------------------------------------------------------
# Pallas kernels
# ---------------------------------------------------------------------------
def linear_relu_kernel(a_ref, w_ref, b_ref, o_ref):
    # o = relu(a @ w + b), fp32 accumulation, cast to the (bf16) output dtype.
    acc = jnp.dot(a_ref[...], w_ref[...], preferred_element_type=jnp.float32)
    o_ref[...] = jnp.maximum(acc + b_ref[...], 0.0).astype(o_ref.dtype)


def linear_relu(a, w, b, *, tm=512):
    """a: [M, K], w: [K, N] (resident), b: [1, N] (fp32) -> relu(a@w+b): [M, N].

    Gridded over M so the activation DMA is double-buffered and v7x's two
    TensorCores each take half the rows.  tm=512 keeps VMEM usage small on
    every generation (incl. v7x's 64 MiB physical VMEM)."""
    M, K = a.shape
    N = w.shape[1]
    tm = min(tm, M)                      # single full block when M <= tm
    grid = (pl.cdiv(M, tm),)
    return pl.pallas_call(
        linear_relu_kernel,
        out_shape=jax.ShapeDtypeStruct((M, N), MATMUL_DTYPE),
        grid_spec=pltpu.PrefetchScalarGridSpec(
            num_scalar_prefetch=0,
            grid=grid,
            in_specs=[pl.BlockSpec((tm, K), lambda i: (i, 0)),
                      pl.BlockSpec((K, N), lambda i: (0, 0)),
                      pl.BlockSpec((1, N), lambda i: (0, 0))],
            out_specs=pl.BlockSpec((tm, N), lambda i: (i, 0)),
        ),
        compiler_params=pltpu.CompilerParams(
            dimension_semantics=("parallel",)),
    )(a, w, b)


def dueling_head_kernel(x_ref, w1_ref, b1_ref, vw2_ref, vb2_ref,
                        aw2_ref, ab2_ref, q_ref, *, hidden, inv_na):
    # One fused K=3136 dot for both streams (v/a fc1 weights concatenated),
    # then two tiny second-layer dots on lane-padded (exactly-zero) weights.
    x = x_ref[...]
    h = jnp.maximum(
        jnp.dot(x, w1_ref[...], preferred_element_type=jnp.float32)
        + b1_ref[...], 0.0)
    h = h.astype(vw2_ref.dtype)
    hv = h[:, :hidden]
    ha = h[:, hidden:]
    v = jnp.dot(hv, vw2_ref[...], preferred_element_type=jnp.float32) + vb2_ref[...]
    a = jnp.dot(ha, aw2_ref[...], preferred_element_type=jnp.float32) + ab2_ref[...]
    # Padded action columns are exactly zero, so summing all lanes and scaling
    # by 1/num_actions gives the true mean over the real actions.
    a_mean = jnp.sum(a, axis=1, keepdims=True) * inv_na
    q_ref[...] = (v + a - a_mean).astype(q_ref.dtype)


def dueling_head(feat, w1, b1, v2_w, v2_b, a2_w, a2_b, action_space, *, tb=256):
    B, K = feat.shape
    h2 = w1.shape[1]                     # 2 * hidden
    a_pad = v2_w.shape[1]                # 128, lane-dense output slab
    tb = min(tb, B)
    kernel = functools.partial(dueling_head_kernel,
                               hidden=h2 // 2, inv_na=1.0 / action_space)
    q_pad = pl.pallas_call(
        kernel,
        out_shape=jax.ShapeDtypeStruct((B, a_pad), jnp.float32),
        grid_spec=pltpu.PrefetchScalarGridSpec(
            num_scalar_prefetch=0,
            grid=(pl.cdiv(B, tb),),
            in_specs=[pl.BlockSpec((tb, K), lambda i: (i, 0)),
                      pl.BlockSpec((K, h2), lambda i: (0, 0)),
                      pl.BlockSpec((1, h2), lambda i: (0, 0)),
                      pl.BlockSpec((h2 // 2, a_pad), lambda i: (0, 0)),
                      pl.BlockSpec((1, a_pad), lambda i: (0, 0)),
                      pl.BlockSpec((h2 // 2, a_pad), lambda i: (0, 0)),
                      pl.BlockSpec((1, a_pad), lambda i: (0, 0))],
            out_specs=pl.BlockSpec((tb, a_pad), lambda i: (i, 0)),
        ),
        compiler_params=pltpu.CompilerParams(
            dimension_semantics=("parallel",)),
    )(feat, w1, b1, v2_w, v2_b, a2_w, a2_b)
    return q_pad[:, :action_space]


# ---------------------------------------------------------------------------
# Channels-last glue (no activation transposes beyond the single input permute)
# ---------------------------------------------------------------------------
def im2col_nhwc(x, kh, kw, stride):
    """x: [B, H, W, C] -> [B, OH*OW, kh*kw*C], reduction order (kh, kw, Cin)."""
    B, H, W, C = x.shape
    OH = (H - kh) // stride + 1
    OW = (W - kw) // stride + 1
    patches = []
    for i in range(kh):
        for j in range(kw):
            patches.append(
                x[:, i:i + stride * OH:stride, j:j + stride * OW:stride, :])
    cols = jnp.stack(patches, axis=3)            # [B, OH, OW, kh*kw, C]
    return cols.reshape(B, OH * OW, kh * kw * C), OH, OW


def conv2d_relu(x, wm, b, *, stride, ksize):
    """Channels-last conv (valid) + ReLU; matmul hot path in Pallas."""
    B = x.shape[0]
    cols, OH, OW = im2col_nhwc(x, ksize, ksize, stride)
    a = cols.reshape(B * OH * OW, cols.shape[-1])
    y = linear_relu(a, wm, b)                    # [B*OH*OW, Cout]
    return y.reshape(B, OH, OW, wm.shape[1])     # stays channels-last


# ---------------------------------------------------------------------------
# Parameters (PyTorch layout) + one-time re-layout for the kernels
# ---------------------------------------------------------------------------
def init_conv(key, cin, cout, k):
    fan_in = cin * k * k
    bound = 1.0 / np.sqrt(fan_in)
    k1, k2 = jax.random.split(key)
    w = jax.random.uniform(k1, (cout, cin, k, k), jnp.float32, -bound, bound)
    b = jax.random.uniform(k2, (cout,), jnp.float32, -bound, bound)
    return w, b


def init_linear(key, fan_in, fan_out):
    bound = 1.0 / np.sqrt(fan_in)
    k1, k2 = jax.random.split(key)
    w = jax.random.uniform(k1, (fan_in, fan_out), jnp.float32, -bound, bound)
    b = jax.random.uniform(k2, (1, fan_out), jnp.float32, -bound, bound)
    return w, b


def init_params(key, stack, hidden, action_space):
    ks = jax.random.split(key, 7)
    p = {}
    p["c1_w"], p["c1_b"] = init_conv(ks[0], stack, 32, 8)
    p["c2_w"], p["c2_b"] = init_conv(ks[1], 32, 64, 4)
    p["c3_w"], p["c3_b"] = init_conv(ks[2], 64, 64, 3)
    p["v1_w"], p["v1_b"] = init_linear(ks[3], 3136, hidden)
    p["v2_w"], p["v2_b"] = init_linear(ks[4], hidden, action_space)
    p["a1_w"], p["a1_b"] = init_linear(ks[5], 3136, hidden)
    p["a2_w"], p["a2_b"] = init_linear(ks[6], hidden, action_space)
    return p


def prepare_kernel_params(params, action_space):
    """Fold every layout permutation onto the static weights (done once)."""
    kp = {}

    def conv_wm(w):  # [Cout, Cin, kh, kw] -> [(kh*kw*Cin), Cout], channels-last im2col order
        cout = w.shape[0]
        return jnp.transpose(w, (2, 3, 1, 0)).reshape(-1, cout).astype(MATMUL_DTYPE)

    kp["c1_wm"], kp["c1_b"] = conv_wm(params["c1_w"]), params["c1_b"].reshape(1, -1)
    kp["c2_wm"], kp["c2_b"] = conv_wm(params["c2_w"]), params["c2_b"].reshape(1, -1)
    kp["c3_wm"], kp["c3_b"] = conv_wm(params["c3_w"]), params["c3_b"].reshape(1, -1)

    # Head fc1: permute rows from PyTorch's NCHW-flatten (c*49 + h*7 + w) to the
    # channels-last flatten (h*7*64 + w*64 + c), then concat v/a into one matrix.
    C3, HW3 = 64, 7

    def permute_rows(w):
        return jnp.transpose(w.reshape(C3, HW3, HW3, -1),
                             (1, 2, 0, 3)).reshape(C3 * HW3 * HW3, -1)

    kp["w1"] = jnp.concatenate(
        [permute_rows(params["v1_w"]), permute_rows(params["a1_w"])],
        axis=1).astype(MATMUL_DTYPE)
    kp["b1"] = jnp.concatenate([params["v1_b"], params["a1_b"]], axis=1)

    def pad_cols(w):  # zero-pad last dim to the lane-dense width A_PAD
        return jnp.pad(w, ((0, 0), (0, A_PAD - w.shape[1])))

    kp["v2_w"] = pad_cols(params["v2_w"]).astype(MATMUL_DTYPE)
    kp["v2_b"] = pad_cols(params["v2_b"])
    kp["a2_w"] = pad_cols(params["a2_w"]).astype(MATMUL_DTYPE)
    kp["a2_b"] = pad_cols(params["a2_b"])
    return kp


def dueling_dqn_forward(kp, x, *, action_space):
    # x: [B, stack, 84, 84] NCHW (PyTorch layout); 84x84 gives the 3136 conv
    # features of the original module.  One cheap input permute to
    # channels-last; no other activation transposes anywhere in the forward.
    x = jnp.transpose(x, (0, 2, 3, 1)).astype(MATMUL_DTYPE)
    x = conv2d_relu(x, kp["c1_wm"], kp["c1_b"], stride=4, ksize=8)
    x = conv2d_relu(x, kp["c2_wm"], kp["c2_b"], stride=2, ksize=4)
    x = conv2d_relu(x, kp["c3_wm"], kp["c3_b"], stride=1, ksize=3)
    B = x.shape[0]
    feat = x.reshape(B, -1)   # channels-last flatten; fc1 rows pre-permuted to match
    return dueling_head(feat, kp["w1"], kp["b1"], kp["v2_w"], kp["v2_b"],
                        kp["a2_w"], kp["a2_b"], action_space)


# ---------------------------------------------------------------------------
# Pure-JAX references (for correctness check only)
# ---------------------------------------------------------------------------
def reference_forward(params, x, matmul_dtype=jnp.float32):
    """PyTorch-faithful forward; matmul_dtype controls the MXU input precision."""
    md = matmul_dtype

    def conv(x, w, b, s):
        y = jax.lax.conv_general_dilated(
            x.astype(md), w.astype(md), window_strides=(s, s), padding="VALID",
            dimension_numbers=("NCHW", "OIHW", "NCHW"),
            preferred_element_type=jnp.float32)
        return jnp.maximum(y + b.reshape(1, -1, 1, 1), 0.0)

    def lin(h, w, b):
        return jnp.dot(h.astype(md), w.astype(md),
                       preferred_element_type=jnp.float32) + b

    x = conv(x, params["c1_w"], params["c1_b"], 4)
    x = conv(x, params["c2_w"], params["c2_b"], 2)
    x = conv(x, params["c3_w"], params["c3_b"], 1)
    feat = x.reshape(x.shape[0], -1)                     # NCHW flatten (== torch .view)
    hv = jnp.maximum(lin(feat, params["v1_w"], params["v1_b"]), 0.0)
    v = lin(hv, params["v2_w"], params["v2_b"])
    ha = jnp.maximum(lin(feat, params["a1_w"], params["a1_b"]), 0.0)
    a = lin(ha, params["a2_w"], params["a2_b"])
    return v + a - a.mean(axis=1, keepdims=True)


if __name__ == "__main__":
    stack, hidden, action_space = 4, 32, 6
    batch = 2

    key = jax.random.PRNGKey(0)
    kparam_key, kx = jax.random.split(key)
    params = init_params(kparam_key, stack, hidden, action_space)
    kparams = prepare_kernel_params(params, action_space)
    x = jax.random.normal(kx, (batch, stack, 84, 84), jnp.float32)

    fwd = jax.jit(functools.partial(dueling_dqn_forward, action_space=action_space))
    q = jax.block_until_ready(fwd(kparams, x))
    assert q.shape == (batch, action_space)

    # Check 1: against a reference using the same matmul input dtype (validates
    # the kernels, tiling, weight re-layout and head fusion).
    # Check 2: against the pure-fp32 PyTorch-semantics reference (loose bound
    # accounts only for bf16 MXU-input quantization).
    q_ref_same = jax.block_until_ready(reference_forward(params, x, MATMUL_DTYPE))
    q_ref_f32 = jax.block_until_ready(reference_forward(params, x, jnp.float32))
    if MATMUL_DTYPE == jnp.float32:
        tol_same, tol_f32 = 2e-3, 2e-3
    else:
        tol_same, tol_f32 = 5e-3, 3e-2
    np.testing.assert_allclose(np.asarray(q), np.asarray(q_ref_same),
                               atol=tol_same, rtol=tol_same)
    np.testing.assert_allclose(np.asarray(q), np.asarray(q_ref_f32),
                               atol=tol_f32, rtol=tol_f32)
    print("KERNEL_OK")
</pallas_src>

<mosaic_0001>
module attributes {stable_mosaic.version = 11 : i64} {
  func.func @linear_relu_kernel(%arg0: i32, %arg1: memref<512x256xbf16, #tpu.memory_space<vmem>>, %arg2: memref<256x32xbf16, #tpu.memory_space<vmem>>, %arg3: memref<1x32xf32, #tpu.memory_space<vmem>>, %arg4: memref<512x32xbf16, #tpu.memory_space<vmem>>) attributes {dimension_semantics = [#tpu.dimension_semantics<parallel>], iteration_bounds = array<i64: 2>, scalar_prefetch = 0 : i64, scratch_operands = 0 : i64, tpu.core_type = #tpu.core_type<tc>, window_params = [{transform_indices = @transform_0, window_bounds = array<i64: 512, 256>}, {pipeline_mode = #tpu.pipeline_mode<synchronous>, transform_indices = @transform_1, window_bounds = array<i64: 256, 32>}, {pipeline_mode = #tpu.pipeline_mode<synchronous>, transform_indices = @transform_2, window_bounds = array<i64: 1, 32>}, {transform_indices = @transform_3, window_bounds = array<i64: 512, 32>}]} {
    %c0 = arith.constant 0 : index
    %c0_0 = arith.constant 0 : index
    %0 = vector.load %arg1[%c0, %c0_0] : memref<512x256xbf16, #tpu.memory_space<vmem>>, vector<512x256xbf16>
    %c0_1 = arith.constant 0 : index
    %c0_2 = arith.constant 0 : index
    %1 = vector.load %arg2[%c0_1, %c0_2] : memref<256x32xbf16, #tpu.memory_space<vmem>>, vector<256x32xbf16>
    %cst = arith.constant dense<0.000000e+00> : vector<512x32xf32>
    %2 = tpu.matmul %0, %1, %cst {dimension_numbers = #tpu.dot_dimension_numbers<[1], [0], [0], [1], [0, 0, 1, 1], [], []>} : vector<512x256xbf16>, vector<256x32xbf16>, vector<512x32xf32> -> vector<512x32xf32>
    %c0_3 = arith.constant 0 : index
    %c0_4 = arith.constant 0 : index
    %3 = vector.load %arg3[%c0_3, %c0_4] : memref<1x32xf32, #tpu.memory_space<vmem>>, vector<1x32xf32>
    %4 = vector.broadcast %3 : vector<1x32xf32> to vector<512x32xf32>
    %5 = arith.addf %2, %4 : vector<512x32xf32>
    %cst_5 = arith.constant 0.000000e+00 : f32
    %6 = vector.broadcast %cst_5 : f32 to vector<512x32xf32>
    %7 = arith.maximumf %5, %6 : vector<512x32xf32>
    %8 = arith.truncf %7 : vector<512x32xf32> to vector<512x32xbf16>
    %c0_6 = arith.constant 0 : index
    %c0_7 = arith.constant 0 : index
    %9 = vector.load %arg4[%c0_6, %c0_7] : memref<512x32xbf16, #tpu.memory_space<vmem>>, vector<512x32xbf16>
    tpu.vector_store %arg4[%c0_6, %c0_7], %8 {strides = array<i32>} : memref<512x32xbf16, #tpu.memory_space<vmem>>, vector<512x32xbf16>,
    return
  }
  func.func @transform_0(%arg0: i32) -> (i32, i32) {
    %c0_i32 = arith.constant 0 : i32
    %c0_i32_0 = arith.constant 0 : i32
    return %arg0, %c0_i32 : i32, i32
  }
  func.func @transform_1(%arg0: i32) -> (i32, i32) {
    %c0_i32 = arith.constant 0 : i32
    %c0_i32_0 = arith.constant 0 : i32
    %c0_i32_1 = arith.constant 0 : i32
    return %c0_i32, %c0_i32_0 : i32, i32
  }
  func.func @transform_2(%arg0: i32) -> (i32, i32) {
    %c0_i32 = arith.constant 0 : i32
    %c0_i32_0 = arith.constant 0 : i32
    %c0_i32_1 = arith.constant 0 : i32
    return %c0_i32, %c0_i32_0 : i32, i32
  }
  func.func @transform_3(%arg0: i32) -> (i32, i32) {
    %c0_i32 = arith.constant 0 : i32
    %c0_i32_0 = arith.constant 0 : i32
    return %arg0, %c0_i32 : i32, i32
  }
}

module attributes {stable_mosaic.version = 11 : i64} {
  func.func @linear_relu_kernel(%arg0: i32, %arg1: memref<162x512xbf16, #tpu.memory_space<vmem>>, %arg2: memref<512x64xbf16, #tpu.memory_space<vmem>>, %arg3: memref<1x64xf32, #tpu.memory_space<vmem>>, %arg4: memref<162x64xbf16, #tpu.memory_space<vmem>>) attributes {dimension_semantics = [#tpu.dimension_semantics<parallel>], iteration_bounds = array<i64: 1>, scalar_prefetch = 0 : i64, scratch_operands = 0 : i64, tpu.core_type = #tpu.core_type<tc>, window_params = [{transform_indices = @transform_0, window_bounds = array<i64: 162, 512>}, {pipeline_mode = #tpu.pipeline_mode<synchronous>, transform_indices = @transform_1, window_bounds = array<i64: 512, 64>}, {pipeline_mode = #tpu.pipeline_mode<synchronous>, transform_indices = @transform_2, window_bounds = array<i64: 1, 64>}, {transform_indices = @transform_3, window_bounds = array<i64: 162, 64>}]} {
    %c0 = arith.constant 0 : index
    %c0_0 = arith.constant 0 : index
    %0 = vector.load %arg1[%c0, %c0_0] : memref<162x512xbf16, #tpu.memory_space<vmem>>, vector<162x512xbf16>
    %c0_1 = arith.constant 0 : index
    %c0_2 = arith.constant 0 : index
    %1 = vector.load %arg2[%c0_1, %c0_2] : memref<512x64xbf16, #tpu.memory_space<vmem>>, vector<512x64xbf16>
    %cst = arith.constant dense<0.000000e+00> : vector<162x64xf32>
    %2 = tpu.matmul %0, %1, %cst {dimension_numbers = #tpu.dot_dimension_numbers<[1], [0], [0], [1], [0, 0, 1, 1], [], []>} : vector<162x512xbf16>, vector<512x64xbf16>, vector<162x64xf32> -> vector<162x64xf32>
    %c0_3 = arith.constant 0 : index
    %c0_4 = arith.constant 0 : index
    %3 = vector.load %arg3[%c0_3, %c0_4] : memref<1x64xf32, #tpu.memory_space<vmem>>, vector<1x64xf32>
    %4 = vector.broadcast %3 : vector<1x64xf32> to vector<162x64xf32>
    %5 = arith.addf %2, %4 : vector<162x64xf32>
    %cst_5 = arith.constant 0.000000e+00 : f32
    %6 = vector.broadcast %cst_5 : f32 to vector<162x64xf32>
    %7 = arith.maximumf %5, %6 : vector<162x64xf32>
    %8 = arith.truncf %7 : vector<162x64xf32> to vector<162x64xbf16>
    %c0_6 = arith.constant 0 : index
    %c0_7 = arith.constant 0 : index
    %9 = vector.load %arg4[%c0_6, %c0_7] : memref<162x64xbf16, #tpu.memory_space<vmem>>, vector<162x64xbf16>
    tpu.vector_store %arg4[%c0_6, %c0_7], %8 {strides = array<i32>} : memref<162x64xbf16, #tpu.memory_space<vmem>>, vector<162x64xbf16>,
    return
  }
  func.func @transform_0(%arg0: i32) -> (i32, i32) {
    %c0_i32 = arith.constant 0 : i32
    %c0_i32_0 = arith.constant 0 : i32
    return %arg0, %c0_i32 : i32, i32
  }
  func.func @transform_1(%arg0: i32) -> (i32, i32) {
    %c0_i32 = arith.constant 0 : i32
    %c0_i32_0 = arith.constant 0 : i32
    %c0_i32_1 = arith.constant 0 : i32
    return %c0_i32, %c0_i32_0 : i32, i32
  }
  func.func @transform_2(%arg0: i32) -> (i32, i32) {
    %c0_i32 = arith.constant 0 : i32
    %c0_i32_0 = arith.constant 0 : i32
    %c0_i32_1 = arith.constant 0 : i32
    return %c0_i32, %c0_i32_0 : i32, i32
  }
  func.func @transform_3(%arg0: i32) -> (i32, i32) {
    %c0_i32 = arith.constant 0 : i32
    %c0_i32_0 = arith.constant 0 : i32
    return %arg0, %c0_i32 : i32, i32
  }
}

module attributes {stable_mosaic.version = 11 : i64} {
  func.func @linear_relu_kernel(%arg0: i32, %arg1: memref<98x576xbf16, #tpu.memory_space<vmem>>, %arg2: memref<576x64xbf16, #tpu.memory_space<vmem>>, %arg3: memref<1x64xf32, #tpu.memory_space<vmem>>, %arg4: memref<98x64xbf16, #tpu.memory_space<vmem>>) attributes {dimension_semantics = [#tpu.dimension_semantics<parallel>], iteration_bounds = array<i64: 1>, scalar_prefetch = 0 : i64, scratch_operands = 0 : i64, tpu.core_type = #tpu.core_type<tc>, window_params = [{transform_indices = @transform_0, window_bounds = array<i64: 98, 576>}, {pipeline_mode = #tpu.pipeline_mode<synchronous>, transform_indices = @transform_1, window_bounds = array<i64: 576, 64>}, {pipeline_mode = #tpu.pipeline_mode<synchronous>, transform_indices = @transform_2, window_bounds = array<i64: 1, 64>}, {transform_indices = @transform_3, window_bounds = array<i64: 98, 64>}]} {
    %c0 = arith.constant 0 : index
    %c0_0 = arith.constant 0 : index
    %0 = vector.load %arg1[%c0, %c0_0] : memref<98x576xbf16, #tpu.memory_space<vmem>>, vector<98x576xbf16>
    %c0_1 = arith.constant 0 : index
    %c0_2 = arith.constant 0 : index
    %1 = vector.load %arg2[%c0_1, %c0_2] : memref<576x64xbf16, #tpu.memory_space<vmem>>, vector<576x64xbf16>
    %cst = arith.constant dense<0.000000e+00> : vector<98x64xf32>
    %2 = tpu.matmul %0, %1, %cst {dimension_numbers = #tpu.dot_dimension_numbers<[1], [0], [0], [1], [0, 0, 1, 1], [], []>} : vector<98x576xbf16>, vector<576x64xbf16>, vector<98x64xf32> -> vector<98x64xf32>
    %c0_3 = arith.constant 0 : index
    %c0_4 = arith.constant 0 : index
    %3 = vector.load %arg3[%c0_3, %c0_4] : memref<1x64xf32, #tpu.memory_space<vmem>>, vector<1x64xf32>
    %4 = vector.broadcast %3 : vector<1x64xf32> to vector<98x64xf32>
    %5 = arith.addf %2, %4 : vector<98x64xf32>
    %cst_5 = arith.constant 0.000000e+00 : f32
    %6 = vector.broadcast %cst_5 : f32 to vector<98x64xf32>
    %7 = arith.maximumf %5, %6 : vector<98x64xf32>
    %8 = arith.truncf %7 : vector<98x64xf32> to vector<98x64xbf16>
    %c0_6 = arith.constant 0 : index
    %c0_7 = arith.constant 0 : index
    %9 = vector.load %arg4[%c0_6, %c0_7] : memref<98x64xbf16, #tpu.memory_space<vmem>>, vector<98x64xbf16>
    tpu.vector_store %arg4[%c0_6, %c0_7], %8 {strides = array<i32>} : memref<98x64xbf16, #tpu.memory_space<vmem>>, vector<98x64xbf16>,
    return
  }
  func.func @transform_0(%arg0: i32) -> (i32, i32) {
    %c0_i32 = arith.constant 0 : i32
    %c0_i32_0 = arith.constant 0 : i32
    return %arg0, %c0_i32 : i32, i32
  }
  func.func @transform_1(%arg0: i32) -> (i32, i32) {
    %c0_i32 = arith.constant 0 : i32
    %c0_i32_0 = arith.constant 0 : i32
    %c0_i32_1 = arith.constant 0 : i32
    return %c0_i32, %c0_i32_0 : i32, i32
  }
  func.func @transform_2(%arg0: i32) -> (i32, i32) {
    %c0_i32 = arith.constant 0 : i32
    %c0_i32_0 = arith.constant 0 : i32
    %c0_i32_1 = arith.constant 0 : i32
    return %c0_i32, %c0_i32_0 : i32, i32
  }
  func.func @transform_3(%arg0: i32) -> (i32, i32) {
    %c0_i32 = arith.constant 0 : i32
    %c0_i32_0 = arith.constant 0 : i32
    return %arg0, %c0_i32 : i32, i32
  }
}

module attributes {stable_mosaic.version = 11 : i64} {
  func.func @dueling_head_kernel(%arg0: i32, %arg1: memref<2x3136xbf16, #tpu.memory_space<vmem>>, %arg2: memref<3136x64xbf16, #tpu.memory_space<vmem>>, %arg3: memref<1x64xf32, #tpu.memory_space<vmem>>, %arg4: memref<32x128xbf16, #tpu.memory_space<vmem>>, %arg5: memref<1x128xf32, #tpu.memory_space<vmem>>, %arg6: memref<32x128xbf16, #tpu.memory_space<vmem>>, %arg7: memref<1x128xf32, #tpu.memory_space<vmem>>, %arg8: memref<2x128xf32, #tpu.memory_space<vmem>>) attributes {dimension_semantics = [#tpu.dimension_semantics<parallel>], iteration_bounds = array<i64: 1>, scalar_prefetch = 0 : i64, scratch_operands = 0 : i64, tpu.core_type = #tpu.core_type<tc>, window_params = [{transform_indices = @transform_0, window_bounds = array<i64: 2, 3136>}, {pipeline_mode = #tpu.pipeline_mode<synchronous>, transform_indices = @transform_1, window_bounds = array<i64: 3136, 64>}, {pipeline_mode = #tpu.pipeline_mode<synchronous>, transform_indices = @transform_2, window_bounds = array<i64: 1, 64>}, {pipeline_mode = #tpu.pipeline_mode<synchronous>, transform_indices = @transform_3, window_bounds = array<i64: 32, 128>}, {pipeline_mode = #tpu.pipeline_mode<synchronous>, transform_indices = @transform_4, window_bounds = array<i64: 1, 128>}, {pipeline_mode = #tpu.pipeline_mode<synchronous>, transform_indices = @transform_5, window_bounds = array<i64: 32, 128>}, {pipeline_mode = #tpu.pipeline_mode<synchronous>, transform_indices = @transform_6, window_bounds = array<i64: 1, 128>}, {transform_indices = @transform_7, window_bounds = array<i64: 2, 128>}]} {
    %c0 = arith.constant 0 : index
    %c0_0 = arith.constant 0 : index
    %0 = vector.load %arg1[%c0, %c0_0] : memref<2x3136xbf16, #tpu.memory_space<vmem>>, vector<2x3136xbf16>
    %c0_1 = arith.constant 0 : index
    %c0_2 = arith.constant 0 : index
    %1 = vector.load %arg2[%c0_1, %c0_2] : memref<3136x64xbf16, #tpu.memory_space<vmem>>, vector<3136x64xbf16>
    %cst = arith.constant dense<0.000000e+00> : vector<2x64xf32>
    %2 = tpu.matmul %0, %1, %cst {dimension_numbers = #tpu.dot_dimension_numbers<[1], [0], [0], [1], [0, 0, 1, 1], [], []>} : vector<2x3136xbf16>, vector<3136x64xbf16>, vector<2x64xf32> -> vector<2x64xf32>
    %c0_3 = arith.constant 0 : index
    %c0_4 = arith.constant 0 : index
    %3 = vector.load %arg3[%c0_3, %c0_4] : memref<1x64xf32, #tpu.memory_space<vmem>>, vector<1x64xf32>
    %4 = vector.broadcast %3 : vector<1x64xf32> to vector<2x64xf32>
    %5 = arith.addf %2, %4 : vector<2x64xf32>
    %cst_5 = arith.constant 0.000000e+00 : f32
    %6 = vector.broadcast %cst_5 : f32 to vector<2x64xf32>
    %7 = arith.maximumf %5, %6 : vector<2x64xf32>
    %8 = arith.truncf %7 : vector<2x64xf32> to vector<2x64xbf16>
    %9 = vector.extract_strided_slice %8 {offsets = [0, 0], sizes = [2, 32], strides = [1, 1]} : vector<2x64xbf16> to vector<2x32xbf16>
    %10 = vector.extract_strided_slice %8 {offsets = [0, 32], sizes = [2, 32], strides = [1, 1]} : vector<2x64xbf16> to vector<2x32xbf16>
    %c0_6 = arith.constant 0 : index
    %c0_7 = arith.constant 0 : index
    %11 = vector.load %arg4[%c0_6, %c0_7] : memref<32x128xbf16, #tpu.memory_space<vmem>>, vector<32x128xbf16>
    %cst_8 = arith.constant dense<0.000000e+00> : vector<2x128xf32>
    %12 = tpu.matmul %9, %11, %cst_8 {dimension_numbers = #tpu.dot_dimension_numbers<[1], [0], [0], [1], [0, 0, 1, 1], [], []>} : vector<2x32xbf16>, vector<32x128xbf16>, vector<2x128xf32> -> vector<2x128xf32>
    %c0_9 = arith.constant 0 : index
    %c0_10 = arith.constant 0 : index
    %13 = vector.load %arg5[%c0_9, %c0_10] : memref<1x128xf32, #tpu.memory_space<vmem>>, vector<1x128xf32>
    %14 = vector.broadcast %13 : vector<1x128xf32> to vector<2x128xf32>
    %15 = arith.addf %12, %14 : vector<2x128xf32>
    %c0_11 = arith.constant 0 : index
    %c0_12 = arith.constant 0 : index
    %16 = vector.load %arg6[%c0_11, %c0_12] : memref<32x128xbf16, #tpu.memory_space<vmem>>, vector<32x128xbf16>
    %cst_13 = arith.constant dense<0.000000e+00> : vector<2x128xf32>
    %17 = tpu.matmul %10, %16, %cst_13 {dimension_numbers = #tpu.dot_dimension_numbers<[1], [0], [0], [1], [0, 0, 1, 1], [], []>} : vector<2x32xbf16>, vector<32x128xbf16>, vector<2x128xf32> -> vector<2x128xf32>
    %c0_14 = arith.constant 0 : index
    %c0_15 = arith.constant 0 : index
    %18 = vector.load %arg7[%c0_14, %c0_15] : memref<1x128xf32, #tpu.memory_space<vmem>>, vector<1x128xf32>
    %19 = vector.broadcast %18 : vector<1x128xf32> to vector<2x128xf32>
    %20 = arith.addf %17, %19 : vector<2x128xf32>
    %cst_16 = arith.constant dense<0.000000e+00> : vector<2xf32>
    %21 = vector.multi_reduction <add>, %20, %cst_16 [1] : vector<2x128xf32> to vector<2xf32>
    %22 = vector.shape_cast %21 : vector<2xf32> to vector<2x1xf32>
    %cst_17 = arith.constant 0.166666672 : f32
    %23 = vector.broadcast %cst_17 : f32 to vector<2x1xf32>
    %24 = arith.mulf %22, %23 : vector<2x1xf32>
    %25 = arith.addf %15, %20 : vector<2x128xf32>
    %26 = vector.broadcast %24 : vector<2x1xf32> to vector<2x128xf32>
    %27 = arith.subf %25, %26 : vector<2x128xf32>
    %c0_18 = arith.constant 0 : index
    %c0_19 = arith.constant 0 : index
    %28 = vector.load %arg8[%c0_18, %c0_19] : memref<2x128xf32, #tpu.memory_space<vmem>>, vector<2x128xf32>
    tpu.vector_store %arg8[%c0_18, %c0_19], %27 {strides = array<i32>} : memref<2x128xf32, #tpu.memory_space<vmem>>, vector<2x128xf32>,
    return
  }
  func.func @transform_0(%arg0: i32) -> (i32, i32) {
    %c0_i32 = arith.constant 0 : i32
    %c0_i32_0 = arith.constant 0 : i32
    return %arg0, %c0_i32 : i32, i32
  }
  func.func @transform_1(%arg0: i32) -> (i32, i32) {
    %c0_i32 = arith.constant 0 : i32
    %c0_i32_0 = arith.constant 0 : i32
    %c0_i32_1 = arith.constant 0 : i32
    return %c0_i32, %c0_i32_0 : i32, i32
  }
  func.func @transform_2(%arg0: i32) -> (i32, i32) {
    %c0_i32 = arith.constant 0 : i32
    %c0_i32_0 = arith.constant 0 : i32
    %c0_i32_1 = arith.constant 0 : i32
    return %c0_i32, %c0_i32_0 : i32, i32
  }
  func.func @transform_3(%arg0: i32) -> (i32, i32) {
    %c0_i32 = arith.constant 0 : i32
    %c0_i32_0 = arith.constant 0 : i32
    %c0_i32_1 = arith.constant 0 : i32
    return %c0_i32, %c0_i32_0 : i32, i32
  }
  func.func @transform_4(%arg0: i32) -> (i32, i32) {
    %c0_i32 = arith.constant 0 : i32
    %c0_i32_0 = arith.constant 0 : i32
    %c0_i32_1 = arith.constant 0 : i32
    return %c0_i32, %c0_i32_0 : i32, i32
  }
  func.func @transform_5(%arg0: i32) -> (i32, i32) {
    %c0_i32 = arith.constant 0 : i32
    %c0_i32_0 = arith.constant 0 : i32
    %c0_i32_1 = arith.constant 0 : i32
    return %c0_i32, %c0_i32_0 : i32, i32
  }
  func.func @transform_6(%arg0: i32) -> (i32, i32) {
    %c0_i32 = arith.constant 0 : i32
    %c0_i32_0 = arith.constant 0 : i32
    %c0_i32_1 = arith.constant 0 : i32
    return %c0_i32, %c0_i32_0 : i32, i32
  }
  func.func @transform_7(%arg0: i32) -> (i32, i32) {
    %c0_i32 = arith.constant 0 : i32
    %c0_i32_0 = arith.constant 0 : i32
    return %arg0, %c0_i32 : i32, i32
  }
}

</mosaic_0001>

<bundles_post_ra>
// kernel: dueling_dqn_forward.4
= control target key start
LH: loop header
LB: loop body
LE: loop exit
PB: predicated region body
PF: predicated region fallthrough
CT: control target
= control target key end

     0   :  { %s2230_s12 = smov 0   ;;  %s2232_s13 = smov 0   ;;  %s2781_s0 = inlined_call_operand.vmem [shape: bf16[800,256], index: 0, kind: input, shape index: {}]   ;;  %s2782_s1 = inlined_call_operand.vmem [shape: bf16[256,32], index: 1, kind: input, shape index: {}]   ;;  %s2783_s2 = inlined_call_operand.vmem [shape: f32[1,32], index: 2, kind: input, shape index: {}]   ;;  %s2784_s3 = inlined_call_operand.vmem [shape: bf16[800,32], index: 3, kind: output, shape index: {}]  }
   0x1   :  { %s2234_s14 = smov 0  }
   0x2 LB: > { %s2243_s15 = sadd.s32 4294967295, %s2176_s14   ;;  %s2245_s16 = sadd.s32 1, %s2176_s14   ;;  %s2176_s14 = sphi %s2234_s14, %s2793_s14   ;;  %s2172_s13 = sphi %s2232_s13, %s2792_s13   ;;  %s2168_s12 = sphi %s2230_s12, %s2791_s12  }
   0x3   : > { %s85_s17 = ssub.s32 %s2176_s14, %s2245_s16  ;;  %s88_s18 = sadd.s32 1, %s2172_s13 }
   0x4   : > { %p86_p0 = scmp.eq.s32.totalorder %s85_s17, 0  ;;  %p98_p1 = scmp.ne.s32.totalorder %s2172_s13, %s2168_s12 }
   0x5   : > { %p99_p2 = scmp.eq.s32.totalorder %s2243_s15, 1  ;;  %p1590_p3 = scmp.ge.s32.totalorder %s2176_s14, 1 }
   0x6   : > { %s2253_s19 = scalar_select %p86_p0, %s2172_s13, %s88_s18  }
   0x7   : > { %p2255_p4 = por %p99_p2, %p98_p1  ;;  %p149_p5 = scmp.lt.s32.totalorder %s2176_s14, 3 }
   0x9   : > { %p150_p6 = pnand %p1590_p3, %p149_p5 }
   0xa   : > { %s2278_s6 = sshll.u32 (!%p150_p6), %s2243_s15, 6  ;;  %s175_s18 = sand.u32 (!%p150_p6), 1, %s2168_s12  }
   0xb   : > { %153 = sbr.rel (%p150_p6) target bundleno = 501 (0x1f5), region = 32  ;;  %p184_p7 = scmp.lt.s32.totalorder (!%p150_p6), %s2278_s6, 99 }
  0x10   : > { %v2004_v0 = vld [vmem:[%s2782_s1 + $0x38] sm:$0xff]  ;;  %v2003_v2 = vld [vmem:[%s2782_s1 + $0x30] sm:$0xff]  ;;  %v2002_v4 = vld [vmem:[%s2782_s1 + $0x28] sm:$0xff]  ;;  %s185_s21 = scalar_select %p184_p7, %s2278_s6, 99  ;;  %vm1182_vm0 = vcmask 257024  }
  0x11   : > { %v2012_v1 = vld [vmem:[%s2782_s1 + $0x78] sm:$0xff]  ;;  %716 = vmatpush.bf16.msra.mxu0 %v2004_v0  ;;  %2016 = vmatpush.bf16.msra.mxu2 %v2004_v0  ;;  %v2011_v3 = vld [vmem:[%s2782_s1 + $0x70] sm:$0xff]  ;;  %v2010_v5 = vld [vmem:[%s2782_s1 + $0x68] sm:$0xff]  ;;  %s1255_s24 = ssub.s32 (%p2255_p4), 100, %s2278_s6  ;;  %s2013_s25 = sshll.u32 (%p2255_p4), %s2243_s15, 8 }
  0x12   : > { %885 = vmatpush.bf16.msra.mxu1 %v2012_v1  ;;  %2024 = vmatpush.bf16.msra.mxu3 %v2012_v1  ;;  %v2001_v6 = vld [vmem:[%s2782_s1 + $0x20] sm:$0xff]  ;;  %v2000_v8 = vld [vmem:[%s2782_s1 + $0x18] sm:$0xff]  ;;  %v1999_v10 = vld [vmem:[%s2782_s1 + $0x10] sm:$0xff]  ;;  %s1932_s26 = sshll.u32 %s185_s21, 3  ;;  %s1591_s21 = sshll.u32 %s175_s18, 8 }
  0x13   : > { %v2009_v7 = vld [vmem:[%s2782_s1 + $0x60] sm:$0xff]  ;;  %v2008_v9 = vld [vmem:[%s2782_s1 + $0x58] sm:$0xff]  ;;  %v2007_v11 = vld [vmem:[%s2782_s1 + $0x50] sm:$0xff]  ;;  %s2306_s4 = scalar_lea.vmem %s2781_s0, %s1932_s26  ;;  %s2397_s12 = scalar_lea.vmem [#allocation2], %s1591_s21  }
  0x14   : > { %v1998_v12 = vld [vmem:[%s2782_s1 + $0x8] sm:$0xff]  ;;  %v1997_v14 = vld [vmem:[%s2782_s1] sm:$0xff]  ;;  %v1605_v28 = vld [vmem:[%s2306_s4 + $0x10] sm:$0xf]  ;;  %p1256_p8 = scmp.lt.s32.totalorder (%p2255_p4), %s1255_s24, 64  ;;  %s2646_s28 = scalar_lea.vmem (%p2255_p4), %s2784_s3, %s2013_s25  }
  0x15   : > { %717 = vmatpush.bf16.msra.mxu0 %v2003_v2  ;;  %2017 = vmatpush.bf16.msra.mxu2 %v2003_v2  ;;  %v2006_v13 = vld [vmem:[%s2782_s1 + $0x48] sm:$0xff]  ;;  %v2005_v15 = vld [vmem:[%s2782_s1 + $0x40] sm:$0xff]  ;;  %v1936_v29 = vld [vmem:[%s2306_s4 + $0x14] sm:$0xf0] }
  0x16   : > { %886 = vmatpush.bf16.msra.mxu1 %v2011_v3  ;;  %2025 = vmatpush.bf16.msra.mxu3 %v2011_v3  ;;  %v1597_v16 = vld [vmem:[%s2306_s4] sm:$0xf]  ;;  %v1934_v17 = vld [vmem:[%s2306_s4 + $0x4] sm:$0xf0]  ;;  %v1933_v20 = vld [vmem:[%s2306_s4 + $0x4] sm:$0xf]  ;;  %v1606_v36 = vor.u32 %v1936_v29, %v1605_v28 }
  0x17   : > { %v1725_v18 = vld [vmem:[%s2306_s4 + $0x100] sm:$0xf]  ;;  %v1966_v19 = vld [vmem:[%s2306_s4 + $0x104] sm:$0xf0]  ;;  %v1599_v21 = vld [vmem:[%s2306_s4 + $0x8] sm:$0xf0]  ;;  %v1598_v24 = vor.u32 %v1934_v17, %v1597_v16 }
  0x18   : > { %v1965_v22 = vld [vmem:[%s2306_s4 + $0x104] sm:$0xf]  ;;  %v1727_v23 = vld [vmem:[%s2306_s4 + $0x108] sm:$0xf0]  ;;  %v1726_v25 = vor.u32 %v1966_v19, %v1725_v18  ;;  %v1602_v26 = vor.u32 %v1933_v20, %v1599_v21  ;;  %v1733_v30 = vld [vmem:[%s2306_s4 + $0x110] sm:$0xf] }
  0x19   : > { %718 = vmatpush.bf16.msra.mxu0 %v2002_v4  ;;  %2018 = vmatpush.bf16.msra.mxu2 %v2002_v4  ;;  %v1730_v27 = vor.u32 %v1965_v22, %v1727_v23  ;;  %v1968_v31 = vld [vmem:[%s2306_s4 + $0x114] sm:$0xf0]  ;;  %v1935_v32 = vld [vmem:[%s2306_s4 + $0x14] sm:$0xf]  ;;  %v1607_v33 = vld [vmem:[%s2306_s4 + $0x18] sm:$0xf0] }
  0x1a   : > { %887 = vmatpush.bf16.msra.mxu1 %v2010_v5  ;;  %2026 = vmatpush.bf16.msra.mxu3 %v2010_v5  ;;  %v1967_v34 = vld [vmem:[%s2306_s4 + $0x114] sm:$0xf]  ;;  %v1735_v35 = vld [vmem:[%s2306_s4 + $0x118] sm:$0xf0]  ;;  %v1734_v37 = vor.u32 %v1968_v31, %v1733_v30  ;;  %v1610_v38 = vor.u32 %v1935_v32, %v1607_v33  ;;  %v1613_v40 = vld [vmem:[%s2306_s4 + $0x20] sm:$0xf] }
  0x1b   : > { %v1738_v39 = vor.u32 %v1967_v34, %v1735_v35  ;;  %v1938_v41 = vld [vmem:[%s2306_s4 + $0x24] sm:$0xf0]  ;;  %v1741_v42 = vld [vmem:[%s2306_s4 + $0x120] sm:$0xf]  ;;  %v1937_v44 = vld [vmem:[%s2306_s4 + $0x24] sm:$0xf] }
  0x1c   : > { %v1970_v43 = vld [vmem:[%s2306_s4 + $0x124] sm:$0xf0]  ;;  %v1615_v45 = vld [vmem:[%s2306_s4 + $0x28] sm:$0xf0]  ;;  %v1969_v46 = vld [vmem:[%s2306_s4 + $0x124] sm:$0xf]  ;;  %v1614_v48 = vor.u32 %v1938_v41, %v1613_v40 }
  0x1d   : > { %719 = vmatpush.bf16.msra.mxu0 %v2001_v6  ;;  %2019 = vmatpush.bf16.msra.mxu2 %v2001_v6  ;;  %v1743_v47 = vld [vmem:[%s2306_s4 + $0x128] sm:$0xf0]  ;;  %v1742_v49 = vor.u32 %v1970_v43, %v1741_v42  ;;  %v1618_v50 = vor.u32 %v1937_v44, %v1615_v45  ;;  %v1621_v52 = vld [vmem:[%s2306_s4 + $0x30] sm:$0xf]  ;;  %v1940_v53 = vld [vmem:[%s2306_s4 + $0x34] sm:$0xf0] }
  0x1e   : > { %888 = vmatpush.bf16.msra.mxu1 %v2009_v7  ;;  %2027 = vmatpush.bf16.msra.mxu3 %v2009_v7  ;;  %v1746_v51 = vor.u32 %v1969_v46, %v1743_v47  ;;  %v1749_v54 = vld [vmem:[%s2306_s4 + $0x130] sm:$0xf]  ;;  %v1972_v55 = vld [vmem:[%s2306_s4 + $0x134] sm:$0xf0]  ;;  %v1939_v56 = vld [vmem:[%s2306_s4 + $0x34] sm:$0xf]  ;;  %v1622_v60 = vor.u32 %v1940_v53, %v1621_v52 }
  0x1f   : > { %v1623_v57 = vld [vmem:[%s2306_s4 + $0x38] sm:$0xf0]  ;;  %v1971_v58 = vld [vmem:[%s2306_s4 + $0x134] sm:$0xf]  ;;  %v1750_v61 = vor.u32 %v1972_v55, %v1749_v54  ;;  %v1629_v0 = vld [vmem:[%s2306_s4 + $0x40] sm:$0xf] }
  0x20   : > { %v1751_v59 = vld [vmem:[%s2306_s4 + $0x138] sm:$0xf0]  ;;  %v1626_v62 = vor.u32 %v1939_v56, %v1623_v57  ;;  %v1942_v1 = vld [vmem:[%s2306_s4 + $0x44] sm:$0xf0]  ;;  %v1757_v2 = vld [vmem:[%s2306_s4 + $0x140] sm:$0xf] }
  0x21   : > { %720 = vmatpush.bf16.msra.mxu0 %v2000_v8  ;;  %2020 = vmatpush.bf16.msra.mxu2 %v2000_v8  ;;  %v1754_v63 = vor.u32 %v1971_v58, %v1751_v59  ;;  %v1974_v3 = vld [vmem:[%s2306_s4 + $0x144] sm:$0xf0]  ;;  %v1941_v4 = vld [vmem:[%s2306_s4 + $0x44] sm:$0xf]  ;;  %v1631_v5 = vld [vmem:[%s2306_s4 + $0x48] sm:$0xf0]  ;;  %v1630_v8 = vor.u32 %v1942_v1, %v1629_v0 }
  0x22   : > { %889 = vmatpush.bf16.msra.mxu1 %v2008_v9  ;;  %2028 = vmatpush.bf16.msra.mxu3 %v2008_v9  ;;  %v1973_v6 = vld [vmem:[%s2306_s4 + $0x144] sm:$0xf]  ;;  %v1759_v7 = vld [vmem:[%s2306_s4 + $0x148] sm:$0xf0]  ;;  %v1758_v9 = vor.u32 %v1974_v3, %v1757_v2  ;;  %v1943_v16 = vld [vmem:[%s2306_s4 + $0x54] sm:$0xf] }
  0x23   : > { %v1639_v17 = vld [vmem:[%s2306_s4 + $0x58] sm:$0xf0]  ;;  %v1975_v18 = vld [vmem:[%s2306_s4 + $0x154] sm:$0xf]  ;;  %v1945_v28 = vld [vmem:[%s2306_s4 + $0x64] sm:$0xf] }
  0x24   : > { %v1767_v19 = vld [vmem:[%s2306_s4 + $0x158] sm:$0xf0]  ;;  %v1642_v22 = vor.u32 %v1943_v16, %v1639_v17  ;;  %v1647_v29 = vld [vmem:[%s2306_s4 + $0x68] sm:$0xf0]  ;;  %v1977_v30 = vld [vmem:[%s2306_s4 + $0x164] sm:$0xf] }
  0x25   : > { %721 = vmatpush.bf16.msra.mxu0 %v1999_v10  ;;  %2021 = vmatpush.bf16.msra.mxu2 %v1999_v10  ;;  %v1634_v10 = vor.u32 %v1941_v4, %v1631_v5  ;;  %v1770_v23 = vor.u32 %v1975_v18, %v1767_v19  ;;  %v1775_v31 = vld [vmem:[%s2306_s4 + $0x168] sm:$0xf0]  ;;  %v1650_v34 = vor.u32 %v1945_v28, %v1647_v29  ;;  %v1947_v40 = vld [vmem:[%s2306_s4 + $0x74] sm:$0xf]  ;;  %v1655_v41 = vld [vmem:[%s2306_s4 + $0x78] sm:$0xf0] }
  0x26   : > { %890 = vmatpush.bf16.msra.mxu1 %v2007_v11  ;;  %2029 = vmatpush.bf16.msra.mxu3 %v2007_v11  ;;  %v1762_v11 = vor.u32 %v1973_v6, %v1759_v7  ;;  %v1778_v35 = vor.u32 %v1977_v30, %v1775_v31  ;;  %v1979_v42 = vld [vmem:[%s2306_s4 + $0x174] sm:$0xf]  ;;  %v1783_v43 = vld [vmem:[%s2306_s4 + $0x178] sm:$0xf0]  ;;  %v1658_v46 = vor.u32 %v1947_v40, %v1655_v41  ;;  %v1982_v52 = vld [vmem:[%s2306_s4 + $0x184] sm:$0xf0] }
  0x27   : > { %v1786_v47 = vor.u32 %v1979_v42, %v1783_v43  ;;  %v1949_v53 = vld [vmem:[%s2306_s4 + $0x84] sm:$0xf]  ;;  %v1663_v54 = vld [vmem:[%s2306_s4 + $0x88] sm:$0xf0]  ;;  %v1951_v16 = vld [vmem:[%s2306_s4 + $0x94] sm:$0xf] }
  0x28   : > { %v1981_v55 = vld [vmem:[%s2306_s4 + $0x184] sm:$0xf]  ;;  %v1791_v56 = vld [vmem:[%s2306_s4 + $0x188] sm:$0xf0]  ;;  %v1671_v17 = vld [vmem:[%s2306_s4 + $0x98] sm:$0xf0] }
  0x29   : > { %722 = vmatpush.bf16.msra.mxu0 %v1998_v12  ;;  %2022 = vmatpush.bf16.msra.mxu2 %v1998_v12  ;;  %v1637_v12 = vld [vmem:[%s2306_s4 + $0x50] sm:$0xf]  ;;  %v1674_v29 = vor.u32 %v1951_v16, %v1671_v17 }
  0x2a   : > { %891 = vmatpush.bf16.msra.mxu1 %v2006_v13  ;;  %2030 = vmatpush.bf16.msra.mxu3 %v2006_v13  ;;  %v1944_v13 = vld [vmem:[%s2306_s4 + $0x54] sm:$0xf0] }
  0x2b   : > { %v1638_v20 = vor.u32 %v1944_v13, %v1637_v12  ;;  %v1952_v13 = vld [vmem:[%s2306_s4 + $0x94] sm:$0xf0] }
  0x2d   : > { %723 = vmatpush.bf16.msra.mxu0 %v1997_v14  ;;  %2023 = vmatpush.bf16.msra.mxu2 %v1997_v14  ;;  %v1765_v14 = vld [vmem:[%s2306_s4 + $0x150] sm:$0xf] }
  0x2e   : > { %892 = vmatpush.bf16.msra.mxu1 %v2005_v15  ;;  %2031 = vmatpush.bf16.msra.mxu3 %v2005_v15  ;;  %v1976_v15 = vld [vmem:[%s2306_s4 + $0x154] sm:$0xf0] }
  0x2f   : > { %v1766_v21 = vor.u32 %v1976_v15, %v1765_v14  ;;  %v1797_v14 = vld [vmem:[%s2306_s4 + $0x190] sm:$0xf]  ;;  %v1984_v15 = vld [vmem:[%s2306_s4 + $0x194] sm:$0xf0] }
  0x30   : > { %724 = vmatmul.bf16.vlgmr.msra.gmra.mxu0 %v1598_v24  ;;  %804 = vmatmul.bf16.vlgmr.msra.gmra.mxu2 %v1726_v25  ;;  %v1645_v24 = vld [vmem:[%s2306_s4 + $0x60] sm:$0xf]  ;;  %v1946_v25 = vld [vmem:[%s2306_s4 + $0x64] sm:$0xf0] }
  0x31   : > { %893 = vmatmul.bf16.vlgmr.msra.gmra.mxu1 %v1602_v26  ;;  %973 = vmatmul.bf16.vlgmr.msra.gmra.mxu3 %v1730_v27  ;;  %v1773_v26 = vld [vmem:[%s2306_s4 + $0x160] sm:$0xf]  ;;  %v1978_v27 = vld [vmem:[%s2306_s4 + $0x164] sm:$0xf0]  ;;  %v1646_v32 = vor.u32 %v1946_v25, %v1645_v24 }
  0x32   : > { %v1774_v33 = vor.u32 %v1978_v27, %v1773_v26  ;;  %v1798_v27 = vor.u32 %v1984_v15, %v1797_v14 }
  0x40   : > { %729 = vmatmul.bf16.gmra.mxu0 %v1606_v36  ;;  %809 = vmatmul.bf16.gmra.mxu2 %v1734_v37  ;;  %v1653_v36 = vld [vmem:[%s2306_s4 + $0x70] sm:$0xf]  ;;  %v1948_v37 = vld [vmem:[%s2306_s4 + $0x74] sm:$0xf0] }
  0x41   : > { %898 = vmatmul.bf16.gmra.mxu1 %v1610_v38  ;;  %978 = vmatmul.bf16.gmra.mxu3 %v1738_v39  ;;  %v1781_v38 = vld [vmem:[%s2306_s4 + $0x170] sm:$0xf]  ;;  %v1980_v39 = vld [vmem:[%s2306_s4 + $0x174] sm:$0xf0]  ;;  %v1654_v44 = vor.u32 %v1948_v37, %v1653_v36 }
  0x42   : > { %v1782_v45 = vor.u32 %v1980_v39, %v1781_v38 }
  0x50   : > { %734 = vmatmul.bf16.gmra.mxu0 %v1614_v48  ;;  %814 = vmatmul.bf16.gmra.mxu2 %v1742_v49  ;;  %v2384_v48 = vld [vmem:[%s2783_s2] ss:$0 sm:$0xff] }
  0x51   : > { %903 = vmatmul.bf16.gmra.mxu1 %v1618_v50  ;;  %983 = vmatmul.bf16.gmra.mxu3 %v1746_v51  ;;  %v1661_v49 = vld [vmem:[%s2306_s4 + $0x80] sm:$0xf]  ;;  %v1950_v50 = vld [vmem:[%s2306_s4 + $0x84] sm:$0xf0] }
  0x52   : > { %v1789_v51 = vld [vmem:[%s2306_s4 + $0x180] sm:$0xf]  ;;  %v1662_v57 = vor.u32 %v1950_v50, %v1661_v49  ;;  %v1954_v50 = vld [vmem:[%s2306_s4 + $0xa4] sm:$0xf0] }
  0x53   : > { %v1790_v58 = vor.u32 %v1982_v52, %v1789_v51  ;;  %v1805_v51 = vld [vmem:[%s2306_s4 + $0x1a0] sm:$0xf]  ;;  %v1986_v52 = vld [vmem:[%s2306_s4 + $0x1a4] sm:$0xf0] }
  0x60   : > { %739 = vmatmul.bf16.gmra.mxu0 %v1622_v60  ;;  %819 = vmatmul.bf16.gmra.mxu2 %v1750_v61  ;;  %v1666_v60 = vor.u32 %v1949_v53, %v1663_v54  ;;  %v1794_v61 = vor.u32 %v1981_v55, %v1791_v56  ;;  %v1953_v53 = vld [vmem:[%s2306_s4 + $0xa4] sm:$0xf]  ;;  %v1679_v54 = vld [vmem:[%s2306_s4 + $0xa8] sm:$0xf0] }
  0x61   : > { %908 = vmatmul.bf16.gmra.mxu1 %v1626_v62  ;;  %988 = vmatmul.bf16.gmra.mxu3 %v1754_v63 }
  0x70   : > { %744 = vmatmul.bf16.gmra.mxu0 %v1630_v8  ;;  %824 = vmatmul.bf16.gmra.mxu2 %v1758_v9 }
  0x71   : > { %913 = vmatmul.bf16.gmra.mxu1 %v1634_v10  ;;  %993 = vmatmul.bf16.gmra.mxu3 %v1762_v11  ;;  %v1669_v10 = vld [vmem:[%s2306_s4 + $0x90] sm:$0xf] }
  0x72   : > { %v1670_v26 = vor.u32 %v1952_v13, %v1669_v10 }
  0x80   : > { %749 = vmatmul.bf16.gmra.mxu0 %v1638_v20  ;;  %829 = vmatmul.bf16.gmra.mxu2 %v1766_v21  ;;  %v1983_v20 = vld [vmem:[%s2306_s4 + $0x194] sm:$0xf]  ;;  %v1799_v21 = vld [vmem:[%s2306_s4 + $0x198] sm:$0xf0] }
  0x81   : > { %918 = vmatmul.bf16.gmra.mxu1 %v1642_v22  ;;  %998 = vmatmul.bf16.gmra.mxu3 %v1770_v23  ;;  %v1802_v30 = vor.u32 %v1983_v20, %v1799_v21 }
  0x90   : > { %754 = vmatmul.bf16.gmra.mxu0 %v1646_v32  ;;  %834 = vmatmul.bf16.gmra.mxu2 %v1774_v33 }
  0x91   : > { %923 = vmatmul.bf16.gmra.mxu1 %v1650_v34  ;;  %1003 = vmatmul.bf16.gmra.mxu3 %v1778_v35 }
  0xa0   : > { %759 = vmatmul.bf16.gmra.mxu0 %v1654_v44  ;;  %839 = vmatmul.bf16.gmra.mxu2 %v1782_v45 }
  0xa1   : > { %928 = vmatmul.bf16.gmra.mxu1 %v1658_v46  ;;  %1008 = vmatmul.bf16.gmra.mxu3 %v1786_v47  ;;  %v1677_v46 = vld [vmem:[%s2306_s4 + $0xa0] sm:$0xf] }
  0xad   : > { %v725_v59 = vpop.f32.mrf.mxu0 }
  0xae   : > { %v726_v62 = vadd.f32 %v2384_v48, %v725_v59  ;;  %v894_v63 = vpop.f32.mrf.mxu1 }
  0xb0   : > { %v895_v0 = vadd.f32 %v894_v63, %v726_v62  ;;  %764 = vmatmul.bf16.gmra.mxu0 %v1662_v57  ;;  %844 = vmatmul.bf16.gmra.mxu2 %v1790_v58  ;;  %v1985_v57 = vld [vmem:[%s2306_s4 + $0x1a4] sm:$0xf]  ;;  %v1807_v58 = vld [vmem:[%s2306_s4 + $0x1a8] sm:$0xf0]  ;;  %v1678_v63 = vor.u32 %v1954_v50, %v1677_v46 }
  0xb1   : > { %933 = vmatmul.bf16.gmra.mxu1 %v1666_v60  ;;  %1013 = vmatmul.bf16.gmra.mxu3 %v1794_v61 }
  0xb2   : > { %v1054_v1 = vmax.f32 %v895_v0, 0.0  ;;  %v1806_v0 = vor.u32 %v1986_v52, %v1805_v51 }
  0xb3   : > { %v805_v2 = vpop.f32.mrf.mxu2 }
  0xb4   : > { %v1118_v3 = vpack.c.bf16 %v1054_v1, %v1054_v1  ;;  %v806_v4 = vadd.f32 %v2384_v48, %v805_v2  ;;  %v974_v5 = vpop.f32.mrf.mxu3  ;;  %v1682_v2 = vor.u32 %v1953_v53, %v1679_v54 }
  0xb5   : > { %v727_v6 = vpop.f32.mrf.mxu0 }
  0xb6   : > { %1183 = vst.msk [vmem:[%s2397_s12] sm:$0xf] %vm1182_vm0, %v1118_v3  ;;  %v975_v7 = vadd.f32 %v974_v5, %v806_v4  ;;  %v728_v8 = vadd.f32 %v2384_v48, %v727_v6  ;;  %v896_v9 = vpop.f32.mrf.mxu1  ;;  %v1810_v3 = vor.u32 %v1985_v57, %v1807_v58 }
  0xb8   : > { %v1086_v11 = vmax.f32 %v975_v7, 0.0  ;;  %v897_v12 = vadd.f32 %v896_v9, %v728_v8 }
  0xba   : > { %v1150_v18 = vpack.c.bf16 %v1086_v11, %v1086_v11  ;;  %v1055_v19 = vmax.f32 %v897_v12, 0.0 }
  0xbb   : > { %v807_v22 = vpop.f32.mrf.mxu2 }
  0xbc   : > { %1215 = vst.msk [vmem:[%s2397_s12 + $0x80] sm:$0xf] %vm1182_vm0, %v1150_v18  ;;  %v1119_v23 = vpack.c.bf16 %v1055_v19, %v1055_v19  ;;  %v808_v24 = vadd.f32 %v2384_v48, %v807_v22  ;;  %v976_v25 = vpop.f32.mrf.mxu3  ;;  %v1685_v19 = vld [vmem:[%s2306_s4 + $0xb0] sm:$0xf]  ;;  %v1956_v22 = vld [vmem:[%s2306_s4 + $0xb4] sm:$0xf0] }
  0xbd   : > { %v730_v28 = vpop.f32.mrf.mxu0 }
  0xbe   : > { %1184 = vst.msk [vmem:[%s2397_s12 + $0x4] sm:$0xf] %vm1182_vm0, %v1119_v23  ;;  %v977_v31 = vadd.f32 %v976_v25, %v808_v24  ;;  %v731_v32 = vadd.f32 %v2384_v48, %v730_v28  ;;  %v899_v33 = vpop.f32.mrf.mxu1  ;;  %v1813_v23 = vld [vmem:[%s2306_s4 + $0x1b0] sm:$0xf]  ;;  %v1988_v24 = vld [vmem:[%s2306_s4 + $0x1b4] sm:$0xf0] }
  0xbf   : > { %v1955_v25 = vld [vmem:[%s2306_s4 + $0xb4] sm:$0xf] }
  0xc0   : > { %v1087_v34 = vmax.f32 %v977_v31, 0.0  ;;  %v900_v35 = vadd.f32 %v899_v33, %v731_v32  ;;  %769 = vmatmul.bf16.gmra.mxu0 %v1670_v26  ;;  %849 = vmatmul.bf16.gmra.mxu2 %v1798_v27  ;;  %v1687_v26 = vld [vmem:[%s2306_s4 + $0xb8] sm:$0xf0] }
  0xc1   : > { %938 = vmatmul.bf16.gmra.mxu1 %v1674_v29  ;;  %1018 = vmatmul.bf16.gmra.mxu3 %v1802_v30  ;;  %v1987_v29 = vld [vmem:[%s2306_s4 + $0x1b4] sm:$0xf]  ;;  %v1815_v30 = vld [vmem:[%s2306_s4 + $0x1b8] sm:$0xf0] }
  0xc2   : > { %v1151_v36 = vpack.c.bf16 %v1087_v34, %v1087_v34  ;;  %v1056_v37 = vmax.f32 %v900_v35, 0.0  ;;  %v1686_v35 = vor.u32 %v1956_v22, %v1685_v19 }
  0xc3   : > { %v810_v38 = vpop.f32.mrf.mxu2 }
  0xc4   : > { %1216 = vst.msk [vmem:[%s2397_s12 + $0x84] sm:$0xf] %vm1182_vm0, %v1151_v36  ;;  %v1120_v39 = vpack.c.bf16 %v1056_v37, %v1056_v37  ;;  %v811_v40 = vadd.f32 %v2384_v48, %v810_v38  ;;  %v979_v41 = vpop.f32.mrf.mxu3  ;;  %v1814_v36 = vor.u32 %v1988_v24, %v1813_v23  ;;  %v1690_v38 = vor.u32 %v1955_v25, %v1687_v26 }
  0xc5   : > { %v732_v42 = vpop.f32.mrf.mxu0 }
  0xc6   : > { %1185 = vst.msk [vmem:[%s2397_s12 + $0x8] sm:$0xf] %vm1182_vm0, %v1120_v39  ;;  %v980_v43 = vadd.f32 %v979_v41, %v811_v40  ;;  %v733_v44 = vadd.f32 %v2384_v48, %v732_v42  ;;  %v901_v45 = vpop.f32.mrf.mxu1  ;;  %v1818_v39 = vor.u32 %v1987_v29, %v1815_v30 }
  0xc8   : > { %v1088_v47 = vmax.f32 %v980_v43, 0.0  ;;  %v902_v49 = vadd.f32 %v901_v45, %v733_v44 }
  0xca   : > { %v1152_v55 = vpack.c.bf16 %v1088_v47, %v1088_v47  ;;  %v1057_v56 = vmax.f32 %v902_v49, 0.0 }
  0xcb   : > { %v812_v59 = vpop.f32.mrf.mxu2 }
  0xcc   : > { %1217 = vst.msk [vmem:[%s2397_s12 + $0x88] sm:$0xf] %vm1182_vm0, %v1152_v55  ;;  %v1121_v60 = vpack.c.bf16 %v1057_v56, %v1057_v56  ;;  %v813_v61 = vadd.f32 %v2384_v48, %v812_v59  ;;  %v981_v62 = vpop.f32.mrf.mxu3  ;;  %v1693_v56 = vld [vmem:[%s2306_s4 + $0xc0] sm:$0xf]  ;;  %v1958_v59 = vld [vmem:[%s2306_s4 + $0xc4] sm:$0xf0] }
  0xcd   : > { %v735_v1 = vpop.f32.mrf.mxu0 }
  0xce   : > { %1186 = vst.msk [vmem:[%s2397_s12 + $0xc] sm:$0xf] %vm1182_vm0, %v1121_v60  ;;  %v982_v4 = vadd.f32 %v981_v62, %v813_v61  ;;  %v736_v5 = vadd.f32 %v2384_v48, %v735_v1  ;;  %v904_v6 = vpop.f32.mrf.mxu1  ;;  %v1821_v60 = vld [vmem:[%s2306_s4 + $0x1c0] sm:$0xf]  ;;  %v1990_v61 = vld [vmem:[%s2306_s4 + $0x1c4] sm:$0xf0] }
  0xcf   : > { %v1957_v62 = vld [vmem:[%s2306_s4 + $0xc4] sm:$0xf] }
  0xd0   : > { %v1089_v7 = vmax.f32 %v982_v4, 0.0  ;;  %v905_v8 = vadd.f32 %v904_v6, %v736_v5  ;;  %774 = vmatmul.bf16.gmra.mxu0 %v1678_v63  ;;  %854 = vmatmul.bf16.gmra.mxu2 %v1806_v0  ;;  %v1695_v63 = vld [vmem:[%s2306_s4 + $0xc8] sm:$0xf0] }
  0xd1   : > { %943 = vmatmul.bf16.gmra.mxu1 %v1682_v2  ;;  %1023 = vmatmul.bf16.gmra.mxu3 %v1810_v3  ;;  %v1989_v2 = vld [vmem:[%s2306_s4 + $0x1c4] sm:$0xf]  ;;  %v1823_v3 = vld [vmem:[%s2306_s4 + $0x1c8] sm:$0xf0] }
  0xd2   : > { %v1153_v9 = vpack.c.bf16 %v1089_v7, %v1089_v7  ;;  %v1058_v10 = vmax.f32 %v905_v8, 0.0  ;;  %v1694_v8 = vor.u32 %v1958_v59, %v1693_v56 }
  0xd3   : > { %v815_v11 = vpop.f32.mrf.mxu2 }
  0xd4   : > { %1218 = vst.msk [vmem:[%s2397_s12 + $0x8c] sm:$0xf] %vm1182_vm0, %v1153_v9  ;;  %v1122_v12 = vpack.c.bf16 %v1058_v10, %v1058_v10  ;;  %v816_v13 = vadd.f32 %v2384_v48, %v815_v11  ;;  %v984_v14 = vpop.f32.mrf.mxu3  ;;  %v1822_v9 = vor.u32 %v1990_v61, %v1821_v60  ;;  %v1698_v11 = vor.u32 %v1957_v62, %v1695_v63 }
  0xd5   : > { %v737_v15 = vpop.f32.mrf.mxu0 }
  0xd6   : > { %1187 = vst.msk [vmem:[%s2397_s12 + $0x10] sm:$0xf] %vm1182_vm0, %v1122_v12  ;;  %v985_v16 = vadd.f32 %v984_v14, %v816_v13  ;;  %v738_v17 = vadd.f32 %v2384_v48, %v737_v15  ;;  %v906_v18 = vpop.f32.mrf.mxu1  ;;  %v1826_v12 = vor.u32 %v1989_v2, %v1823_v3 }
  0xd8   : > { %v1090_v20 = vmax.f32 %v985_v16, 0.0  ;;  %v907_v21 = vadd.f32 %v906_v18, %v738_v17 }
  0xda   : > { %v1154_v27 = vpack.c.bf16 %v1090_v20, %v1090_v20  ;;  %v1059_v28 = vmax.f32 %v907_v21, 0.0 }
  0xdb   : > { %v817_v31 = vpop.f32.mrf.mxu2 }
  0xdc   : > { %1219 = vst.msk [vmem:[%s2397_s12 + $0x90] sm:$0xf] %vm1182_vm0, %v1154_v27  ;;  %v1123_v32 = vpack.c.bf16 %v1059_v28, %v1059_v28  ;;  %v818_v33 = vadd.f32 %v2384_v48, %v817_v31  ;;  %v986_v34 = vpop.f32.mrf.mxu3  ;;  %v1701_v28 = vld [vmem:[%s2306_s4 + $0xd0] sm:$0xf]  ;;  %v1960_v31 = vld [vmem:[%s2306_s4 + $0xd4] sm:$0xf0] }
  0xdd   : > { %v740_v37 = vpop.f32.mrf.mxu0 }
  0xde   : > { %1188 = vst.msk [vmem:[%s2397_s12 + $0x14] sm:$0xf] %vm1182_vm0, %v1123_v32  ;;  %v987_v40 = vadd.f32 %v986_v34, %v818_v33  ;;  %v741_v41 = vadd.f32 %v2384_v48, %v740_v37  ;;  %v909_v42 = vpop.f32.mrf.mxu1  ;;  %v1829_v32 = vld [vmem:[%s2306_s4 + $0x1d0] sm:$0xf]  ;;  %v1992_v33 = vld [vmem:[%s2306_s4 + $0x1d4] sm:$0xf0] }
  0xdf   : > { %v1959_v34 = vld [vmem:[%s2306_s4 + $0xd4] sm:$0xf] }
  0xe0   : > { %v1091_v43 = vmax.f32 %v987_v40, 0.0  ;;  %v910_v44 = vadd.f32 %v909_v42, %v741_v41  ;;  %779 = vmatmul.bf16.gmra.mxu0 %v1686_v35  ;;  %859 = vmatmul.bf16.gmra.mxu2 %v1814_v36  ;;  %v1703_v35 = vld [vmem:[%s2306_s4 + $0xd8] sm:$0xf0] }
  0xe1   : > { %948 = vmatmul.bf16.gmra.mxu1 %v1690_v38  ;;  %1028 = vmatmul.bf16.gmra.mxu3 %v1818_v39  ;;  %v1991_v38 = vld [vmem:[%s2306_s4 + $0x1d4] sm:$0xf]  ;;  %v1831_v39 = vld [vmem:[%s2306_s4 + $0x1d8] sm:$0xf0] }
  0xe2   : > { %v1155_v45 = vpack.c.bf16 %v1091_v43, %v1091_v43  ;;  %v1060_v46 = vmax.f32 %v910_v44, 0.0  ;;  %v1702_v44 = vor.u32 %v1960_v31, %v1701_v28 }
  0xe3   : > { %v820_v47 = vpop.f32.mrf.mxu2 }
  0xe4   : > { %1220 = vst.msk [vmem:[%s2397_s12 + $0x94] sm:$0xf] %vm1182_vm0, %v1155_v45  ;;  %v1124_v49 = vpack.c.bf16 %v1060_v46, %v1060_v46  ;;  %v821_v50 = vadd.f32 %v2384_v48, %v820_v47  ;;  %v989_v51 = vpop.f32.mrf.mxu3  ;;  %v1830_v45 = vor.u32 %v1992_v33, %v1829_v32  ;;  %v1706_v47 = vor.u32 %v1959_v34, %v1703_v35 }
  0xe5   : > { %v742_v52 = vpop.f32.mrf.mxu0 }
  0xe6   : > { %1189 = vst.msk [vmem:[%s2397_s12 + $0x18] sm:$0xf] %vm1182_vm0, %v1124_v49  ;;  %v990_v53 = vadd.f32 %v989_v51, %v821_v50  ;;  %v743_v54 = vadd.f32 %v2384_v48, %v742_v52  ;;  %v911_v55 = vpop.f32.mrf.mxu1  ;;  %v1834_v49 = vor.u32 %v1991_v38, %v1831_v39 }
  0xe8   : > { %v1092_v57 = vmax.f32 %v990_v53, 0.0  ;;  %v912_v58 = vadd.f32 %v911_v55, %v743_v54 }
  0xea   : > { %v1156_v0 = vpack.c.bf16 %v1092_v57, %v1092_v57  ;;  %v1061_v1 = vmax.f32 %v912_v58, 0.0 }
  0xeb   : > { %v822_v4 = vpop.f32.mrf.mxu2 }
  0xec   : > { %1221 = vst.msk [vmem:[%s2397_s12 + $0x98] sm:$0xf] %vm1182_vm0, %v1156_v0  ;;  %v1125_v5 = vpack.c.bf16 %v1061_v1, %v1061_v1  ;;  %v823_v6 = vadd.f32 %v2384_v48, %v822_v4  ;;  %v991_v7 = vpop.f32.mrf.mxu3  ;;  %v1709_v1 = vld [vmem:[%s2306_s4 + $0xe0] sm:$0xf]  ;;  %v1962_v4 = vld [vmem:[%s2306_s4 + $0xe4] sm:$0xf0] }
  0xed   : > { %v745_v10 = vpop.f32.mrf.mxu0 }
  0xee   : > { %1190 = vst.msk [vmem:[%s2397_s12 + $0x1c] sm:$0xf] %vm1182_vm0, %v1125_v5  ;;  %v992_v13 = vadd.f32 %v991_v7, %v823_v6  ;;  %v746_v14 = vadd.f32 %v2384_v48, %v745_v10  ;;  %v914_v15 = vpop.f32.mrf.mxu1  ;;  %v1837_v5 = vld [vmem:[%s2306_s4 + $0x1e0] sm:$0xf]  ;;  %v1994_v6 = vld [vmem:[%s2306_s4 + $0x1e4] sm:$0xf0] }
  0xef   : > { %v1961_v7 = vld [vmem:[%s2306_s4 + $0xe4] sm:$0xf] }
  0xf0   : > { %v1093_v16 = vmax.f32 %v992_v13, 0.0  ;;  %v915_v17 = vadd.f32 %v914_v15, %v746_v14  ;;  %784 = vmatmul.bf16.gmra.mxu0 %v1694_v8  ;;  %864 = vmatmul.bf16.gmra.mxu2 %v1822_v9  ;;  %v1711_v8 = vld [vmem:[%s2306_s4 + $0xe8] sm:$0xf0] }
  0xf1   : > { %953 = vmatmul.bf16.gmra.mxu1 %v1698_v11  ;;  %1033 = vmatmul.bf16.gmra.mxu3 %v1826_v12  ;;  %v1993_v11 = vld [vmem:[%s2306_s4 + $0x1e4] sm:$0xf]  ;;  %v1839_v12 = vld [vmem:[%s2306_s4 + $0x1e8] sm:$0xf0] }
  0xf2   : > { %v1157_v18 = vpack.c.bf16 %v1093_v16, %v1093_v16  ;;  %v1062_v19 = vmax.f32 %v915_v17, 0.0  ;;  %v1710_v17 = vor.u32 %v1962_v4, %v1709_v1 }
  0xf3   : > { %v825_v20 = vpop.f32.mrf.mxu2 }
  0xf4   : > { %1222 = vst.msk [vmem:[%s2397_s12 + $0x9c] sm:$0xf] %vm1182_vm0, %v1157_v18  ;;  %v1126_v21 = vpack.c.bf16 %v1062_v19, %v1062_v19  ;;  %v826_v22 = vadd.f32 %v2384_v48, %v825_v20  ;;  %v994_v23 = vpop.f32.mrf.mxu3  ;;  %v1838_v18 = vor.u32 %v1994_v6, %v1837_v5  ;;  %v1714_v20 = vor.u32 %v1961_v7, %v1711_v8 }
  0xf5   : > { %v747_v24 = vpop.f32.mrf.mxu0 }
  0xf6   : > { %1191 = vst.msk [vmem:[%s2397_s12 + $0x20] sm:$0xf] %vm1182_vm0, %v1126_v21  ;;  %v995_v25 = vadd.f32 %v994_v23, %v826_v22  ;;  %v748_v26 = vadd.f32 %v2384_v48, %v747_v24  ;;  %v916_v27 = vpop.f32.mrf.mxu1  ;;  %v1842_v21 = vor.u32 %v1993_v11, %v1839_v12 }
  0xf8   : > { %v1094_v29 = vmax.f32 %v995_v25, 0.0  ;;  %v917_v30 = vadd.f32 %v916_v27, %v748_v26 }
  0xfa   : > { %v1158_v36 = vpack.c.bf16 %v1094_v29, %v1094_v29  ;;  %v1063_v37 = vmax.f32 %v917_v30, 0.0 }
  0xfb   : > { %v827_v40 = vpop.f32.mrf.mxu2 }
  0xfc   : > { %1223 = vst.msk [vmem:[%s2397_s12 + $0xa0] sm:$0xf] %vm1182_vm0, %v1158_v36  ;;  %v1127_v41 = vpack.c.bf16 %v1063_v37, %v1063_v37  ;;  %v828_v42 = vadd.f32 %v2384_v48, %v827_v40  ;;  %v996_v43 = vpop.f32.mrf.mxu3  ;;  %v1717_v37 = vld [vmem:[%s2306_s4 + $0xf0] sm:$0xf]  ;;  %v1964_v40 = vld [vmem:[%s2306_s4 + $0xf4] sm:$0xf0] }
  0xfd   : > { %v750_v46 = vpop.f32.mrf.mxu0 }
  0xfe   : > { %1192 = vst.msk [vmem:[%s2397_s12 + $0x24] sm:$0xf] %vm1182_vm0, %v1127_v41  ;;  %v997_v50 = vadd.f32 %v996_v43, %v828_v42  ;;  %v751_v51 = vadd.f32 %v2384_v48, %v750_v46  ;;  %v919_v52 = vpop.f32.mrf.mxu1  ;;  %v1845_v41 = vld [vmem:[%s2306_s4 + $0x1f0] sm:$0xf]  ;;  %v1996_v42 = vld [vmem:[%s2306_s4 + $0x1f4] sm:$0xf0] }
  0xff   : > { %v1963_v43 = vld [vmem:[%s2306_s4 + $0xf4] sm:$0xf] }
 0x100   : > { %v1095_v53 = vmax.f32 %v997_v50, 0.0  ;;  %v920_v54 = vadd.f32 %v919_v52, %v751_v51  ;;  %789 = vmatmul.bf16.gmra.mxu0 %v1702_v44  ;;  %869 = vmatmul.bf16.gmra.mxu2 %v1830_v45  ;;  %v1719_v44 = vld [vmem:[%s2306_s4 + $0xf8] sm:$0xf0] }
 0x101   : > { %958 = vmatmul.bf16.gmra.mxu1 %v1706_v47  ;;  %1038 = vmatmul.bf16.gmra.mxu3 %v1834_v49  ;;  %v1995_v47 = vld [vmem:[%s2306_s4 + $0x1f4] sm:$0xf]  ;;  %v1847_v49 = vld [vmem:[%s2306_s4 + $0x1f8] sm:$0xf0] }
 0x102   : > { %v1159_v55 = vpack.c.bf16 %v1095_v53, %v1095_v53  ;;  %v1064_v56 = vmax.f32 %v920_v54, 0.0  ;;  %v1718_v54 = vor.u32 %v1964_v40, %v1717_v37 }
 0x103   : > { %v830_v57 = vpop.f32.mrf.mxu2 }
 0x104   : > { %1224 = vst.msk [vmem:[%s2397_s12 + $0xa4] sm:$0xf] %vm1182_vm0, %v1159_v55  ;;  %v1128_v58 = vpack.c.bf16 %v1064_v56, %v1064_v56  ;;  %v831_v59 = vadd.f32 %v2384_v48, %v830_v57  ;;  %v999_v60 = vpop.f32.mrf.mxu3  ;;  %v1846_v55 = vor.u32 %v1996_v42, %v1845_v41  ;;  %v1722_v57 = vor.u32 %v1963_v43, %v1719_v44 }
 0x105   : > { %v752_v61 = vpop.f32.mrf.mxu0 }
 0x106   : > { %1193 = vst.msk [vmem:[%s2397_s12 + $0x28] sm:$0xf] %vm1182_vm0, %v1128_v58  ;;  %v1000_v62 = vadd.f32 %v999_v60, %v831_v59  ;;  %v753_v63 = vadd.f32 %v2384_v48, %v752_v61  ;;  %v921_v0 = vpop.f32.mrf.mxu1  ;;  %v1850_v58 = vor.u32 %v1995_v47, %v1847_v49 }
 0x108   : > { %v1096_v2 = vmax.f32 %v1000_v62, 0.0  ;;  %v922_v3 = vadd.f32 %v921_v0, %v753_v63 }
 0x10a   : > { %v1160_v9 = vpack.c.bf16 %v1096_v2, %v1096_v2  ;;  %v1065_v10 = vmax.f32 %v922_v3, 0.0 }
 0x10b   : > { %v832_v13 = vpop.f32.mrf.mxu2 }
 0x10c   : > { %1225 = vst.msk [vmem:[%s2397_s12 + $0xa8] sm:$0xf] %vm1182_vm0, %v1160_v9  ;;  %v1129_v14 = vpack.c.bf16 %v1065_v10, %v1065_v10  ;;  %v833_v15 = vadd.f32 %v2384_v48, %v832_v13  ;;  %v1001_v16 = vpop.f32.mrf.mxu3 }
 0x10d   : > { %v755_v19 = vpop.f32.mrf.mxu0 }
 0x10e   : > { %1194 = vst.msk [vmem:[%s2397_s12 + $0x2c] sm:$0xf] %vm1182_vm0, %v1129_v14  ;;  %v1002_v22 = vadd.f32 %v1001_v16, %v833_v15  ;;  %v756_v23 = vadd.f32 %v2384_v48, %v755_v19  ;;  %v924_v24 = vpop.f32.mrf.mxu1 }
 0x110   : > { %v1097_v25 = vmax.f32 %v1002_v22, 0.0  ;;  %v925_v26 = vadd.f32 %v924_v24, %v756_v23  ;;  %794 = vmatmul.bf16.gmra.mxu0 %v1710_v17  ;;  %874 = vmatmul.bf16.gmra.mxu2 %v1838_v18 }
 0x111   : > { %963 = vmatmul.bf16.gmra.mxu1 %v1714_v20  ;;  %1043 = vmatmul.bf16.gmra.mxu3 %v1842_v21 }
 0x112   : > { %v1161_v27 = vpack.c.bf16 %v1097_v25, %v1097_v25  ;;  %v1066_v28 = vmax.f32 %v925_v26, 0.0 }
 0x113   : > { %v835_v29 = vpop.f32.mrf.mxu2 }
 0x114   : > { %1226 = vst.msk [vmem:[%s2397_s12 + $0xac] sm:$0xf] %vm1182_vm0, %v1161_v27  ;;  %v1130_v30 = vpack.c.bf16 %v1066_v28, %v1066_v28  ;;  %v836_v31 = vadd.f32 %v2384_v48, %v835_v29  ;;  %v1004_v32 = vpop.f32.mrf.mxu3 }
 0x115   : > { %v757_v33 = vpop.f32.mrf.mxu0 }
 0x116   : > { %1195 = vst.msk [vmem:[%s2397_s12 + $0x30] sm:$0xf] %vm1182_vm0, %v1130_v30  ;;  %v1005_v34 = vadd.f32 %v1004_v32, %v836_v31  ;;  %v758_v35 = vadd.f32 %v2384_v48, %v757_v33  ;;  %v926_v36 = vpop.f32.mrf.mxu1 }
 0x118   : > { %v1098_v38 = vmax.f32 %v1005_v34, 0.0  ;;  %v927_v39 = vadd.f32 %v926_v36, %v758_v35 }
 0x11a   : > { %v1162_v45 = vpack.c.bf16 %v1098_v38, %v1098_v38  ;;  %v1067_v46 = vmax.f32 %v927_v39, 0.0 }
 0x11b   : > { %v837_v50 = vpop.f32.mrf.mxu2 }
 0x11c   : > { %1227 = vst.msk [vmem:[%s2397_s12 + $0xb0] sm:$0xf] %vm1182_vm0, %v1162_v45  ;;  %v1131_v51 = vpack.c.bf16 %v1067_v46, %v1067_v46  ;;  %v838_v52 = vadd.f32 %v2384_v48, %v837_v50  ;;  %v1006_v53 = vpop.f32.mrf.mxu3 }
 0x11d   : > { %v760_v56 = vpop.f32.mrf.mxu0 }
 0x11e   : > { %1196 = vst.msk [vmem:[%s2397_s12 + $0x34] sm:$0xf] %vm1182_vm0, %v1131_v51  ;;  %v1007_v59 = vadd.f32 %v1006_v53, %v838_v52  ;;  %v761_v60 = vadd.f32 %v2384_v48, %v760_v56  ;;  %v929_v61 = vpop.f32.mrf.mxu1 }
 0x120   : > { %v1099_v62 = vmax.f32 %v1007_v59, 0.0  ;;  %v930_v63 = vadd.f32 %v929_v61, %v761_v60  ;;  %799 = vmatmul.bf16.gmra.mxu0 %v1718_v54  ;;  %879 = vmatmul.bf16.gmra.mxu2 %v1846_v55 }
 0x121   : > { %968 = vmatmul.bf16.gmra.mxu1 %v1722_v57  ;;  %1048 = vmatmul.bf16.gmra.mxu3 %v1850_v58 }
 0x122   : > { %v1163_v0 = vpack.c.bf16 %v1099_v62, %v1099_v62  ;;  %v1068_v1 = vmax.f32 %v930_v63, 0.0 }
 0x123   : > { %v840_v2 = vpop.f32.mrf.mxu2 }
 0x124   : > { %1228 = vst.msk [vmem:[%s2397_s12 + $0xb4] sm:$0xf] %vm1182_vm0, %v1163_v0  ;;  %v1132_v3 = vpack.c.bf16 %v1068_v1, %v1068_v1  ;;  %v841_v4 = vadd.f32 %v2384_v48, %v840_v2  ;;  %v1009_v5 = vpop.f32.mrf.mxu3 }
 0x125   : > { %v762_v6 = vpop.f32.mrf.mxu0 }
 0x126   : > { %1197 = vst.msk [vmem:[%s2397_s12 + $0x38] sm:$0xf] %vm1182_vm0, %v1132_v3  ;;  %v1010_v7 = vadd.f32 %v1009_v5, %v841_v4  ;;  %v763_v8 = vadd.f32 %v2384_v48, %v762_v6  ;;  %v931_v9 = vpop.f32.mrf.mxu1 }
 0x128   : > { %v1100_v10 = vmax.f32 %v1010_v7, 0.0  ;;  %v932_v11 = vadd.f32 %v931_v9, %v763_v8 }
 0x12a   : > { %v1164_v12 = vpack.c.bf16 %v1100_v10, %v1100_v10  ;;  %v1069_v13 = vmax.f32 %v932_v11, 0.0 }
 0x12b   : > { %v842_v14 = vpop.f32.mrf.mxu2 }
 0x12c   : > { %1229 = vst.msk [vmem:[%s2397_s12 + $0xb8] sm:$0xf] %vm1182_vm0, %v1164_v12  ;;  %v1133_v15 = vpack.c.bf16 %v1069_v13, %v1069_v13  ;;  %v843_v16 = vadd.f32 %v2384_v48, %v842_v14  ;;  %v1011_v17 = vpop.f32.mrf.mxu3 }
 0x12d   : > { %v765_v18 = vpop.f32.mrf.mxu0 }
 0x12e   : > { %1198 = vst.msk [vmem:[%s2397_s12 + $0x3c] sm:$0xf] %vm1182_vm0, %v1133_v15  ;;  %v1012_v19 = vadd.f32 %v1011_v17, %v843_v16  ;;  %v766_v20 = vadd.f32 %v2384_v48, %v765_v18  ;;  %v934_v21 = vpop.f32.mrf.mxu1 }
 0x130   : > { %v1101_v22 = vmax.f32 %v1012_v19, 0.0  ;;  %v935_v23 = vadd.f32 %v934_v21, %v766_v20 }
 0x132   : > { %v1165_v24 = vpack.c.bf16 %v1101_v22, %v1101_v22  ;;  %v1070_v25 = vmax.f32 %v935_v23, 0.0 }
 0x133   : > { %v845_v26 = vpop.f32.mrf.mxu2 }
 0x134   : > { %1230 = vst.msk [vmem:[%s2397_s12 + $0xbc] sm:$0xf] %vm1182_vm0, %v1165_v24  ;;  %v1134_v27 = vpack.c.bf16 %v1070_v25, %v1070_v25  ;;  %v846_v28 = vadd.f32 %v2384_v48, %v845_v26  ;;  %v1014_v29 = vpop.f32.mrf.mxu3 }
 0x135   : > { %v767_v30 = vpop.f32.mrf.mxu0 }
 0x136   : > { %1199 = vst.msk [vmem:[%s2397_s12 + $0x40] sm:$0xf] %vm1182_vm0, %v1134_v27  ;;  %v1015_v31 = vadd.f32 %v1014_v29, %v846_v28  ;;  %v768_v32 = vadd.f32 %v2384_v48, %v767_v30  ;;  %v936_v33 = vpop.f32.mrf.mxu1 }
 0x138   : > { %v1102_v34 = vmax.f32 %v1015_v31, 0.0  ;;  %v937_v35 = vadd.f32 %v936_v33, %v768_v32 }
 0x13a   : > { %v1166_v36 = vpack.c.bf16 %v1102_v34, %v1102_v34  ;;  %v1071_v37 = vmax.f32 %v937_v35, 0.0 }
 0x13b   : > { %v847_v38 = vpop.f32.mrf.mxu2 }
 0x13c   : > { %1231 = vst.msk [vmem:[%s2397_s12 + $0xc0] sm:$0xf] %vm1182_vm0, %v1166_v36  ;;  %v1135_v39 = vpack.c.bf16 %v1071_v37, %v1071_v37  ;;  %v848_v40 = vadd.f32 %v2384_v48, %v847_v38  ;;  %v1016_v41 = vpop.f32.mrf.mxu3 }
 0x13d   : > { %v770_v42 = vpop.f32.mrf.mxu0 }
 0x13e   : > { %1200 = vst.msk [vmem:[%s2397_s12 + $0x44] sm:$0xf] %vm1182_vm0, %v1135_v39  ;;  %v1017_v43 = vadd.f32 %v1016_v41, %v848_v40  ;;  %v771_v44 = vadd.f32 %v2384_v48, %v770_v42  ;;  %v939_v45 = vpop.f32.mrf.mxu1 }
 0x140   : > { %v1103_v46 = vmax.f32 %v1017_v43, 0.0  ;;  %v940_v47 = vadd.f32 %v939_v45, %v771_v44 }
 0x142   : > { %v1167_v49 = vpack.c.bf16 %v1103_v46, %v1103_v46  ;;  %v1072_v50 = vmax.f32 %v940_v47, 0.0 }
 0x143   : > { %v850_v51 = vpop.f32.mrf.mxu2 }
 0x144   : > { %1232 = vst.msk [vmem:[%s2397_s12 + $0xc4] sm:$0xf] %vm1182_vm0, %v1167_v49  ;;  %v1136_v52 = vpack.c.bf16 %v1072_v50, %v1072_v50  ;;  %v851_v53 = vadd.f32 %v2384_v48, %v850_v51  ;;  %v1019_v54 = vpop.f32.mrf.mxu3 }
 0x145   : > { %v772_v55 = vpop.f32.mrf.mxu0 }
 0x146   : > { %1201 = vst.msk [vmem:[%s2397_s12 + $0x48] sm:$0xf] %vm1182_vm0, %v1136_v52  ;;  %v1020_v56 = vadd.f32 %v1019_v54, %v851_v53  ;;  %v773_v57 = vadd.f32 %v2384_v48, %v772_v55  ;;  %v941_v58 = vpop.f32.mrf.mxu1 }
 0x148   : > { %v1104_v59 = vmax.f32 %v1020_v56, 0.0  ;;  %v942_v60 = vadd.f32 %v941_v58, %v773_v57 }
 0x14a   : > { %v1168_v61 = vpack.c.bf16 %v1104_v59, %v1104_v59  ;;  %v1073_v62 = vmax.f32 %v942_v60, 0.0 }
 0x14b   : > { %v852_v63 = vpop.f32.mrf.mxu2 }
 0x14c   : > { %1233 = vst.msk [vmem:[%s2397_s12 + $0xc8] sm:$0xf] %vm1182_vm0, %v1168_v61  ;;  %v1137_v0 = vpack.c.bf16 %v1073_v62, %v1073_v62  ;;  %v853_v1 = vadd.f32 %v2384_v48, %v852_v63  ;;  %v1021_v2 = vpop.f32.mrf.mxu3 }
 0x14d   : > { %v775_v3 = vpop.f32.mrf.mxu0 }
 0x14e   : > { %1202 = vst.msk [vmem:[%s2397_s12 + $0x4c] sm:$0xf] %vm1182_vm0, %v1137_v0  ;;  %v1022_v4 = vadd.f32 %v1021_v2, %v853_v1  ;;  %v776_v5 = vadd.f32 %v2384_v48, %v775_v3  ;;  %v944_v6 = vpop.f32.mrf.mxu1 }
 0x150   : > { %v1105_v7 = vmax.f32 %v1022_v4, 0.0  ;;  %v945_v8 = vadd.f32 %v944_v6, %v776_v5 }
 0x152   : > { %v1169_v9 = vpack.c.bf16 %v1105_v7, %v1105_v7  ;;  %v1074_v10 = vmax.f32 %v945_v8, 0.0 }
 0x153   : > { %v855_v11 = vpop.f32.mrf.mxu2 }
 0x154   : > { %1234 = vst.msk [vmem:[%s2397_s12 + $0xcc] sm:$0xf] %vm1182_vm0, %v1169_v9  ;;  %v1138_v12 = vpack.c.bf16 %v1074_v10, %v1074_v10  ;;  %v856_v13 = vadd.f32 %v2384_v48, %v855_v11  ;;  %v1024_v14 = vpop.f32.mrf.mxu3 }
 0x155   : > { %v777_v15 = vpop.f32.mrf.mxu0 }
 0x156   : > { %1203 = vst.msk [vmem:[%s2397_s12 + $0x50] sm:$0xf] %vm1182_vm0, %v1138_v12  ;;  %v1025_v16 = vadd.f32 %v1024_v14, %v856_v13  ;;  %v778_v17 = vadd.f32 %v2384_v48, %v777_v15  ;;  %v946_v18 = vpop.f32.mrf.mxu1 }
 0x158   : > { %v1106_v19 = vmax.f32 %v1025_v16, 0.0  ;;  %v947_v20 = vadd.f32 %v946_v18, %v778_v17 }
 0x15a   : > { %v1170_v21 = vpack.c.bf16 %v1106_v19, %v1106_v19  ;;  %v1075_v22 = vmax.f32 %v947_v20, 0.0 }
 0x15b   : > { %v857_v23 = vpop.f32.mrf.mxu2 }
 0x15c   : > { %1235 = vst.msk [vmem:[%s2397_s12 + $0xd0] sm:$0xf] %vm1182_vm0, %v1170_v21  ;;  %v1139_v24 = vpack.c.bf16 %v1075_v22, %v1075_v22  ;;  %v858_v25 = vadd.f32 %v2384_v48, %v857_v23  ;;  %v1026_v26 = vpop.f32.mrf.mxu3 }
 0x15d   : > { %v780_v27 = vpop.f32.mrf.mxu0 }
 0x15e   : > { %1204 = vst.msk [vmem:[%s2397_s12 + $0x54] sm:$0xf] %vm1182_vm0, %v1139_v24  ;;  %v1027_v28 = vadd.f32 %v1026_v26, %v858_v25  ;;  %v781_v29 = vadd.f32 %v2384_v48, %v780_v27  ;;  %v949_v30 = vpop.f32.mrf.mxu1 }
 0x160   : > { %v1107_v31 = vmax.f32 %v1027_v28, 0.0  ;;  %v950_v32 = vadd.f32 %v949_v30, %v781_v29 }
 0x162   : > { %v1171_v33 = vpack.c.bf16 %v1107_v31, %v1107_v31  ;;  %v1076_v34 = vmax.f32 %v950_v32, 0.0 }
 0x163   : > { %v860_v35 = vpop.f32.mrf.mxu2 }
 0x164   : > { %1236 = vst.msk [vmem:[%s2397_s12 + $0xd4] sm:$0xf] %vm1182_vm0, %v1171_v33  ;;  %v1140_v36 = vpack.c.bf16 %v1076_v34, %v1076_v34  ;;  %v861_v37 = vadd.f32 %v2384_v48, %v860_v35  ;;  %v1029_v38 = vpop.f32.mrf.mxu3  ;;  %v2121_v34 = vld [vmem:[%s2783_s2] ss:$0 sm:$0xff] }
 0x165   : > { %v782_v39 = vpop.f32.mrf.mxu0 }
 0x166   : > { %1205 = vst.msk [vmem:[%s2397_s12 + $0x58] sm:$0xf] %vm1182_vm0, %v1140_v36  ;;  %v1030_v40 = vadd.f32 %v1029_v38, %v861_v37  ;;  %v783_v41 = vadd.f32 %v2384_v48, %v782_v39  ;;  %v951_v42 = vpop.f32.mrf.mxu1 }
 0x168   : > { %v1108_v43 = vmax.f32 %v1030_v40, 0.0  ;;  %v952_v44 = vadd.f32 %v951_v42, %v783_v41 }
 0x16a   : > { %v1172_v45 = vpack.c.bf16 %v1108_v43, %v1108_v43  ;;  %v1077_v46 = vmax.f32 %v952_v44, 0.0 }
 0x16b   : > { %v862_v47 = vpop.f32.mrf.mxu2 }
 0x16c   : > { %1237 = vst.msk [vmem:[%s2397_s12 + $0xd8] sm:$0xf] %vm1182_vm0, %v1172_v45  ;;  %v1141_v49 = vpack.c.bf16 %v1077_v46, %v1077_v46  ;;  %v863_v50 = vadd.f32 %v2384_v48, %v862_v47  ;;  %v1031_v51 = vpop.f32.mrf.mxu3 }
 0x16d   : > { %v785_v52 = vpop.f32.mrf.mxu0 }
 0x16e   : > { %1206 = vst.msk [vmem:[%s2397_s12 + $0x5c] sm:$0xf] %vm1182_vm0, %v1141_v49  ;;  %v1032_v53 = vadd.f32 %v1031_v51, %v863_v50  ;;  %v786_v54 = vadd.f32 %v2384_v48, %v785_v52  ;;  %v954_v55 = vpop.f32.mrf.mxu1 }
 0x170   : > { %v1109_v56 = vmax.f32 %v1032_v53, 0.0  ;;  %v955_v57 = vadd.f32 %v954_v55, %v786_v54 }
 0x172   : > { %v1173_v58 = vpack.c.bf16 %v1109_v56, %v1109_v56  ;;  %v1078_v59 = vmax.f32 %v955_v57, 0.0 }
 0x173   : > { %v865_v60 = vpop.f32.mrf.mxu2 }
 0x174   : > { %1238 = vst.msk [vmem:[%s2397_s12 + $0xdc] sm:$0xf] %vm1182_vm0, %v1173_v58  ;;  %v1142_v61 = vpack.c.bf16 %v1078_v59, %v1078_v59  ;;  %v866_v62 = vadd.f32 %v2384_v48, %v865_v60  ;;  %v1034_v63 = vpop.f32.mrf.mxu3 }
 0x175   : > { %v787_v0 = vpop.f32.mrf.mxu0 }
 0x176   : > { %1207 = vst.msk [vmem:[%s2397_s12 + $0x60] sm:$0xf] %vm1182_vm0, %v1142_v61  ;;  %v1035_v1 = vadd.f32 %v1034_v63, %v866_v62  ;;  %v788_v2 = vadd.f32 %v2384_v48, %v787_v0  ;;  %v956_v3 = vpop.f32.mrf.mxu1 }
 0x178   : > { %v1110_v4 = vmax.f32 %v1035_v1, 0.0  ;;  %v957_v5 = vadd.f32 %v956_v3, %v788_v2 }
 0x17a   : > { %v1174_v6 = vpack.c.bf16 %v1110_v4, %v1110_v4  ;;  %v1079_v7 = vmax.f32 %v957_v5, 0.0 }
 0x17b   : > { %v867_v8 = vpop.f32.mrf.mxu2 }
 0x17c   : > { %1239 = vst.msk [vmem:[%s2397_s12 + $0xe0] sm:$0xf] %vm1182_vm0, %v1174_v6  ;;  %v1143_v9 = vpack.c.bf16 %v1079_v7, %v1079_v7  ;;  %v868_v10 = vadd.f32 %v2384_v48, %v867_v8  ;;  %v1036_v11 = vpop.f32.mrf.mxu3 }
 0x17d   : > { %v790_v12 = vpop.f32.mrf.mxu0 }
 0x17e   : > { %1208 = vst.msk [vmem:[%s2397_s12 + $0x64] sm:$0xf] %vm1182_vm0, %v1143_v9  ;;  %v1037_v13 = vadd.f32 %v1036_v11, %v868_v10  ;;  %v791_v14 = vadd.f32 %v2384_v48, %v790_v12  ;;  %v959_v15 = vpop.f32.mrf.mxu1 }
 0x180   : > { %v1111_v16 = vmax.f32 %v1037_v13, 0.0  ;;  %v960_v17 = vadd.f32 %v959_v15, %v791_v14 }
 0x182   : > { %v1175_v18 = vpack.c.bf16 %v1111_v16, %v1111_v16  ;;  %v1080_v19 = vmax.f32 %v960_v17, 0.0 }
 0x183   : > { %v870_v20 = vpop.f32.mrf.mxu2 }
 0x184   : > { %1240 = vst.msk [vmem:[%s2397_s12 + $0xe4] sm:$0xf] %vm1182_vm0, %v1175_v18  ;;  %v1144_v21 = vpack.c.bf16 %v1080_v19, %v1080_v19  ;;  %v871_v22 = vadd.f32 %v2384_v48, %v870_v20  ;;  %v1039_v23 = vpop.f32.mrf.mxu3 }
 0x185   : > { %v792_v24 = vpop.f32.mrf.mxu0 }
 0x186   : > { %1209 = vst.msk [vmem:[%s2397_s12 + $0x68] sm:$0xf] %vm1182_vm0, %v1144_v21  ;;  %v1040_v25 = vadd.f32 %v1039_v23, %v871_v22  ;;  %v793_v26 = vadd.f32 %v2384_v48, %v792_v24  ;;  %v961_v27 = vpop.f32.mrf.mxu1 }
 0x188   : > { %v1112_v28 = vmax.f32 %v1040_v25, 0.0  ;;  %v962_v29 = vadd.f32 %v961_v27, %v793_v26 }
 0x18a   : > { %v1176_v30 = vpack.c.bf16 %v1112_v28, %v1112_v28  ;;  %v1081_v31 = vmax.f32 %v962_v29, 0.0 }
 0x18b   : > { %v872_v32 = vpop.f32.mrf.mxu2 }
 0x18c   : > { %1241 = vst.msk [vmem:[%s2397_s12 + $0xe8] sm:$0xf] %vm1182_vm0, %v1176_v30  ;;  %v1145_v33 = vpack.c.bf16 %v1081_v31, %v1081_v31  ;;  %v873_v35 = vadd.f32 %v2121_v34, %v872_v32  ;;  %v1041_v36 = vpop.f32.mrf.mxu3 }
 0x18d   : > { %v795_v37 = vpop.f32.mrf.mxu0 }
 0x18e   : > { %1210 = vst.msk [vmem:[%s2397_s12 + $0x6c] sm:$0xf] %vm1182_vm0, %v1145_v33  ;;  %v1042_v48 = vadd.f32 %v1041_v36, %v873_v35  ;;  %v796_v38 = vadd.f32 %v2121_v34, %v795_v37  ;;  %v964_v39 = vpop.f32.mrf.mxu1 }
 0x190   : > { %v1113_v40 = vmax.f32 %v1042_v48, 0.0  ;;  %v965_v41 = vadd.f32 %v964_v39, %v796_v38 }
 0x192   : > { %v1177_v42 = vpack.c.bf16 %v1113_v40, %v1113_v40  ;;  %v1082_v43 = vmax.f32 %v965_v41, 0.0 }
 0x193   : > { %v875_v44 = vpop.f32.mrf.mxu2 }
 0x194   : > { %1242 = vst.msk [vmem:[%s2397_s12 + $0xec] sm:$0xf] %vm1182_vm0, %v1177_v42  ;;  %v1146_v45 = vpack.c.bf16 %v1082_v43, %v1082_v43  ;;  %v876_v46 = vadd.f32 %v2121_v34, %v875_v44  ;;  %v1044_v47 = vpop.f32.mrf.mxu3 }
 0x195   : > { %v797_v49 = vpop.f32.mrf.mxu0 }
 0x196   : > { %1211 = vst.msk [vmem:[%s2397_s12 + $0x70] sm:$0xf] %vm1182_vm0, %v1146_v45  ;;  %v1045_v50 = vadd.f32 %v1044_v47, %v876_v46  ;;  %v798_v51 = vadd.f32 %v2121_v34, %v797_v49  ;;  %v966_v52 = vpop.f32.mrf.mxu1 }
 0x198   : > { %v1114_v53 = vmax.f32 %v1045_v50, 0.0  ;;  %v967_v54 = vadd.f32 %v966_v52, %v798_v51 }
 0x19a   : > { %v1178_v55 = vpack.c.bf16 %v1114_v53, %v1114_v53  ;;  %v1083_v56 = vmax.f32 %v967_v54, 0.0 }
 0x19b   : > { %v877_v57 = vpop.f32.mrf.mxu2 }
 0x19c   : > { %1243 = vst.msk [vmem:[%s2397_s12 + $0xf0] sm:$0xf] %vm1182_vm0, %v1178_v55  ;;  %v1147_v58 = vpack.c.bf16 %v1083_v56, %v1083_v56  ;;  %v878_v59 = vadd.f32 %v2121_v34, %v877_v57  ;;  %v1046_v60 = vpop.f32.mrf.mxu3 }
 0x19d   : > { %v800_v61 = vpop.f32.mrf.mxu0 }
 0x19e   : > { %1212 = vst.msk [vmem:[%s2397_s12 + $0x74] sm:$0xf] %vm1182_vm0, %v1147_v58  ;;  %v1047_v62 = vadd.f32 %v1046_v60, %v878_v59  ;;  %v801_v63 = vadd.f32 %v2121_v34, %v800_v61  ;;  %v969_v0 = vpop.f32.mrf.mxu1 }
 0x1a0   : > { %v1115_v1 = vmax.f32 %v1047_v62, 0.0  ;;  %v970_v2 = vadd.f32 %v969_v0, %v801_v63 }
 0x1a2   : > { %v1179_v3 = vpack.c.bf16 %v1115_v1, %v1115_v1  ;;  %v1084_v4 = vmax.f32 %v970_v2, 0.0 }
 0x1a3   : > { %v880_v5 = vpop.f32.mrf.mxu2 }
 0x1a4   : > { %1244 = vst.msk [vmem:[%s2397_s12 + $0xf4] sm:$0xf] %vm1182_vm0, %v1179_v3  ;;  %v1148_v6 = vpack.c.bf16 %v1084_v4, %v1084_v4  ;;  %v881_v7 = vadd.f32 %v2121_v34, %v880_v5  ;;  %v1049_v8 = vpop.f32.mrf.mxu3 }
 0x1a5   : > { %v802_v9 = vpop.f32.mrf.mxu0 }
 0x1a6   : > { %1213 = vst.msk [vmem:[%s2397_s12 + $0x78] sm:$0xf] %vm1182_vm0, %v1148_v6  ;;  %v1050_v10 = vadd.f32 %v1049_v8, %v881_v7  ;;  %v803_v11 = vadd.f32 %v2121_v34, %v802_v9  ;;  %v971_v12 = vpop.f32.mrf.mxu1 }
 0x1a8   : > { %v1116_v13 = vmax.f32 %v1050_v10, 0.0  ;;  %v972_v14 = vadd.f32 %v971_v12, %v803_v11 }
 0x1aa   : > { %v1180_v15 = vpack.c.bf16 %v1116_v13, %v1116_v13  ;;  %v1085_v16 = vmax.f32 %v972_v14, 0.0 }
 0x1ab   : > { %v882_v17 = vpop.f32.mrf.mxu2 }
 0x1ac   : > { %1245 = vst.msk [vmem:[%s2397_s12 + $0xf8] sm:$0xf] %vm1182_vm0, %v1180_v15  ;;  %v1149_v18 = vpack.c.bf16 %v1085_v16, %v1085_v16  ;;  %v883_v19 = vadd.f32 %v2121_v34, %v882_v17  ;;  %v1051_v20 = vpop.f32.mrf.mxu3 }
 0x1ae   : > { %1214 = vst.msk [vmem:[%s2397_s12 + $0x7c] sm:$0xf] %vm1182_vm0, %v1149_v18  ;;  %v1052_v21 = vadd.f32 %v1051_v20, %v883_v19 }
 0x1b0   : > { %v1117_v22 = vmax.f32 %v1052_v21, 0.0  ;;  %1253 = sbr.rel (!%p2255_p4) target bundleno = 501 (0x1f5), region = 36 }
 0x1b2   : > { %v1181_v23 = vpack.c.bf16 %v1117_v22, %v1117_v22 }
 0x1b4   : > { %1246 = vst.msk [vmem:[%s2397_s12 + $0xfc] sm:$0xf] %vm1182_vm0, %v1181_v23 }
 0x1b5   : > { %s2795_s24 = smov (!%p1256_p8, %s1255_s24), 64 }
 0x1b6   : > { %s1917_s29 = sshll.u32 %s2795_s24, 2 }
 0x1b7   : > { %p1920_p9 = scmp.eq.s32.totalorder %s1917_s29, 0 }
 0x1b8   : > { %s2652_s30 = sshrl.u32 (!%p1920_p9), %s2795_s24, 5 }
 0x1b9   : > { %1264 = sbr.rel (%p1920_p9) target bundleno = 501 (0x1f5), region = 40  ;;  %p1921_p10 = scmp.le.s32.totalorder (!%p1920_p9), %s2652_s30, 0 }
 0x1be   : > { %1543 = sbr.rel (%p1921_p10) target bundleno = 484 (0x1e4), region = 112  ;;  %s2786_s15 = smov (!%p1921_p10), %s2646_s28 }
 0x1bf   : > { %s2787_s20 = smov (!%p1921_p10), %s2397_s12  ;;  %s2661_s6 = smov (!%p1921_p10), 0  }
 0x1c0   : > { %s2663_s4 = smov (!%p1921_p10), 0  }
 0x1c3 LB: >> { %v1281_v24 = vld [vmem:[%s2184_s20] sm:$0xf]  ;;  %v1283_v25 = vld [vmem:[%s2184_s20 + $0x4] sm:$0xf]  ;;  %v1285_v26 = vld [vmem:[%s2184_s20 + $0x8] sm:$0xf]  ;;  %s2192_s4 = sphi %s2663_s4, %s1275_s4   ;;  %s2188_s6 = sphi %s2661_s6, %s2790_s6   ;;  %s2184_s20 = sphi %s2787_s20, %s2789_s20   ;;  %s2180_s15 = sphi %s2786_s15, %s2788_s15  }
 0x1c4   : >> { %1282 = vst [vmem:[%s2180_s15] sm:$0xf] %v1281_v24  ;;  %v1287_v27 = vld [vmem:[%s2184_s20 + $0xc] sm:$0xf]  ;;  %v1289_v28 = vld [vmem:[%s2184_s20 + $0x10] sm:$0xf]  ;;  %s1345_s5 = sadd.s32 1, %s2188_s6 }
 0x1c5   : >> { %1284 = vst [vmem:[%s2180_s15 + $0x4] sm:$0xf] %v1283_v25  ;;  %v1291_v29 = vld [vmem:[%s2184_s20 + $0x14] sm:$0xf]  ;;  %v1293_v30 = vld [vmem:[%s2184_s20 + $0x18] sm:$0xf]  ;;  %p1346_p11 = scmp.ge.s32.totalorder %s1345_s5, %s2652_s30 }
 0x1c6   : >> { %1286 = vst [vmem:[%s2180_s15 + $0x8] sm:$0xf] %v1285_v26  ;;  %v1295_v31 = vld [vmem:[%s2184_s20 + $0x1c] sm:$0xf]  ;;  %v1297_v32 = vld [vmem:[%s2184_s20 + $0x20] sm:$0xf] }
 0x1c7   : >> { %1288 = vst [vmem:[%s2180_s15 + $0xc] sm:$0xf] %v1287_v27  ;;  %v1299_v33 = vld [vmem:[%s2184_s20 + $0x24] sm:$0xf]  ;;  %v1301_v34 = vld [vmem:[%s2184_s20 + $0x28] sm:$0xf] }
 0x1c8   : >> { %1290 = vst [vmem:[%s2180_s15 + $0x10] sm:$0xf] %v1289_v28  ;;  %v1303_v35 = vld [vmem:[%s2184_s20 + $0x2c] sm:$0xf]  ;;  %v1305_v36 = vld [vmem:[%s2184_s20 + $0x30] sm:$0xf] }
 0x1c9   : >> { %1292 = vst [vmem:[%s2180_s15 + $0x14] sm:$0xf] %v1291_v29  ;;  %v1307_v37 = vld [vmem:[%s2184_s20 + $0x34] sm:$0xf]  ;;  %v1309_v48 = vld [vmem:[%s2184_s20 + $0x38] sm:$0xf] }
 0x1ca   : >> { %1294 = vst [vmem:[%s2180_s15 + $0x18] sm:$0xf] %v1293_v30  ;;  %v1311_v38 = vld [vmem:[%s2184_s20 + $0x3c] sm:$0xf]  ;;  %v1313_v39 = vld [vmem:[%s2184_s20 + $0x40] sm:$0xf] }
 0x1cb   : >> { %1296 = vst [vmem:[%s2180_s15 + $0x1c] sm:$0xf] %v1295_v31  ;;  %v1315_v40 = vld [vmem:[%s2184_s20 + $0x44] sm:$0xf]  ;;  %s2797_s5 = smov (%p1346_p11, %s1345_s5), 0  ;;  %s1275_s4 = sadd.s32 1, %s2192_s4  }
 0x1cc   : >> { %1298 = vst [vmem:[%s2180_s15 + $0x20] sm:$0xf] %v1297_v32  ;;  %v1317_v41 = vld [vmem:[%s2184_s20 + $0x48] sm:$0xf]  ;;  %v1319_v42 = vld [vmem:[%s2184_s20 + $0x4c] sm:$0xf]  ;;  %p1274_p12 = scmp.ge.s32.totalorder %s1275_s4, %s2652_s30  ;;  %s2790_s6 = smov %s2797_s5 }
 0x1cd   : >> { %1300 = vst [vmem:[%s2180_s15 + $0x24] sm:$0xf] %v1299_v33  ;;  %s1922_s7 = sshll.u32 %s2797_s5, 7  ;;  %v1321_v43 = vld [vmem:[%s2184_s20 + $0x50] sm:$0xf] }
 0x1ce   : >> { %1302 = vst [vmem:[%s2180_s15 + $0x28] sm:$0xf] %v1301_v34  ;;  %s2722_s8 = scalar_lea.vmem %s2397_s12, %s1922_s7 [#allocation2]   ;;  %s1351_s9 = scalar_lea.vmem %s2646_s28, %s1922_s7   ;;  %v1323_v44 = vld [vmem:[%s2184_s20 + $0x54] sm:$0xf]  ;;  %v1325_v45 = vld [vmem:[%s2184_s20 + $0x58] sm:$0xf] }
 0x1cf   : >> { %1304 = vst [vmem:[%s2180_s15 + $0x2c] sm:$0xf] %v1303_v35  ;;  %v1327_v46 = vld [vmem:[%s2184_s20 + $0x5c] sm:$0xf]  ;;  %v1329_v47 = vld [vmem:[%s2184_s20 + $0x60] sm:$0xf] }
 0x1d0   : >> { %1306 = vst [vmem:[%s2180_s15 + $0x30] sm:$0xf] %v1305_v36  ;;  %v1331_v49 = vld [vmem:[%s2184_s20 + $0x64] sm:$0xf]  ;;  %v1333_v50 = vld [vmem:[%s2184_s20 + $0x68] sm:$0xf] }
 0x1d1   : >> { %1308 = vst [vmem:[%s2180_s15 + $0x34] sm:$0xf] %v1307_v37  ;;  %v1335_v51 = vld [vmem:[%s2184_s20 + $0x6c] sm:$0xf]  ;;  %v1337_v52 = vld [vmem:[%s2184_s20 + $0x70] sm:$0xf] }
 0x1d2   : >> { %1310 = vst [vmem:[%s2180_s15 + $0x38] sm:$0xf] %v1309_v48  ;;  %v1339_v53 = vld [vmem:[%s2184_s20 + $0x74] sm:$0xf]  ;;  %v1341_v54 = vld [vmem:[%s2184_s20 + $0x78] sm:$0xf] }
 0x1d3   : >> { %1312 = vst [vmem:[%s2180_s15 + $0x3c] sm:$0xf] %v1311_v38  ;;  %v1343_v55 = vld [vmem:[%s2184_s20 + $0x7c] sm:$0xf]  ;;  %s2789_s20 = smov %s2722_s8 }
 0x1d4   : >> { %1314 = vst [vmem:[%s2180_s15 + $0x40] sm:$0xf] %v1313_v39 }
 0x1d5   : >> { %1316 = vst [vmem:[%s2180_s15 + $0x44] sm:$0xf] %v1315_v40 }
 0x1d6   : >> { %1318 = vst [vmem:[%s2180_s15 + $0x48] sm:$0xf] %v1317_v41 }
 0x1d7   : >> { %1320 = vst [vmem:[%s2180_s15 + $0x4c] sm:$0xf] %v1319_v42 }
 0x1d8   : >> { %1322 = vst [vmem:[%s2180_s15 + $0x50] sm:$0xf] %v1321_v43 }
 0x1d9   : >> { %1324 = vst [vmem:[%s2180_s15 + $0x54] sm:$0xf] %v1323_v44 }
 0x1da   : >> { %1326 = vst [vmem:[%s2180_s15 + $0x58] sm:$0xf] %v1325_v45 }
 0x1db   : >> { %1328 = vst [vmem:[%s2180_s15 + $0x5c] sm:$0xf] %v1327_v46 }
 0x1dc   : >> { %1330 = vst [vmem:[%s2180_s15 + $0x60] sm:$0xf] %v1329_v47 }
 0x1dd   : >> { %1332 = vst [vmem:[%s2180_s15 + $0x64] sm:$0xf] %v1331_v49 }
 0x1de   : >> { %1334 = vst [vmem:[%s2180_s15 + $0x68] sm:$0xf] %v1333_v50 }
 0x1df   : >> { %1336 = vst [vmem:[%s2180_s15 + $0x6c] sm:$0xf] %v1335_v51  ;;  %1277 = sbr.rel (!%p1274_p12) target bundleno = 451 (0x1c3), region = 118 }
 0x1e0   : >> { %1338 = vst [vmem:[%s2180_s15 + $0x70] sm:$0xf] %v1337_v52 }
 0x1e1   : >> { %1340 = vst [vmem:[%s2180_s15 + $0x74] sm:$0xf] %v1339_v53 }
 0x1e2   : >> { %1342 = vst [vmem:[%s2180_s15 + $0x78] sm:$0xf] %v1341_v54 }
 0x1e3   : >> { %1344 = vst [vmem:[%s2180_s15 + $0x7c] sm:$0xf] %v1343_v55  ;;  %s2788_s15 = smov %s1351_s9 }
 0x1e4 PF: > { %s2763_s10 = sand.u32 31, %s2795_s24   ;;  %s2014_s11 = sshll.u32 %s2652_s30, 7 }
 0x1e5   : > { %s1356_s14 = scalar_lea.vmem %s2397_s12, %s2014_s11 [#allocation2]   ;;  %s1358_s17 = scalar_lea.vmem %s2646_s28, %s2014_s11  }
 0x1e6   : > { %p1927_p13 = scmp.le.s32.totalorder %s2763_s10, 0 }
 0x1e7   : > { %s2194_s18 = smov (!%p1927_p13), %s1358_s17   ;;  %s2198_s21 = smov (!%p1927_p13), %s1356_s14  }
 0x1e8   : > { %1557 = sbr.rel (%p1927_p13) target bundleno = 501 (0x1f5), region = 123  ;;  %s2202_s22 = smov (!%p1927_p13), 0  }
 0x1e9   : > { %s2206_s23 = smov (!%p1927_p13), 0  }
 0x1ed LB: >> { %v1368_v56 = vld [vmem:[%s2200_s21] sm:$0xf]  ;;  %s1370_s24 = sadd.s32 1, %s2204_s22  ;;  %s1362_s23 = sadd.s32 1, %s2208_s23   ;;  %s2208_s23 = sphi %s2206_s23, %s1362_s23   ;;  %s2204_s22 = sphi %s2202_s22, %s2203_s22   ;;  %s2200_s21 = sphi %s2198_s21, %s1375_s21   ;;  %s2196_s18 = sphi %s2194_s18, %s1376_s18  }
 0x1ee   : >> { %1369 = vst [vmem:[%s2196_s18] sm:$0xf] %v1368_v56  ;;  %p1371_p0 = scmp.ge.s32.totalorder %s1370_s24, %s2763_s10  ;;  %p1361_p1 = scmp.ge.s32.totalorder %s1362_s23, %s2763_s10 }
 0x1f0   : >> { %s2799_s24 = smov (%p1371_p0, %s1370_s24), 0  ;;  %1364 = sbr.rel (!%p1361_p1) target bundleno = 493 (0x1ed), region = 129 }
 0x1f1   : >> { %s1928_s12 = sshll.u32 %s2799_s24, 2  ;;  %s2203_s22 = smov %s2799_s24  }
 0x1f2   : >> { %s1375_s21 = scalar_lea.vmem %s1356_s14, %s1928_s12 [#allocation2]   ;;  %s1376_s18 = scalar_lea.vmem %s1358_s17, %s1928_s12  }
 0x1f5 PF: > { %p10_p2 = scmp.ge.s32.totalorder %s2245_s16, 4   ;;  %s2791_s12 = smov %s2172_s13 }
 0x1f6   : > { %s2792_s13 = smov %s2253_s19  ;;  %s2793_s14 = smov %s2245_s16 }
 0x1f7   :  { %12 = sbr.rel (!%p10_p2) target bundleno = 2 (0x2), region = 140 }

// kernel: dueling_dqn_forward.5
= control target key start
LH: loop header
LB: loop body
LE: loop exit
PB: predicated region body
PF: predicated region fallthrough
CT: control target
= control target key end

     0   :  { %vm824_vm0 = vcmask 519168   ;;  %vm845_vm1 = vcmask 516096   ;;  %s1683_s1 = inlined_call_operand.vmem [shape: bf16[512,64], index: 1, kind: input, shape index: {}]   ;;  %s1684_s2 = inlined_call_operand.vmem [shape: f32[1,64], index: 2, kind: input, shape index: {}]   ;;  %s1685_s0 = inlined_call_operand.vmem [shape: bf16[162,512], index: 0, kind: input, shape index: {}]   ;;  %s1686_s3 = inlined_call_operand.vmem [shape: bf16[162,64], index: 3, kind: output, shape index: {}]  }
   0x1   :  { %v1186_v0 = vld [vmem:[%s1683_s1 + $0x38] sm:$0xff]  ;;  %v1185_v4 = vld [vmem:[%s1683_s1 + $0x30] sm:$0xff]  ;;  %v1184_v8 = vld [vmem:[%s1683_s1 + $0x28] sm:$0xff] }
   0x2   :  { %v1194_v1 = vld [vmem:[%s1683_s1 + $0x78] sm:$0xff]  ;;  %530 = vmatpush.bf16.msra.mxu0 %v1186_v0  ;;  %v1193_v5 = vld [vmem:[%s1683_s1 + $0x70] sm:$0xff]  ;;  %v1192_v9 = vld [vmem:[%s1683_s1 + $0x68] sm:$0xff] }
   0x3   :  { %v1202_v2 = vld [vmem:[%s1683_s1 + $0xb8] sm:$0xff]  ;;  %593 = vmatpush.bf16.msra.mxu1 %v1194_v1  ;;  %v1201_v6 = vld [vmem:[%s1683_s1 + $0xb0] sm:$0xff]  ;;  %v1200_v10 = vld [vmem:[%s1683_s1 + $0xa8] sm:$0xff] }
   0x4   :  { %v1210_v3 = vld [vmem:[%s1683_s1 + $0xf8] sm:$0xff]  ;;  %656 = vmatpush.bf16.msra.mxu2 %v1202_v2  ;;  %v1209_v7 = vld [vmem:[%s1683_s1 + $0xf0] sm:$0xff]  ;;  %v1208_v11 = vld [vmem:[%s1683_s1 + $0xe8] sm:$0xff] }
   0x5   :  { %719 = vmatpush.bf16.msra.mxu3 %v1210_v3  ;;  %v1183_v12 = vld [vmem:[%s1683_s1 + $0x20] sm:$0xff]  ;;  %v1182_v16 = vld [vmem:[%s1683_s1 + $0x18] sm:$0xff]  ;;  %v1181_v20 = vld [vmem:[%s1683_s1 + $0x10] sm:$0xff] }
   0x6   :  { %531 = vmatpush.bf16.msra.mxu0 %v1185_v4  ;;  %v1191_v13 = vld [vmem:[%s1683_s1 + $0x60] sm:$0xff]  ;;  %v1190_v17 = vld [vmem:[%s1683_s1 + $0x58] sm:$0xff]  ;;  %v1189_v21 = vld [vmem:[%s1683_s1 + $0x50] sm:$0xff] }
   0x7   :  { %594 = vmatpush.bf16.msra.mxu1 %v1193_v5  ;;  %v1199_v14 = vld [vmem:[%s1683_s1 + $0xa0] sm:$0xff]  ;;  %v1198_v18 = vld [vmem:[%s1683_s1 + $0x98] sm:$0xff]  ;;  %v1197_v22 = vld [vmem:[%s1683_s1 + $0x90] sm:$0xff] }
   0x8   :  { %657 = vmatpush.bf16.msra.mxu2 %v1201_v6  ;;  %v1207_v15 = vld [vmem:[%s1683_s1 + $0xe0] sm:$0xff]  ;;  %v1206_v19 = vld [vmem:[%s1683_s1 + $0xd8] sm:$0xff]  ;;  %v1205_v23 = vld [vmem:[%s1683_s1 + $0xd0] sm:$0xff] }
   0x9   :  { %720 = vmatpush.bf16.msra.mxu3 %v1209_v7  ;;  %v1180_v24 = vld [vmem:[%s1683_s1 + $0x8] sm:$0xff]  ;;  %v1179_v28 = vld [vmem:[%s1683_s1] sm:$0xff]  ;;  %v1141_v33 = vld [vmem:[%s1685_s0 + $0xc] sm:$0xf0] }
   0xa   :  { %532 = vmatpush.bf16.msra.mxu0 %v1184_v8  ;;  %v1188_v25 = vld [vmem:[%s1683_s1 + $0x48] sm:$0xff]  ;;  %v1187_v29 = vld [vmem:[%s1683_s1 + $0x40] sm:$0xff]  ;;  %v855_v35 = vld [vmem:[%s1685_s0 + $0x10] sm:$0xf0] }
   0xb   :  { %595 = vmatpush.bf16.msra.mxu1 %v1192_v9  ;;  %v1196_v26 = vld [vmem:[%s1683_s1 + $0x88] sm:$0xff]  ;;  %v1195_v30 = vld [vmem:[%s1683_s1 + $0x80] sm:$0xff]  ;;  %v1142_v37 = vld [vmem:[%s1685_s0 + $0x14] sm:$0xf0] }
   0xc   :  { %658 = vmatpush.bf16.msra.mxu2 %v1200_v10  ;;  %v1204_v27 = vld [vmem:[%s1683_s1 + $0xc8] sm:$0xff]  ;;  %v1203_v31 = vld [vmem:[%s1683_s1 + $0xc0] sm:$0xff]  ;;  %v863_v39 = vld [vmem:[%s1685_s0 + $0x18] sm:$0xf0] }
   0xd   :  { %721 = vmatpush.bf16.msra.mxu3 %v1208_v11  ;;  %v853_v32 = vld [vmem:[%s1685_s0] sm:$0xf]  ;;  %v1139_v34 = vld [vmem:[%s1685_s0 + $0x4] sm:$0xf]  ;;  %v861_v36 = vld [vmem:[%s1685_s0 + $0x8] sm:$0xf] }
   0xe   :  { %533 = vmatpush.bf16.msra.mxu0 %v1183_v12  ;;  %v1140_v38 = vld [vmem:[%s1685_s0 + $0xc] sm:$0xf]  ;;  %v854_v40 = vor.u32 %v1141_v33, %v853_v32  ;;  %v858_v41 = vor.u32 %v1139_v34, %v855_v35  ;;  %v862_v42 = vor.u32 %v1142_v37, %v861_v36  ;;  %v869_v44 = vld [vmem:[%s1685_s0 + $0x20] sm:$0xf]  ;;  %v1145_v45 = vld [vmem:[%s1685_s0 + $0x2c] sm:$0xf0] }
   0xf   :  { %596 = vmatpush.bf16.msra.mxu1 %v1191_v13  ;;  %v866_v43 = vor.u32 %v1140_v38, %v863_v39  ;;  %v1143_v46 = vld [vmem:[%s1685_s0 + $0x24] sm:$0xf]  ;;  %v871_v47 = vld [vmem:[%s1685_s0 + $0x30] sm:$0xf0]  ;;  %v877_v48 = vld [vmem:[%s1685_s0 + $0x28] sm:$0xf]  ;;  %v870_v52 = vor.u32 %v1145_v45, %v869_v44 }
  0x10   :  { %659 = vmatpush.bf16.msra.mxu2 %v1199_v14  ;;  %v1146_v49 = vld [vmem:[%s1685_s0 + $0x34] sm:$0xf0]  ;;  %v1144_v50 = vld [vmem:[%s1685_s0 + $0x2c] sm:$0xf]  ;;  %v879_v51 = vld [vmem:[%s1685_s0 + $0x38] sm:$0xf0]  ;;  %v874_v53 = vor.u32 %v1143_v46, %v871_v47 }
  0x11   :  { %722 = vmatpush.bf16.msra.mxu3 %v1207_v15  ;;  %v878_v54 = vor.u32 %v1146_v49, %v877_v48  ;;  %v882_v55 = vor.u32 %v1144_v50, %v879_v51  ;;  %v885_v56 = vld [vmem:[%s1685_s0 + $0x40] sm:$0xf]  ;;  %v1149_v57 = vld [vmem:[%s1685_s0 + $0x4c] sm:$0xf0]  ;;  %v1147_v58 = vld [vmem:[%s1685_s0 + $0x44] sm:$0xf] }
  0x12   :  { %534 = vmatpush.bf16.msra.mxu0 %v1182_v16  ;;  %v887_v59 = vld [vmem:[%s1685_s0 + $0x50] sm:$0xf0]  ;;  %v893_v60 = vld [vmem:[%s1685_s0 + $0x48] sm:$0xf]  ;;  %v1150_v61 = vld [vmem:[%s1685_s0 + $0x54] sm:$0xf0]  ;;  %v886_v0 = vor.u32 %v1149_v57, %v885_v56 }
  0x13   :  { %597 = vmatpush.bf16.msra.mxu1 %v1190_v17  ;;  %v1148_v62 = vld [vmem:[%s1685_s0 + $0x4c] sm:$0xf]  ;;  %v895_v63 = vld [vmem:[%s1685_s0 + $0x58] sm:$0xf0]  ;;  %v890_v1 = vor.u32 %v1147_v58, %v887_v59  ;;  %v894_v2 = vor.u32 %v1150_v61, %v893_v60  ;;  %v901_v4 = vld [vmem:[%s1685_s0 + $0x60] sm:$0xf] }
  0x14   :  { %660 = vmatpush.bf16.msra.mxu2 %v1198_v18  ;;  %v898_v3 = vor.u32 %v1148_v62, %v895_v63  ;;  %v1153_v5 = vld [vmem:[%s1685_s0 + $0x6c] sm:$0xf0]  ;;  %v1151_v6 = vld [vmem:[%s1685_s0 + $0x64] sm:$0xf]  ;;  %v903_v7 = vld [vmem:[%s1685_s0 + $0x70] sm:$0xf0] }
  0x15   :  { %723 = vmatpush.bf16.msra.mxu3 %v1206_v19  ;;  %v909_v8 = vld [vmem:[%s1685_s0 + $0x68] sm:$0xf]  ;;  %v1154_v9 = vld [vmem:[%s1685_s0 + $0x74] sm:$0xf0]  ;;  %v1152_v10 = vld [vmem:[%s1685_s0 + $0x6c] sm:$0xf]  ;;  %v902_v12 = vor.u32 %v1153_v5, %v901_v4  ;;  %v906_v13 = vor.u32 %v1151_v6, %v903_v7 }
  0x16   :  { %535 = vmatpush.bf16.msra.mxu0 %v1181_v20  ;;  %v911_v11 = vld [vmem:[%s1685_s0 + $0x78] sm:$0xf0]  ;;  %v910_v14 = vor.u32 %v1154_v9, %v909_v8  ;;  %v917_v16 = vld [vmem:[%s1685_s0 + $0x80] sm:$0xf]  ;;  %v1157_v17 = vld [vmem:[%s1685_s0 + $0x8c] sm:$0xf0] }
  0x17   :  { %598 = vmatpush.bf16.msra.mxu1 %v1189_v21  ;;  %v914_v15 = vor.u32 %v1152_v10, %v911_v11  ;;  %v1155_v18 = vld [vmem:[%s1685_s0 + $0x84] sm:$0xf]  ;;  %v919_v19 = vld [vmem:[%s1685_s0 + $0x90] sm:$0xf0]  ;;  %v925_v20 = vld [vmem:[%s1685_s0 + $0x88] sm:$0xf] }
  0x18   :  { %661 = vmatpush.bf16.msra.mxu2 %v1197_v22  ;;  %v1158_v21 = vld [vmem:[%s1685_s0 + $0x94] sm:$0xf0]  ;;  %v1156_v22 = vld [vmem:[%s1685_s0 + $0x8c] sm:$0xf]  ;;  %v941_v32 = vld [vmem:[%s1685_s0 + $0xa8] sm:$0xf] }
  0x19   :  { %724 = vmatpush.bf16.msra.mxu3 %v1205_v23  ;;  %v927_v23 = vld [vmem:[%s1685_s0 + $0x98] sm:$0xf0]  ;;  %v1162_v33 = vld [vmem:[%s1685_s0 + $0xb4] sm:$0xf0]  ;;  %v1160_v34 = vld [vmem:[%s1685_s0 + $0xac] sm:$0xf] }
  0x1a   :  { %536 = vmatpush.bf16.msra.mxu0 %v1180_v24  ;;  %v918_v24 = vor.u32 %v1157_v17, %v917_v16  ;;  %v943_v35 = vld [vmem:[%s1685_s0 + $0xb8] sm:$0xf0]  ;;  %v942_v38 = vor.u32 %v1162_v33, %v941_v32  ;;  %v957_v44 = vld [vmem:[%s1685_s0 + $0xc8] sm:$0xf]  ;;  %v1166_v45 = vld [vmem:[%s1685_s0 + $0xd4] sm:$0xf0] }
  0x1b   :  { %599 = vmatpush.bf16.msra.mxu1 %v1188_v25  ;;  %v922_v25 = vor.u32 %v1155_v18, %v919_v19  ;;  %v946_v39 = vor.u32 %v1160_v34, %v943_v35  ;;  %v1164_v46 = vld [vmem:[%s1685_s0 + $0xcc] sm:$0xf]  ;;  %v959_v47 = vld [vmem:[%s1685_s0 + $0xd8] sm:$0xf0]  ;;  %v958_v50 = vor.u32 %v1166_v45, %v957_v44  ;;  %v973_v56 = vld [vmem:[%s1685_s0 + $0xe8] sm:$0xf] }
  0x1c   :  { %662 = vmatpush.bf16.msra.mxu2 %v1196_v26  ;;  %v926_v26 = vor.u32 %v1158_v21, %v925_v20  ;;  %v962_v51 = vor.u32 %v1164_v46, %v959_v47  ;;  %v1170_v57 = vld [vmem:[%s1685_s0 + $0xf4] sm:$0xf0]  ;;  %v1168_v58 = vld [vmem:[%s1685_s0 + $0xec] sm:$0xf]  ;;  %v975_v59 = vld [vmem:[%s1685_s0 + $0xf8] sm:$0xf0] }
  0x1d   :  { %725 = vmatpush.bf16.msra.mxu3 %v1204_v27  ;;  %v930_v27 = vor.u32 %v1156_v22, %v927_v23  ;;  %v974_v62 = vor.u32 %v1170_v57, %v973_v56  ;;  %v978_v63 = vor.u32 %v1168_v58, %v975_v59  ;;  %v983_v4 = vld [vmem:[%s1685_s0 + $0x110] sm:$0xf0]  ;;  %v989_v5 = vld [vmem:[%s1685_s0 + $0x108] sm:$0xf]  ;;  %v1174_v6 = vld [vmem:[%s1685_s0 + $0x114] sm:$0xf0] }
  0x1e   :  { %537 = vmatpush.bf16.msra.mxu0 %v1179_v28  ;;  %v933_v28 = vld [vmem:[%s1685_s0 + $0xa0] sm:$0xf]  ;;  %v1172_v7 = vld [vmem:[%s1685_s0 + $0x10c] sm:$0xf]  ;;  %v991_v8 = vld [vmem:[%s1685_s0 + $0x118] sm:$0xf0] }
  0x1f   :  { %600 = vmatpush.bf16.msra.mxu1 %v1187_v29  ;;  %v1161_v29 = vld [vmem:[%s1685_s0 + $0xac] sm:$0xf0]  ;;  %v1007_v32 = vld [vmem:[%s1685_s0 + $0x138] sm:$0xf0] }
  0x20   :  { %663 = vmatpush.bf16.msra.mxu2 %v1195_v30  ;;  %v1159_v30 = vld [vmem:[%s1685_s0 + $0xa4] sm:$0xf]  ;;  %v934_v36 = vor.u32 %v1161_v29, %v933_v28  ;;  %v999_v28 = vld [vmem:[%s1685_s0 + $0x130] sm:$0xf0]  ;;  %v1005_v29 = vld [vmem:[%s1685_s0 + $0x128] sm:$0xf] }
  0x21   :  { %726 = vmatpush.bf16.msra.mxu3 %v1203_v31  ;;  %538 = vmatmul.bf16.vlgmr.msra.gmra.mxu0 %v854_v40  ;;  %v935_v31 = vld [vmem:[%s1685_s0 + $0xb0] sm:$0xf0]  ;;  %v949_v40 = vld [vmem:[%s1685_s0 + $0xc0] sm:$0xf] }
  0x22   :  { %601 = vmatmul.bf16.vlgmr.msra.gmra.mxu1 %v858_v41  ;;  %v938_v37 = vor.u32 %v1159_v30, %v935_v31  ;;  %v1165_v41 = vld [vmem:[%s1685_s0 + $0xcc] sm:$0xf0]  ;;  %v1178_v30 = vld [vmem:[%s1685_s0 + $0x134] sm:$0xf0]  ;;  %v1176_v31 = vld [vmem:[%s1685_s0 + $0x12c] sm:$0xf] }
  0x23   :  { %664 = vmatmul.bf16.vlgmr.msra.gmra.mxu2 %v862_v42  ;;  %v1163_v42 = vld [vmem:[%s1685_s0 + $0xc4] sm:$0xf]  ;;  %v950_v48 = vor.u32 %v1165_v41, %v949_v40 }
  0x24   :  { %727 = vmatmul.bf16.vlgmr.msra.gmra.mxu3 %v866_v43  ;;  %v951_v43 = vld [vmem:[%s1685_s0 + $0xd0] sm:$0xf0] }
  0x25   :  { %v954_v49 = vor.u32 %v1163_v42, %v951_v43  ;;  %v1006_v42 = vor.u32 %v1178_v30, %v1005_v29  ;;  %v1010_v43 = vor.u32 %v1176_v31, %v1007_v32 }
  0x31   :  { %543 = vmatmul.bf16.gmra.mxu0 %v870_v52  ;;  %v965_v52 = vld [vmem:[%s1685_s0 + $0xe0] sm:$0xf] }
  0x32   :  { %606 = vmatmul.bf16.gmra.mxu1 %v874_v53  ;;  %v1169_v53 = vld [vmem:[%s1685_s0 + $0xec] sm:$0xf0] }
  0x33   :  { %669 = vmatmul.bf16.gmra.mxu2 %v878_v54  ;;  %v1167_v54 = vld [vmem:[%s1685_s0 + $0xe4] sm:$0xf]  ;;  %v966_v60 = vor.u32 %v1169_v53, %v965_v52 }
  0x34   :  { %732 = vmatmul.bf16.gmra.mxu3 %v882_v55  ;;  %v967_v55 = vld [vmem:[%s1685_s0 + $0xf0] sm:$0xf0] }
  0x35   :  { %v970_v61 = vor.u32 %v1167_v54, %v967_v55  ;;  %v54_v54 = vld [vmem:[%s1685_s0 + $0x140] sm:$0x11]  ;;  %v55_v55 = vld [vmem:[%s1685_s0 + $0x148] sm:$0x11] }
  0x36   :  { %v246_v58 = vunpack.c.l.b16 %v54_v54  ;;  %v247_v59 = vunpack.c.h.b16 %v54_v54 }
  0x41   :  { %548 = vmatmul.bf16.gmra.mxu0 %v886_v0  ;;  %v1523_v0 = vld [vmem:[%s1684_s2] ss:$0 sm:$0xff] }
  0x42   :  { %611 = vmatmul.bf16.gmra.mxu1 %v890_v1  ;;  %v981_v1 = vld [vmem:[%s1685_s0 + $0x100] sm:$0xf] }
  0x43   :  { %674 = vmatmul.bf16.gmra.mxu2 %v894_v2  ;;  %v1173_v2 = vld [vmem:[%s1685_s0 + $0x10c] sm:$0xf0] }
  0x44   :  { %737 = vmatmul.bf16.gmra.mxu3 %v898_v3  ;;  %v1171_v3 = vld [vmem:[%s1685_s0 + $0x104] sm:$0xf]  ;;  %v982_v9 = vor.u32 %v1173_v2, %v981_v1 }
  0x45   :  { %v986_v10 = vor.u32 %v1171_v3, %v983_v4  ;;  %v290_v4 = vpack.c.b16 %v246_v58, %v246_v58 }
  0x51   :  { %553 = vmatmul.bf16.gmra.mxu0 %v902_v12 }
  0x52   :  { %616 = vmatmul.bf16.gmra.mxu1 %v906_v13  ;;  %v990_v13 = vor.u32 %v1174_v6, %v989_v5  ;;  %v291_v5 = vpack.c.b16 %v247_v59, %v247_v59 }
  0x53   :  { %679 = vmatmul.bf16.gmra.mxu2 %v910_v14  ;;  %v994_v14 = vor.u32 %v1172_v7, %v991_v8 }
  0x54   :  { %742 = vmatmul.bf16.gmra.mxu3 %v914_v15 }
  0x61   :  { %558 = vmatmul.bf16.gmra.mxu0 %v918_v24  ;;  %v997_v24 = vld [vmem:[%s1685_s0 + $0x120] sm:$0xf] }
  0x62   :  { %621 = vmatmul.bf16.gmra.mxu1 %v922_v25  ;;  %v1177_v25 = vld [vmem:[%s1685_s0 + $0x12c] sm:$0xf0] }
  0x63   :  { %684 = vmatmul.bf16.gmra.mxu2 %v926_v26  ;;  %v1175_v26 = vld [vmem:[%s1685_s0 + $0x124] sm:$0xf] }
  0x64   :  { %747 = vmatmul.bf16.gmra.mxu3 %v930_v27 }
  0x71   :  { %563 = vmatmul.bf16.gmra.mxu0 %v934_v36 }
  0x72   :  { %626 = vmatmul.bf16.gmra.mxu1 %v938_v37  ;;  %v998_v37 = vor.u32 %v1177_v25, %v997_v24 }
  0x73   :  { %689 = vmatmul.bf16.gmra.mxu2 %v942_v38  ;;  %v1002_v38 = vor.u32 %v1175_v26, %v999_v28 }
  0x74   :  { %752 = vmatmul.bf16.gmra.mxu3 %v946_v39 }
  0x81   :  { %568 = vmatmul.bf16.gmra.mxu0 %v950_v48 }
  0x82   :  { %631 = vmatmul.bf16.gmra.mxu1 %v954_v49 }
  0x83   :  { %694 = vmatmul.bf16.gmra.mxu2 %v958_v50 }
  0x84   :  { %757 = vmatmul.bf16.gmra.mxu3 %v962_v51 }
  0x91   :  { %573 = vmatmul.bf16.gmra.mxu0 %v966_v60 }
  0x92   :  { %636 = vmatmul.bf16.gmra.mxu1 %v970_v61  ;;  %v248_v61 = vunpack.c.l.b16 %v55_v55 }
  0x93   :  { %699 = vmatmul.bf16.gmra.mxu2 %v974_v62  ;;  %v249_v62 = vunpack.c.h.b16 %v55_v55 }
  0x94   :  { %762 = vmatmul.bf16.gmra.mxu3 %v978_v63 }
  0x9e   :  { %v539_v11 = vpop.f32.mrf.mxu0 }
  0x9f   :  { %v602_v12 = vpop.f32.mrf.mxu1  ;;  %v540_v15 = vadd.f32 %v1523_v0, %v539_v11 }
  0xa1   :  { %578 = vmatmul.bf16.gmra.mxu0 %v982_v9  ;;  %v603_v16 = vadd.f32 %v602_v12, %v540_v15  ;;  %v292_v9 = vpack.c.b16 %v248_v61, %v248_v61 }
  0xa2   :  { %641 = vmatmul.bf16.gmra.mxu1 %v986_v10  ;;  %v293_v10 = vpack.c.b16 %v249_v62, %v249_v62 }
  0xa3   :  { %704 = vmatmul.bf16.gmra.mxu2 %v990_v13 }
  0xa4   :  { %767 = vmatmul.bf16.gmra.mxu3 %v994_v14 }
  0xa6   :  { %v665_v17 = vpop.f32.mrf.mxu2  ;;  %v541_v20 = vpop.f32.mrf.mxu0 }
  0xa7   :  { %v728_v18 = vpop.f32.mrf.mxu3  ;;  %v666_v19 = vadd.f32 %v665_v17, %v603_v16  ;;  %v604_v21 = vpop.f32.mrf.mxu1  ;;  %v542_v23 = vadd.f32 %v1523_v0, %v541_v20 }
  0xa9   :  { %v729_v22 = vadd.f32 %v728_v18, %v666_v19  ;;  %v605_v34 = vadd.f32 %v604_v21, %v542_v23 }
  0xab   :  { %v782_v27 = vmax.f32 %v729_v22, 0.0 }
  0xad   :  { %v803_v33 = vpack.c.bf16 %v782_v27, %v782_v27 }
  0xae   :  { %v667_v35 = vpop.f32.mrf.mxu2  ;;  %v544_v40 = vpop.f32.mrf.mxu0 }
  0xaf   :  { %v730_v36 = vpop.f32.mrf.mxu3  ;;  %825 = vst.msk [vmem:[%s1686_s3] sm:$0xf] %vm824_vm0, %v803_v33  ;;  %v668_v39 = vadd.f32 %v667_v35, %v605_v34  ;;  %v607_v41 = vpop.f32.mrf.mxu1  ;;  %v545_v44 = vadd.f32 %v1523_v0, %v544_v40 }
  0xb1   :  { %v731_v45 = vadd.f32 %v730_v36, %v668_v39  ;;  %583 = vmatmul.bf16.gmra.mxu0 %v998_v37  ;;  %v608_v47 = vadd.f32 %v607_v41, %v545_v44 }
  0xb2   :  { %646 = vmatmul.bf16.gmra.mxu1 %v1002_v38 }
  0xb3   :  { %v783_v46 = vmax.f32 %v731_v45, 0.0  ;;  %709 = vmatmul.bf16.gmra.mxu2 %v1006_v42 }
  0xb4   :  { %772 = vmatmul.bf16.gmra.mxu3 %v1010_v43 }
  0xb5   :  { %v804_v48 = vpack.c.bf16 %v783_v46, %v783_v46 }
  0xb6   :  { %v670_v49 = vpop.f32.mrf.mxu2  ;;  %v546_v52 = vpop.f32.mrf.mxu0 }
  0xb7   :  { %v733_v50 = vpop.f32.mrf.mxu3  ;;  %826 = vst.msk [vmem:[%s1686_s3 + $0x4] sm:$0xf] %vm824_vm0, %v804_v48  ;;  %v671_v51 = vadd.f32 %v670_v49, %v608_v47  ;;  %v609_v53 = vpop.f32.mrf.mxu1  ;;  %v547_v57 = vadd.f32 %v1523_v0, %v546_v52 }
  0xb9   :  { %v734_v56 = vadd.f32 %v733_v50, %v671_v51  ;;  %v610_v1 = vadd.f32 %v609_v53, %v547_v57 }
  0xbb   :  { %v784_v60 = vmax.f32 %v734_v56, 0.0 }
  0xbd   :  { %v805_v63 = vpack.c.bf16 %v784_v60, %v784_v60 }
  0xbe   :  { %v672_v2 = vpop.f32.mrf.mxu2  ;;  %v549_v7 = vpop.f32.mrf.mxu0 }
  0xbf   :  { %v735_v3 = vpop.f32.mrf.mxu3  ;;  %827 = vst.msk [vmem:[%s1686_s3 + $0x8] sm:$0xf] %vm824_vm0, %v805_v63  ;;  %v673_v6 = vadd.f32 %v672_v2, %v610_v1  ;;  %v612_v8 = vpop.f32.mrf.mxu1  ;;  %v550_v11 = vadd.f32 %v1523_v0, %v549_v7 }
  0xc1   :  { %v736_v12 = vadd.f32 %v735_v3, %v673_v6  ;;  %588 = vmatmul.bf16.gmra.mxu0 %v290_v4  ;;  %v613_v14 = vadd.f32 %v612_v8, %v550_v11 }
  0xc2   :  { %651 = vmatmul.bf16.gmra.mxu1 %v291_v5 }
  0xc3   :  { %v785_v13 = vmax.f32 %v736_v12, 0.0  ;;  %714 = vmatmul.bf16.gmra.mxu2 %v292_v9 }
  0xc4   :  { %777 = vmatmul.bf16.gmra.mxu3 %v293_v10 }
  0xc5   :  { %v806_v15 = vpack.c.bf16 %v785_v13, %v785_v13 }
  0xc6   :  { %v675_v16 = vpop.f32.mrf.mxu2  ;;  %v551_v19 = vpop.f32.mrf.mxu0 }
  0xc7   :  { %v738_v17 = vpop.f32.mrf.mxu3  ;;  %828 = vst.msk [vmem:[%s1686_s3 + $0xc] sm:$0xf] %vm824_vm0, %v806_v15  ;;  %v676_v18 = vadd.f32 %v675_v16, %v613_v14  ;;  %v614_v20 = vpop.f32.mrf.mxu1  ;;  %v552_v22 = vadd.f32 %v1523_v0, %v551_v19 }
  0xc9   :  { %v739_v21 = vadd.f32 %v738_v17, %v676_v18  ;;  %v615_v25 = vadd.f32 %v614_v20, %v552_v22 }
  0xcb   :  { %v786_v23 = vmax.f32 %v739_v21, 0.0 }
  0xcd   :  { %v807_v24 = vpack.c.bf16 %v786_v23, %v786_v23 }
  0xce   :  { %v677_v26 = vpop.f32.mrf.mxu2  ;;  %v554_v29 = vpop.f32.mrf.mxu0 }
  0xcf   :  { %v740_v27 = vpop.f32.mrf.mxu3  ;;  %829 = vst.msk [vmem:[%s1686_s3 + $0x10] sm:$0xf] %vm824_vm0, %v807_v24  ;;  %v678_v28 = vadd.f32 %v677_v26, %v615_v25  ;;  %v617_v30 = vpop.f32.mrf.mxu1  ;;  %v555_v31 = vadd.f32 %v1523_v0, %v554_v29 }
  0xd1   :  { %v741_v32 = vadd.f32 %v740_v27, %v678_v28  ;;  %v618_v34 = vadd.f32 %v617_v30, %v555_v31 }
  0xd3   :  { %v787_v33 = vmax.f32 %v741_v32, 0.0 }
  0xd5   :  { %v808_v35 = vpack.c.bf16 %v787_v33, %v787_v33 }
  0xd6   :  { %v680_v36 = vpop.f32.mrf.mxu2  ;;  %v556_v39 = vpop.f32.mrf.mxu0 }
  0xd7   :  { %v743_v37 = vpop.f32.mrf.mxu3  ;;  %830 = vst.msk [vmem:[%s1686_s3 + $0x14] sm:$0xf] %vm824_vm0, %v808_v35  ;;  %v681_v38 = vadd.f32 %v680_v36, %v618_v34  ;;  %v619_v40 = vpop.f32.mrf.mxu1  ;;  %v557_v42 = vadd.f32 %v1523_v0, %v556_v39 }
  0xd9   :  { %v744_v41 = vadd.f32 %v743_v37, %v681_v38  ;;  %v620_v45 = vadd.f32 %v619_v40, %v557_v42 }
  0xdb   :  { %v788_v43 = vmax.f32 %v744_v41, 0.0 }
  0xdd   :  { %v809_v44 = vpack.c.bf16 %v788_v43, %v788_v43 }
  0xde   :  { %v682_v46 = vpop.f32.mrf.mxu2  ;;  %v559_v49 = vpop.f32.mrf.mxu0 }
  0xdf   :  { %v745_v47 = vpop.f32.mrf.mxu3  ;;  %831 = vst.msk [vmem:[%s1686_s3 + $0x18] sm:$0xf] %vm824_vm0, %v809_v44  ;;  %v683_v48 = vadd.f32 %v682_v46, %v620_v45  ;;  %v622_v50 = vpop.f32.mrf.mxu1  ;;  %v560_v51 = vadd.f32 %v1523_v0, %v559_v49 }
  0xe1   :  { %v746_v52 = vadd.f32 %v745_v47, %v683_v48  ;;  %v623_v54 = vadd.f32 %v622_v50, %v560_v51 }
  0xe3   :  { %v789_v53 = vmax.f32 %v746_v52, 0.0 }
  0xe5   :  { %v810_v55 = vpack.c.bf16 %v789_v53, %v789_v53 }
  0xe6   :  { %v685_v56 = vpop.f32.mrf.mxu2  ;;  %v561_v59 = vpop.f32.mrf.mxu0 }
  0xe7   :  { %v748_v57 = vpop.f32.mrf.mxu3  ;;  %832 = vst.msk [vmem:[%s1686_s3 + $0x1c] sm:$0xf] %vm824_vm0, %v810_v55  ;;  %v686_v58 = vadd.f32 %v685_v56, %v623_v54  ;;  %v624_v60 = vpop.f32.mrf.mxu1  ;;  %v562_v62 = vadd.f32 %v1523_v0, %v561_v59 }
  0xe9   :  { %v749_v61 = vadd.f32 %v748_v57, %v686_v58  ;;  %v625_v2 = vadd.f32 %v624_v60, %v562_v62 }
  0xeb   :  { %v790_v63 = vmax.f32 %v749_v61, 0.0 }
  0xed   :  { %v811_v1 = vpack.c.bf16 %v790_v63, %v790_v63 }
  0xee   :  { %v687_v3 = vpop.f32.mrf.mxu2  ;;  %v564_v6 = vpop.f32.mrf.mxu0 }
  0xef   :  { %v750_v4 = vpop.f32.mrf.mxu3  ;;  %833 = vst.msk [vmem:[%s1686_s3 + $0x20] sm:$0xf] %vm824_vm0, %v811_v1  ;;  %v688_v5 = vadd.f32 %v687_v3, %v625_v2  ;;  %v627_v7 = vpop.f32.mrf.mxu1  ;;  %v565_v8 = vadd.f32 %v1523_v0, %v564_v6 }
  0xf1   :  { %v751_v9 = vadd.f32 %v750_v4, %v688_v5  ;;  %v628_v11 = vadd.f32 %v627_v7, %v565_v8 }
  0xf3   :  { %v791_v10 = vmax.f32 %v751_v9, 0.0 }
  0xf5   :  { %v812_v12 = vpack.c.bf16 %v791_v10, %v791_v10 }
  0xf6   :  { %v690_v13 = vpop.f32.mrf.mxu2  ;;  %v566_v16 = vpop.f32.mrf.mxu0 }
  0xf7   :  { %v753_v14 = vpop.f32.mrf.mxu3  ;;  %834 = vst.msk [vmem:[%s1686_s3 + $0x24] sm:$0xf] %vm824_vm0, %v812_v12  ;;  %v691_v15 = vadd.f32 %v690_v13, %v628_v11  ;;  %v629_v17 = vpop.f32.mrf.mxu1  ;;  %v567_v19 = vadd.f32 %v1523_v0, %v566_v16 }
  0xf9   :  { %v754_v18 = vadd.f32 %v753_v14, %v691_v15  ;;  %v630_v22 = vadd.f32 %v629_v17, %v567_v19 }
  0xfb   :  { %v792_v20 = vmax.f32 %v754_v18, 0.0 }
  0xfd   :  { %v813_v21 = vpack.c.bf16 %v792_v20, %v792_v20 }
  0xfe   :  { %v692_v23 = vpop.f32.mrf.mxu2  ;;  %v569_v26 = vpop.f32.mrf.mxu0 }
  0xff   :  { %v755_v24 = vpop.f32.mrf.mxu3  ;;  %835 = vst.msk [vmem:[%s1686_s3 + $0x28] sm:$0xf] %vm824_vm0, %v813_v21  ;;  %v693_v25 = vadd.f32 %v692_v23, %v630_v22  ;;  %v632_v27 = vpop.f32.mrf.mxu1  ;;  %v570_v28 = vadd.f32 %v1523_v0, %v569_v26 }
 0x101   :  { %v756_v29 = vadd.f32 %v755_v24, %v693_v25  ;;  %v633_v31 = vadd.f32 %v632_v27, %v570_v28 }
 0x103   :  { %v793_v30 = vmax.f32 %v756_v29, 0.0 }
 0x105   :  { %v814_v32 = vpack.c.bf16 %v793_v30, %v793_v30 }
 0x106   :  { %v695_v33 = vpop.f32.mrf.mxu2  ;;  %v571_v36 = vpop.f32.mrf.mxu0 }
 0x107   :  { %v758_v34 = vpop.f32.mrf.mxu3  ;;  %836 = vst.msk [vmem:[%s1686_s3 + $0x2c] sm:$0xf] %vm824_vm0, %v814_v32  ;;  %v696_v35 = vadd.f32 %v695_v33, %v633_v31  ;;  %v634_v37 = vpop.f32.mrf.mxu1  ;;  %v572_v39 = vadd.f32 %v1523_v0, %v571_v36 }
 0x109   :  { %v759_v38 = vadd.f32 %v758_v34, %v696_v35  ;;  %v635_v42 = vadd.f32 %v634_v37, %v572_v39 }
 0x10b   :  { %v794_v40 = vmax.f32 %v759_v38, 0.0 }
 0x10d   :  { %v815_v41 = vpack.c.bf16 %v794_v40, %v794_v40 }
 0x10e   :  { %v697_v43 = vpop.f32.mrf.mxu2  ;;  %v574_v46 = vpop.f32.mrf.mxu0 }
 0x10f   :  { %v760_v44 = vpop.f32.mrf.mxu3  ;;  %837 = vst.msk [vmem:[%s1686_s3 + $0x30] sm:$0xf] %vm824_vm0, %v815_v41  ;;  %v698_v45 = vadd.f32 %v697_v43, %v635_v42  ;;  %v637_v47 = vpop.f32.mrf.mxu1  ;;  %v575_v48 = vadd.f32 %v1523_v0, %v574_v46 }
 0x111   :  { %v761_v49 = vadd.f32 %v760_v44, %v698_v45  ;;  %v638_v51 = vadd.f32 %v637_v47, %v575_v48 }
 0x113   :  { %v795_v50 = vmax.f32 %v761_v49, 0.0 }
 0x115   :  { %v816_v52 = vpack.c.bf16 %v795_v50, %v795_v50 }
 0x116   :  { %v700_v53 = vpop.f32.mrf.mxu2  ;;  %v576_v56 = vpop.f32.mrf.mxu0 }
 0x117   :  { %v763_v54 = vpop.f32.mrf.mxu3  ;;  %838 = vst.msk [vmem:[%s1686_s3 + $0x34] sm:$0xf] %vm824_vm0, %v816_v52  ;;  %v701_v55 = vadd.f32 %v700_v53, %v638_v51  ;;  %v639_v57 = vpop.f32.mrf.mxu1  ;;  %v577_v59 = vadd.f32 %v1523_v0, %v576_v56 }
 0x119   :  { %v764_v58 = vadd.f32 %v763_v54, %v701_v55  ;;  %v640_v62 = vadd.f32 %v639_v57, %v577_v59 }
 0x11b   :  { %v796_v60 = vmax.f32 %v764_v58, 0.0 }
 0x11d   :  { %v817_v61 = vpack.c.bf16 %v796_v60, %v796_v60 }
 0x11e   :  { %v702_v63 = vpop.f32.mrf.mxu2  ;;  %v579_v3 = vpop.f32.mrf.mxu0 }
 0x11f   :  { %v765_v1 = vpop.f32.mrf.mxu3  ;;  %839 = vst.msk [vmem:[%s1686_s3 + $0x38] sm:$0xf] %vm824_vm0, %v817_v61  ;;  %v703_v2 = vadd.f32 %v702_v63, %v640_v62  ;;  %v642_v4 = vpop.f32.mrf.mxu1  ;;  %v580_v5 = vadd.f32 %v1523_v0, %v579_v3 }
 0x121   :  { %v766_v6 = vadd.f32 %v765_v1, %v703_v2  ;;  %v643_v8 = vadd.f32 %v642_v4, %v580_v5 }
 0x123   :  { %v797_v7 = vmax.f32 %v766_v6, 0.0 }
 0x125   :  { %v818_v9 = vpack.c.bf16 %v797_v7, %v797_v7 }
 0x126   :  { %v705_v10 = vpop.f32.mrf.mxu2  ;;  %v581_v13 = vpop.f32.mrf.mxu0 }
 0x127   :  { %v768_v11 = vpop.f32.mrf.mxu3  ;;  %840 = vst.msk [vmem:[%s1686_s3 + $0x3c] sm:$0xf] %vm824_vm0, %v818_v9  ;;  %v706_v12 = vadd.f32 %v705_v10, %v643_v8  ;;  %v644_v14 = vpop.f32.mrf.mxu1  ;;  %v582_v16 = vadd.f32 %v1523_v0, %v581_v13 }
 0x129   :  { %v769_v15 = vadd.f32 %v768_v11, %v706_v12  ;;  %v645_v19 = vadd.f32 %v644_v14, %v582_v16 }
 0x12b   :  { %v798_v17 = vmax.f32 %v769_v15, 0.0 }
 0x12d   :  { %v819_v18 = vpack.c.bf16 %v798_v17, %v798_v17 }
 0x12e   :  { %v707_v20 = vpop.f32.mrf.mxu2  ;;  %v584_v23 = vpop.f32.mrf.mxu0 }
 0x12f   :  { %v770_v21 = vpop.f32.mrf.mxu3  ;;  %841 = vst.msk [vmem:[%s1686_s3 + $0x40] sm:$0xf] %vm824_vm0, %v819_v18  ;;  %v708_v22 = vadd.f32 %v707_v20, %v645_v19  ;;  %v647_v24 = vpop.f32.mrf.mxu1  ;;  %v585_v25 = vadd.f32 %v1523_v0, %v584_v23 }
 0x131   :  { %v771_v26 = vadd.f32 %v770_v21, %v708_v22  ;;  %v648_v28 = vadd.f32 %v647_v24, %v585_v25 }
 0x133   :  { %v799_v27 = vmax.f32 %v771_v26, 0.0 }
 0x135   :  { %v820_v29 = vpack.c.bf16 %v799_v27, %v799_v27 }
 0x136   :  { %v710_v30 = vpop.f32.mrf.mxu2  ;;  %v586_v33 = vpop.f32.mrf.mxu0 }
 0x137   :  { %v773_v31 = vpop.f32.mrf.mxu3  ;;  %842 = vst.msk [vmem:[%s1686_s3 + $0x44] sm:$0xf] %vm824_vm0, %v820_v29  ;;  %v711_v32 = vadd.f32 %v710_v30, %v648_v28  ;;  %v649_v34 = vpop.f32.mrf.mxu1  ;;  %v587_v36 = vadd.f32 %v1523_v0, %v586_v33 }
 0x139   :  { %v774_v35 = vadd.f32 %v773_v31, %v711_v32  ;;  %v650_v39 = vadd.f32 %v649_v34, %v587_v36 }
 0x13b   :  { %v800_v37 = vmax.f32 %v774_v35, 0.0 }
 0x13d   :  { %v821_v38 = vpack.c.bf16 %v800_v37, %v800_v37 }
 0x13e   :  { %v712_v40 = vpop.f32.mrf.mxu2  ;;  %v589_v43 = vpop.f32.mrf.mxu0 }
 0x13f   :  { %v775_v41 = vpop.f32.mrf.mxu3  ;;  %843 = vst.msk [vmem:[%s1686_s3 + $0x48] sm:$0xf] %vm824_vm0, %v821_v38  ;;  %v713_v42 = vadd.f32 %v712_v40, %v650_v39  ;;  %v652_v44 = vpop.f32.mrf.mxu1  ;;  %v590_v45 = vadd.f32 %v1523_v0, %v589_v43 }
 0x141   :  { %v776_v46 = vadd.f32 %v775_v41, %v713_v42  ;;  %v653_v48 = vadd.f32 %v652_v44, %v590_v45 }
 0x143   :  { %v801_v47 = vmax.f32 %v776_v46, 0.0 }
 0x145   :  { %v822_v49 = vpack.c.bf16 %v801_v47, %v801_v47 }
 0x146   :  { %v715_v50 = vpop.f32.mrf.mxu2  ;;  %v591_v53 = vpop.f32.mrf.mxu0 }
 0x147   :  { %v778_v51 = vpop.f32.mrf.mxu3  ;;  %844 = vst.msk [vmem:[%s1686_s3 + $0x4c] sm:$0xf] %vm824_vm0, %v822_v49  ;;  %v716_v52 = vadd.f32 %v715_v50, %v653_v48  ;;  %v654_v54 = vpop.f32.mrf.mxu1 }
 0x149   :  { %v779_v55 = vadd.f32 %v778_v51, %v716_v52 }
 0x14b   :  { %v802_v56 = vmax.f32 %v779_v55, 0.0 }
 0x14d   :  { %v823_v57 = vpack.c.bf16 %v802_v56, %v802_v56 }
 0x14e   :  { %v717_v58 = vpop.f32.mrf.mxu2 }
 0x14f   :  { %v780_v0 = vpop.f32.mrf.mxu3  ;;  %846 = vst.msk [vmem:[%s1686_s3 + $0x50] sm:$0x1] %vm845_vm1, %v823_v57 }

// kernel: dueling_dqn_forward.6
= control target key start
LH: loop header
LB: loop body
LE: loop exit
PB: predicated region body
PF: predicated region fallthrough
CT: control target
= control target key end

     0   :  { %vm513_vm0 = vcmask 523264   ;;  %vm776_vm1 = vcmask 519168   ;;  %vm789_vm2 = vcmask 516096   ;;  %s1581_s1 = inlined_call_operand.vmem [shape: bf16[576,64], index: 1, kind: input, shape index: {}]   ;;  %s1582_s2 = inlined_call_operand.vmem [shape: f32[1,64], index: 2, kind: input, shape index: {}]   ;;  %s1583_s0 = inlined_call_operand.vmem [shape: bf16[98,576], index: 0, kind: input, shape index: {}]   ;;  %s1584_s3 = inlined_call_operand.vmem [shape: bf16[98,64], index: 3, kind: output, shape index: {}]  }
   0x1   :  { %v1103_v0 = vld [vmem:[%s1581_s1 + $0x38] sm:$0xff]  ;;  %v1102_v1 = vld [vmem:[%s1581_s1 + $0x30] sm:$0xff]  ;;  %v1101_v2 = vld [vmem:[%s1581_s1 + $0x28] sm:$0xff] }
   0x2   :  { %1132 = vmatpush.bf16.msra.mxu1 %v1103_v0  ;;  %1133 = vmatpush.bf16.msra.mxu2 %v1103_v0  ;;  %v1100_v3 = vld [vmem:[%s1581_s1 + $0x20] sm:$0xff]  ;;  %v1099_v4 = vld [vmem:[%s1581_s1 + $0x18] sm:$0xff]  ;;  %v1098_v5 = vld [vmem:[%s1581_s1 + $0x10] sm:$0xff] }
   0x3   :  { %1134 = vmatpush.bf16.msra.mxu3 %v1103_v0  ;;  %535 = vmatpush.bf16.msra.mxu0 %v1103_v0  ;;  %v1097_v6 = vld [vmem:[%s1581_s1 + $0x8] sm:$0xff]  ;;  %v1201_v7 = vld [vmem:[%s1583_s0 + $0xf0] sm:$0x11]  ;;  %v1096_v8 = vld [vmem:[%s1581_s1] sm:$0xff] }
   0x4   :  { %v837_v9 = vld [vmem:[%s1583_s0 + $0x50] sm:$0xf]  ;;  %v1078_v10 = vld [vmem:[%s1583_s0 + $0x60] sm:$0xf0]  ;;  %v877_v11 = vld [vmem:[%s1583_s0 + $0xa0] sm:$0xf]  ;;  %v229_v15 = vunpack.c.l.b16 %v1201_v7 }
   0x5   :  { %v1088_v12 = vld [vmem:[%s1583_s0 + $0xb0] sm:$0xf0]  ;;  %v797_v13 = vld [vmem:[%s1583_s0] sm:$0xf]  ;;  %v1127_v16 = vld [vmem:[%s1581_s1 + $0xf8] sm:$0xff]  ;;  %v838_v18 = vor.u32 %v1078_v10, %v837_v9 }
   0x6   :  { %1135 = vmatpush.bf16.msra.mxu1 %v1102_v1  ;;  %1136 = vmatpush.bf16.msra.mxu2 %v1102_v1  ;;  %v1068_v14 = vld [vmem:[%s1583_s0 + $0x10] sm:$0xf0]  ;;  %v1119_v17 = vld [vmem:[%s1581_s1 + $0xb8] sm:$0xff]  ;;  %v878_v19 = vor.u32 %v1088_v12, %v877_v11  ;;  %v264_v23 = vpack.c.b16 %v229_v15, %v229_v15  ;;  %v1125_v28 = vld [vmem:[%s1581_s1 + $0xe8] sm:$0xff] }
   0x7   :  { %1137 = vmatpush.bf16.msra.mxu3 %v1102_v1  ;;  %536 = vmatpush.bf16.msra.mxu0 %v1102_v1  ;;  %v798_v20 = vor.u32 %v1068_v14, %v797_v13  ;;  %v1111_v21 = vld [vmem:[%s1581_s1 + $0x78] sm:$0xff]  ;;  %v1126_v24 = vld [vmem:[%s1581_s1 + $0xf0] sm:$0xff]  ;;  %v1117_v29 = vld [vmem:[%s1581_s1 + $0xa8] sm:$0xff] }
   0x8   :  { %v1131_v22 = vld [vmem:[%s1581_s1 + $0x118] sm:$0xff]  ;;  %v1118_v25 = vld [vmem:[%s1581_s1 + $0xb0] sm:$0xff]  ;;  %v1109_v30 = vld [vmem:[%s1581_s1 + $0x68] sm:$0xff] }
   0x9   :  { %v1110_v26 = vld [vmem:[%s1581_s1 + $0x70] sm:$0xff]  ;;  %v1129_v31 = vld [vmem:[%s1581_s1 + $0x108] sm:$0xff]  ;;  %v1124_v32 = vld [vmem:[%s1581_s1 + $0xe0] sm:$0xff] }
   0xa   :  { %1138 = vmatpush.bf16.msra.mxu1 %v1101_v2  ;;  %1139 = vmatpush.bf16.msra.mxu2 %v1101_v2  ;;  %v1130_v27 = vld [vmem:[%s1581_s1 + $0x110] sm:$0xff]  ;;  %v1116_v33 = vld [vmem:[%s1581_s1 + $0xa0] sm:$0xff]  ;;  %v857_v35 = vld [vmem:[%s1583_s0 + $0x78] sm:$0xf] }
   0xb   :  { %1140 = vmatpush.bf16.msra.mxu3 %v1101_v2  ;;  %537 = vmatpush.bf16.msra.mxu0 %v1101_v2  ;;  %v1108_v34 = vld [vmem:[%s1581_s1 + $0x60] sm:$0xff]  ;;  %v1083_v36 = vld [vmem:[%s1583_s0 + $0x88] sm:$0xf0]  ;;  %v897_v37 = vld [vmem:[%s1583_s0 + $0xc8] sm:$0xf] }
   0xc   :  { %v1093_v38 = vld [vmem:[%s1583_s0 + $0xd8] sm:$0xf0]  ;;  %v817_v39 = vld [vmem:[%s1583_s0 + $0x28] sm:$0xf]  ;;  %v1128_v41 = vld [vmem:[%s1581_s1 + $0x100] sm:$0xff]  ;;  %v858_v44 = vor.u32 %v1083_v36, %v857_v35 }
   0xd   :  { %v1073_v40 = vld [vmem:[%s1583_s0 + $0x38] sm:$0xf0]  ;;  %v898_v45 = vor.u32 %v1093_v38, %v897_v37  ;;  %v1122_v48 = vld [vmem:[%s1581_s1 + $0xd0] sm:$0xff]  ;;  %v1121_v51 = vld [vmem:[%s1581_s1 + $0xc8] sm:$0xff] }
   0xe   :  { %1141 = vmatpush.bf16.msra.mxu1 %v1100_v3  ;;  %1142 = vmatpush.bf16.msra.mxu2 %v1100_v3  ;;  %v1123_v42 = vld [vmem:[%s1581_s1 + $0xd8] sm:$0xff]  ;;  %v818_v46 = vor.u32 %v1073_v40, %v817_v39  ;;  %v1114_v49 = vld [vmem:[%s1581_s1 + $0x90] sm:$0xff]  ;;  %v1113_v52 = vld [vmem:[%s1581_s1 + $0x88] sm:$0xff] }
   0xf   :  { %1143 = vmatpush.bf16.msra.mxu3 %v1100_v3  ;;  %538 = vmatpush.bf16.msra.mxu0 %v1100_v3  ;;  %v1115_v43 = vld [vmem:[%s1581_s1 + $0x98] sm:$0xff]  ;;  %v1106_v50 = vld [vmem:[%s1581_s1 + $0x50] sm:$0xff]  ;;  %v1105_v53 = vld [vmem:[%s1581_s1 + $0x48] sm:$0xff] }
  0x10   :  { %v1107_v47 = vld [vmem:[%s1581_s1 + $0x58] sm:$0xff]  ;;  %v1120_v54 = vld [vmem:[%s1581_s1 + $0xc0] sm:$0xff]  ;;  %v1067_v56 = vld [vmem:[%s1583_s0 + $0xc] sm:$0xf] }
  0x11   :  { %v1112_v55 = vld [vmem:[%s1581_s1 + $0x80] sm:$0xff]  ;;  %v799_v60 = vld [vmem:[%s1583_s0 + $0x14] sm:$0xf0]  ;;  %v805_v61 = vld [vmem:[%s1583_s0 + $0x8] sm:$0xf] }
  0x12   :  { %1144 = vmatpush.bf16.msra.mxu1 %v1099_v4  ;;  %1145 = vmatpush.bf16.msra.mxu2 %v1099_v4  ;;  %v807_v57 = vld [vmem:[%s1583_s0 + $0x1c] sm:$0xf0]  ;;  %v1066_v59 = vld [vmem:[%s1583_s0 + $0x4] sm:$0xf]  ;;  %v1069_v62 = vld [vmem:[%s1583_s0 + $0x18] sm:$0xf0] }
  0x13   :  { %1146 = vmatpush.bf16.msra.mxu3 %v1099_v4  ;;  %539 = vmatpush.bf16.msra.mxu0 %v1099_v4  ;;  %v1104_v58 = vld [vmem:[%s1581_s1 + $0x40] sm:$0xff]  ;;  %v810_v63 = vor.u32 %v1067_v56, %v807_v57  ;;  %v813_v0 = vld [vmem:[%s1583_s0 + $0x10] sm:$0xf]  ;;  %v802_v2 = vor.u32 %v1066_v59, %v799_v60  ;;  %v806_v3 = vor.u32 %v1069_v62, %v805_v61  ;;  %v833_v13 = vld [vmem:[%s1583_s0 + $0x38] sm:$0xf] }
  0x14   :  { %v1070_v1 = vld [vmem:[%s1583_s0 + $0x20] sm:$0xf0]  ;;  %v819_v9 = vld [vmem:[%s1583_s0 + $0x3c] sm:$0xf0]  ;;  %v825_v10 = vld [vmem:[%s1583_s0 + $0x30] sm:$0xf] }
  0x15   :  { %v814_v4 = vor.u32 %v1070_v1, %v813_v0  ;;  %v1074_v11 = vld [vmem:[%s1583_s0 + $0x40] sm:$0xf0]  ;;  %v1075_v14 = vld [vmem:[%s1583_s0 + $0x48] sm:$0xf0]  ;;  %v1084_v35 = vld [vmem:[%s1583_s0 + $0x90] sm:$0xf0] }
  0x16   :  { %1147 = vmatpush.bf16.msra.mxu1 %v1098_v5  ;;  %1148 = vmatpush.bf16.msra.mxu2 %v1098_v5  ;;  %v873_v37 = vld [vmem:[%s1583_s0 + $0x88] sm:$0xf]  ;;  %v1085_v38 = vld [vmem:[%s1583_s0 + $0x98] sm:$0xf0]  ;;  %v1091_v56 = vld [vmem:[%s1583_s0 + $0xcc] sm:$0xf] }
  0x17   :  { %1149 = vmatpush.bf16.msra.mxu3 %v1098_v5  ;;  %540 = vmatpush.bf16.msra.mxu0 %v1098_v5  ;;  %v1072_v5 = vld [vmem:[%s1583_s0 + $0x34] sm:$0xf]  ;;  %v899_v57 = vld [vmem:[%s1583_s0 + $0xdc] sm:$0xf0]  ;;  %v1094_v59 = vld [vmem:[%s1583_s0 + $0xe0] sm:$0xf0] }
  0x18   :  { %v913_v61 = vld [vmem:[%s1583_s0 + $0xd8] sm:$0xf]  ;;  %v1095_v62 = vld [vmem:[%s1583_s0 + $0xe8] sm:$0xf0] }
  0x19   :  { %v914_v1 = vor.u32 %v1095_v62, %v913_v61 }
  0x1a   :  { %1150 = vmatpush.bf16.msra.mxu1 %v1097_v6  ;;  %1151 = vmatpush.bf16.msra.mxu2 %v1097_v6 }
  0x1b   :  { %1152 = vmatpush.bf16.msra.mxu3 %v1097_v6  ;;  %541 = vmatpush.bf16.msra.mxu0 %v1097_v6  ;;  %v827_v6 = vld [vmem:[%s1583_s0 + $0x44] sm:$0xf0] }
  0x1c   :  { %v830_v12 = vor.u32 %v1072_v5, %v827_v6  ;;  %v230_v5 = vunpack.c.h.b16 %v1201_v7 }
  0x1e   :  { %1153 = vmatpush.bf16.msra.mxu1 %v1096_v8  ;;  %1154 = vmatpush.bf16.msra.mxu2 %v1096_v8 }
  0x1f   :  { %1155 = vmatpush.bf16.msra.mxu3 %v1096_v8  ;;  %542 = vmatpush.bf16.msra.mxu0 %v1096_v8  ;;  %v1071_v8 = vld [vmem:[%s1583_s0 + $0x2c] sm:$0xf] }
  0x20   :  { %v822_v15 = vor.u32 %v1071_v8, %v819_v9 }
  0x21   :  { %553 = vmatmul.bf16.vlgmr.msra.gmra.mxu1 %v838_v18  ;;  %563 = vmatmul.bf16.vlgmr.msra.gmra.mxu2 %v878_v19  ;;  %v1077_v18 = vld [vmem:[%s1583_s0 + $0x5c] sm:$0xf]  ;;  %v847_v19 = vld [vmem:[%s1583_s0 + $0x6c] sm:$0xf0] }
  0x22   :  { %621 = vmatpush.bf16.msrb.mxu2 %v1119_v17  ;;  %543 = vmatmul.bf16.vlgmr.msra.gmra.mxu0 %v798_v20  ;;  %v834_v17 = vor.u32 %v1075_v14, %v833_v13  ;;  %v1076_v20 = vld [vmem:[%s1583_s0 + $0x54] sm:$0xf] }
  0x23   :  { %664 = vmatpush.bf16.msrb.mxu3 %v1127_v16  ;;  %578 = vmatpush.bf16.msrb.mxu1 %v1111_v21  ;;  %v826_v16 = vor.u32 %v1074_v11, %v825_v10  ;;  %v839_v21 = vld [vmem:[%s1583_s0 + $0x64] sm:$0xf0]  ;;  %v265_v10 = vpack.c.b16 %v230_v5, %v230_v5 }
  0x24   :  { %711 = vmatpush.bf16.msrb.mxu0 %v1131_v22  ;;  %573 = vmatmul.bf16.vlgmr.msra.gmra.mxu3 %v264_v23  ;;  %v845_v22 = vld [vmem:[%s1583_s0 + $0x58] sm:$0xf]  ;;  %v1079_v23 = vld [vmem:[%s1583_s0 + $0x68] sm:$0xf0] }
  0x26   :  { %622 = vmatpush.bf16.msrb.mxu2 %v1118_v25  ;;  %v853_v25 = vld [vmem:[%s1583_s0 + $0x60] sm:$0xf] }
  0x27   :  { %665 = vmatpush.bf16.msrb.mxu3 %v1126_v24  ;;  %579 = vmatpush.bf16.msrb.mxu1 %v1110_v26  ;;  %v850_v24 = vor.u32 %v1077_v18, %v847_v19  ;;  %v1080_v26 = vld [vmem:[%s1583_s0 + $0x70] sm:$0xf0] }
  0x28   :  { %712 = vmatpush.bf16.msrb.mxu0 %v1130_v27  ;;  %v842_v27 = vor.u32 %v1076_v20, %v839_v21 }
  0x2a   :  { %623 = vmatpush.bf16.msrb.mxu2 %v1117_v29  ;;  %v854_v29 = vor.u32 %v1080_v26, %v853_v25 }
  0x2b   :  { %666 = vmatpush.bf16.msrb.mxu3 %v1125_v28  ;;  %580 = vmatpush.bf16.msrb.mxu1 %v1109_v30  ;;  %v846_v28 = vor.u32 %v1079_v23, %v845_v22  ;;  %v1082_v30 = vld [vmem:[%s1583_s0 + $0x84] sm:$0xf] }
  0x2c   :  { %713 = vmatpush.bf16.msrb.mxu0 %v1129_v31  ;;  %v867_v31 = vld [vmem:[%s1583_s0 + $0x94] sm:$0xf0] }
  0x2d   :  { %v870_v36 = vor.u32 %v1082_v30, %v867_v31 }
  0x2e   :  { %624 = vmatpush.bf16.msrb.mxu2 %v1116_v33  ;;  %v859_v33 = vld [vmem:[%s1583_s0 + $0x8c] sm:$0xf0] }
  0x2f   :  { %667 = vmatpush.bf16.msrb.mxu3 %v1124_v32  ;;  %581 = vmatpush.bf16.msrb.mxu1 %v1108_v34  ;;  %v1081_v32 = vld [vmem:[%s1583_s0 + $0x7c] sm:$0xf]  ;;  %v865_v34 = vld [vmem:[%s1583_s0 + $0x80] sm:$0xf] }
  0x30   :  { %714 = vmatpush.bf16.msrb.mxu0 %v1128_v41  ;;  %v862_v39 = vor.u32 %v1081_v32, %v859_v33  ;;  %v866_v40 = vor.u32 %v1084_v35, %v865_v34  ;;  %v874_v41 = vor.u32 %v1085_v38, %v873_v37 }
  0x31   :  { %558 = vmatmul.bf16.gmra.mxu1 %v858_v44  ;;  %568 = vmatmul.bf16.gmra.mxu2 %v898_v45  ;;  %v1086_v44 = vld [vmem:[%s1583_s0 + $0xa4] sm:$0xf]  ;;  %v879_v45 = vld [vmem:[%s1583_s0 + $0xb4] sm:$0xf0] }
  0x32   :  { %625 = vmatpush.bf16.msrb.mxu2 %v1115_v43  ;;  %548 = vmatmul.bf16.gmra.mxu0 %v818_v46  ;;  %v887_v43 = vld [vmem:[%s1583_s0 + $0xbc] sm:$0xf0]  ;;  %v885_v46 = vld [vmem:[%s1583_s0 + $0xa8] sm:$0xf] }
  0x33   :  { %668 = vmatpush.bf16.msrb.mxu3 %v1123_v42  ;;  %582 = vmatpush.bf16.msrb.mxu1 %v1107_v47  ;;  %v1087_v42 = vld [vmem:[%s1583_s0 + $0xac] sm:$0xf]  ;;  %v1089_v47 = vld [vmem:[%s1583_s0 + $0xb8] sm:$0xf0] }
  0x36   :  { %626 = vmatpush.bf16.msrb.mxu2 %v1114_v49  ;;  %v893_v49 = vld [vmem:[%s1583_s0 + $0xb0] sm:$0xf] }
  0x37   :  { %669 = vmatpush.bf16.msrb.mxu3 %v1122_v48  ;;  %583 = vmatpush.bf16.msrb.mxu1 %v1106_v50  ;;  %v890_v48 = vor.u32 %v1087_v42, %v887_v43  ;;  %v1090_v50 = vld [vmem:[%s1583_s0 + $0xc0] sm:$0xf0] }
  0x3a   :  { %627 = vmatpush.bf16.msrb.mxu2 %v1113_v52  ;;  %v886_v52 = vor.u32 %v1089_v47, %v885_v46 }
  0x3b   :  { %670 = vmatpush.bf16.msrb.mxu3 %v1121_v51  ;;  %584 = vmatpush.bf16.msrb.mxu1 %v1105_v53  ;;  %v882_v51 = vor.u32 %v1086_v44, %v879_v45  ;;  %v894_v53 = vor.u32 %v1090_v50, %v893_v49 }
  0x3e   :  { %628 = vmatpush.bf16.msrb.mxu2 %v1112_v55  ;;  %v907_v55 = vld [vmem:[%s1583_s0 + $0xe4] sm:$0xf0] }
  0x3f   :  { %671 = vmatpush.bf16.msrb.mxu3 %v1120_v54  ;;  %585 = vmatpush.bf16.msrb.mxu1 %v1104_v58  ;;  %v1092_v54 = vld [vmem:[%s1583_s0 + $0xd4] sm:$0xf]  ;;  %v905_v58 = vld [vmem:[%s1583_s0 + $0xd0] sm:$0xf] }
  0x40   :  { %v910_v60 = vor.u32 %v1092_v54, %v907_v55  ;;  %v906_v0 = vor.u32 %v1094_v59, %v905_v58 }
  0x41   :  { %629 = vmatmul.bf16.vlgmr.msrb.gmra.mxu2 %v806_v3 }
  0x42   :  { %672 = vmatmul.bf16.vlgmr.msrb.gmra.mxu3 %v810_v63  ;;  %586 = vmatmul.bf16.vlgmr.msrb.gmra.mxu1 %v802_v2  ;;  %v902_v63 = vor.u32 %v1091_v56, %v899_v57  ;;  %v52_v2 = vld [vmem:[%s1583_s0 + $0xf8] sm:$0x11] }
  0x43   :  { %1059 = vmatmul.msk.bf16.vlgmr.msrb.gmra.mxu0 %vm513_vm0, %v814_v4  ;;  %v232_v3 = vunpack.c.h.b16 %v52_v2  ;;  %v53_v4 = vld [vmem:[%s1583_s0 + $0x100] sm:$0x1]  ;;  %v231_v6 = vunpack.c.l.b16 %v52_v2 }
  0x44   :  { %v233_v8 = vunpack.c.l.b16 %v53_v4 }
  0x45   :  { %v267_v9 = vpack.c.b16 %v232_v3, %v232_v3  ;;  %v266_v11 = vpack.c.b16 %v231_v6, %v231_v6 }
  0x46   :  { %v268_v13 = vpack.c.b16 %v233_v8, %v233_v8 }
  0x51   :  { %634 = vmatmul.bf16.gmra.mxu2 %v826_v16 }
  0x52   :  { %677 = vmatmul.bf16.gmra.mxu3 %v830_v12  ;;  %591 = vmatmul.bf16.gmra.mxu1 %v822_v15  ;;  %v1490_v15 = vld [vmem:[%s1582_s2] ss:$0 sm:$0xff] }
  0x53   :  { %1060 = vmatmul.msk.bf16.gmra.mxu0 %vm513_vm0, %v834_v17 }
  0x61   :  { %639 = vmatmul.bf16.gmra.mxu2 %v846_v28 }
  0x62   :  { %682 = vmatmul.bf16.gmra.mxu3 %v850_v24  ;;  %596 = vmatmul.bf16.gmra.mxu1 %v842_v27 }
  0x63   :  { %1061 = vmatmul.msk.bf16.gmra.mxu0 %vm513_vm0, %v854_v29 }
  0x71   :  { %644 = vmatmul.bf16.gmra.mxu2 %v866_v40 }
  0x72   :  { %687 = vmatmul.bf16.gmra.mxu3 %v870_v36  ;;  %601 = vmatmul.bf16.gmra.mxu1 %v862_v39 }
  0x73   :  { %1062 = vmatmul.msk.bf16.gmra.mxu0 %vm513_vm0, %v874_v41 }
  0x81   :  { %649 = vmatmul.bf16.gmra.mxu2 %v886_v52 }
  0x82   :  { %692 = vmatmul.bf16.gmra.mxu3 %v890_v48  ;;  %606 = vmatmul.bf16.gmra.mxu1 %v882_v51 }
  0x83   :  { %1063 = vmatmul.msk.bf16.gmra.mxu0 %vm513_vm0, %v894_v53 }
  0x91   :  { %654 = vmatmul.bf16.gmra.mxu2 %v906_v0 }
  0x92   :  { %697 = vmatmul.bf16.gmra.mxu3 %v910_v60  ;;  %611 = vmatmul.bf16.gmra.mxu1 %v902_v63 }
  0x93   :  { %1064 = vmatmul.msk.bf16.gmra.mxu0 %vm513_vm0, %v914_v1 }
  0x9e   :  { %v1484_v12 = vpop.f32.mrf.mxu1 }
  0x9f   :  { %v544_v14 = vpop.f32.mrf.mxu0 }
  0xa0   :  { %v545_v34 = vadd.f32 %v1490_v15, %v544_v14 }
  0xa1   :  { %659 = vmatmul.bf16.gmra.mxu2 %v266_v11 }
  0xa2   :  { %702 = vmatmul.bf16.gmra.mxu3 %v267_v9  ;;  %616 = vmatmul.bf16.gmra.mxu1 %v265_v10 }
  0xa3   :  { %1065 = vmatmul.msk.bf16.gmra.mxu0 %vm513_vm0, %v268_v13  ;;  %v555_v13 = vadd.f32 %v1490_v15, %v1484_v12 }
  0xa4   :  { %v564_v7 = vpop.f32.mrf.mxu2 }
  0xa5   :  { %v1493_v16 = vadd.f32 %v1490_v15, %v564_v7 }
  0xa6   :  { %v1495_v17 = vpop.f32.mrf.mxu1 }
  0xa7   :  { %v574_v18 = vpop.f32.mrf.mxu3  ;;  %v546_v19 = vpop.f32.mrf.mxu0 }
  0xa8   :  { %v1498_v20 = vadd.f32 %v1490_v15, %v574_v18  ;;  %v547_v42 = vadd.f32 %v1490_v15, %v546_v19 }
  0xac   :  { %v566_v21 = vpop.f32.mrf.mxu2 }
  0xad   :  { %v1501_v22 = vadd.f32 %v1490_v15, %v566_v21 }
  0xae   :  { %v1503_v23 = vpop.f32.mrf.mxu1 }
  0xaf   :  { %v576_v24 = vpop.f32.mrf.mxu3  ;;  %v549_v25 = vpop.f32.mrf.mxu0 }
  0xb0   :  { %v550_v53 = vadd.f32 %v1490_v15, %v549_v25 }
  0xb4   :  { %v569_v26 = vpop.f32.mrf.mxu2 }
  0xb5   :  { %v1506_v27 = vadd.f32 %v1490_v15, %v569_v26 }
  0xb6   :  { %v1508_v28 = vpop.f32.mrf.mxu1 }
  0xb7   :  { %v551_v29 = vpop.f32.mrf.mxu0 }
  0xb8   :  { %v552_v0 = vadd.f32 %v1490_v15, %v551_v29 }
  0xbc   :  { %v571_v30 = vpop.f32.mrf.mxu2 }
  0xbd   :  { %v1511_v31 = vadd.f32 %v1490_v15, %v571_v30 }
  0xbf   :  { %v587_v32 = vpop.f32.mrf.mxu1 }
  0xc0   :  { %v716_v33 = vpop.f32.mrf.mxu0  ;;  %v588_v36 = vadd.f32 %v587_v32, %v545_v34  ;;  %v557_v32 = vadd.f32 %v1490_v15, %v1495_v17 }
  0xc4   :  { %v630_v37 = vpop.f32.mrf.mxu2 }
  0xc5   :  { %v673_v35 = vpop.f32.mrf.mxu3  ;;  %v631_v38 = vadd.f32 %v630_v37, %v588_v36 }
  0xc7   :  { %v589_v39 = vpop.f32.mrf.mxu1  ;;  %v674_v40 = vadd.f32 %v673_v35, %v631_v38 }
  0xc8   :  { %v718_v41 = vpop.f32.mrf.mxu0  ;;  %v590_v46 = vadd.f32 %v589_v39, %v547_v42  ;;  %v560_v42 = vadd.f32 %v1490_v15, %v1503_v23 }
  0xc9   :  { %v717_v43 = vadd.f32 %v716_v33, %v674_v40 }
  0xcb   :  { %v750_v45 = vmax.f32 %v717_v43, 0.0 }
  0xcc   :  { %v632_v47 = vpop.f32.mrf.mxu2 }
  0xcd   :  { %v675_v44 = vpop.f32.mrf.mxu3  ;;  %v763_v48 = vpack.c.bf16 %v750_v45, %v750_v45  ;;  %v633_v49 = vadd.f32 %v632_v47, %v590_v46 }
  0xcf   :  { %v592_v50 = vpop.f32.mrf.mxu1  ;;  %777 = vst.msk [vmem:[%s1584_s3] sm:$0xf] %vm776_vm1, %v763_v48  ;;  %v676_v51 = vadd.f32 %v675_v44, %v633_v49 }
  0xd0   :  { %v721_v52 = vpop.f32.mrf.mxu0  ;;  %v593_v57 = vadd.f32 %v592_v50, %v550_v53 }
  0xd1   :  { %v719_v54 = vadd.f32 %v718_v41, %v676_v51 }
  0xd3   :  { %v751_v56 = vmax.f32 %v719_v54, 0.0 }
  0xd4   :  { %v635_v58 = vpop.f32.mrf.mxu2 }
  0xd5   :  { %v678_v55 = vpop.f32.mrf.mxu3  ;;  %v764_v59 = vpack.c.bf16 %v751_v56, %v751_v56  ;;  %v636_v60 = vadd.f32 %v635_v58, %v593_v57 }
  0xd7   :  { %v594_v61 = vpop.f32.mrf.mxu1  ;;  %778 = vst.msk [vmem:[%s1584_s3 + $0x4] sm:$0xf] %vm776_vm1, %v764_v59  ;;  %v679_v62 = vadd.f32 %v678_v55, %v636_v60 }
  0xd8   :  { %v723_v63 = vpop.f32.mrf.mxu0  ;;  %v595_v4 = vadd.f32 %v594_v61, %v552_v0 }
  0xd9   :  { %v722_v1 = vadd.f32 %v721_v52, %v679_v62  ;;  %v562_v52 = vadd.f32 %v1490_v15, %v1508_v28 }
  0xdb   :  { %v752_v3 = vmax.f32 %v722_v1, 0.0 }
  0xdc   :  { %v637_v5 = vpop.f32.mrf.mxu2 }
  0xdd   :  { %v680_v2 = vpop.f32.mrf.mxu3  ;;  %v765_v6 = vpack.c.bf16 %v752_v3, %v752_v3  ;;  %v638_v8 = vadd.f32 %v637_v5, %v595_v4 }
  0xdf   :  { %v597_v9 = vpop.f32.mrf.mxu1  ;;  %779 = vst.msk [vmem:[%s1584_s3 + $0x8] sm:$0xf] %vm776_vm1, %v765_v6  ;;  %v681_v10 = vadd.f32 %v680_v2, %v638_v8 }
  0xe0   :  { %v726_v11 = vpop.f32.mrf.mxu0  ;;  %v598_v19 = vadd.f32 %v597_v9, %v555_v13 }
  0xe1   :  { %v724_v14 = vadd.f32 %v723_v63, %v681_v10 }
  0xe3   :  { %v753_v18 = vmax.f32 %v724_v14, 0.0 }
  0xe4   :  { %v640_v21 = vpop.f32.mrf.mxu2 }
  0xe5   :  { %v683_v7 = vpop.f32.mrf.mxu3  ;;  %v766_v24 = vpack.c.bf16 %v753_v18, %v753_v18  ;;  %v641_v25 = vadd.f32 %v640_v21, %v598_v19 }
  0xe7   :  { %v599_v26 = vpop.f32.mrf.mxu1  ;;  %780 = vst.msk [vmem:[%s1584_s3 + $0xc] sm:$0xf] %vm776_vm1, %v766_v24  ;;  %v684_v29 = vadd.f32 %v683_v7, %v641_v25 }
  0xe8   :  { %v728_v30 = vpop.f32.mrf.mxu0  ;;  %v600_v35 = vadd.f32 %v599_v26, %v557_v32 }
  0xe9   :  { %v727_v33 = vadd.f32 %v726_v11, %v684_v29 }
  0xeb   :  { %v754_v34 = vmax.f32 %v727_v33, 0.0 }
  0xec   :  { %v642_v36 = vpop.f32.mrf.mxu2 }
  0xed   :  { %v685_v12 = vpop.f32.mrf.mxu3  ;;  %v767_v37 = vpack.c.bf16 %v754_v34, %v754_v34  ;;  %v643_v38 = vadd.f32 %v642_v36, %v600_v35 }
  0xef   :  { %v602_v39 = vpop.f32.mrf.mxu1  ;;  %781 = vst.msk [vmem:[%s1584_s3 + $0x10] sm:$0xf] %vm776_vm1, %v767_v37  ;;  %v686_v40 = vadd.f32 %v685_v12, %v643_v38 }
  0xf0   :  { %v731_v41 = vpop.f32.mrf.mxu0  ;;  %v603_v45 = vadd.f32 %v602_v39, %v560_v42 }
  0xf1   :  { %v729_v43 = vadd.f32 %v728_v30, %v686_v40 }
  0xf3   :  { %v755_v44 = vmax.f32 %v729_v43, 0.0 }
  0xf4   :  { %v645_v46 = vpop.f32.mrf.mxu2 }
  0xf5   :  { %v688_v17 = vpop.f32.mrf.mxu3  ;;  %v768_v47 = vpack.c.bf16 %v755_v44, %v755_v44  ;;  %v646_v48 = vadd.f32 %v645_v46, %v603_v45 }
  0xf7   :  { %v604_v49 = vpop.f32.mrf.mxu1  ;;  %782 = vst.msk [vmem:[%s1584_s3 + $0x14] sm:$0xf] %vm776_vm1, %v768_v47  ;;  %v689_v50 = vadd.f32 %v688_v17, %v646_v48 }
  0xf8   :  { %v733_v51 = vpop.f32.mrf.mxu0  ;;  %v605_v55 = vadd.f32 %v604_v49, %v562_v52 }
  0xf9   :  { %v732_v53 = vadd.f32 %v731_v41, %v689_v50 }
  0xfb   :  { %v756_v54 = vmax.f32 %v732_v53, 0.0 }
  0xfc   :  { %v647_v56 = vpop.f32.mrf.mxu2 }
  0xfd   :  { %v690_v23 = vpop.f32.mrf.mxu3  ;;  %v769_v57 = vpack.c.bf16 %v756_v54, %v756_v54  ;;  %v648_v58 = vadd.f32 %v647_v56, %v605_v55 }
  0xff   :  { %v607_v59 = vpop.f32.mrf.mxu1  ;;  %783 = vst.msk [vmem:[%s1584_s3 + $0x18] sm:$0xf] %vm776_vm1, %v769_v57  ;;  %v691_v60 = vadd.f32 %v690_v23, %v648_v58 }
 0x100   :  { %v736_v61 = vpop.f32.mrf.mxu0  ;;  %v608_v15 = vadd.f32 %v607_v59, %v1493_v16 }
 0x101   :  { %v734_v62 = vadd.f32 %v733_v51, %v691_v60 }
 0x103   :  { %v757_v0 = vmax.f32 %v734_v62, 0.0 }
 0x104   :  { %v650_v28 = vpop.f32.mrf.mxu2 }
 0x105   :  { %v693_v63 = vpop.f32.mrf.mxu3  ;;  %v770_v1 = vpack.c.bf16 %v757_v0, %v757_v0  ;;  %v651_v2 = vadd.f32 %v650_v28, %v608_v15 }
 0x107   :  { %v609_v3 = vpop.f32.mrf.mxu1  ;;  %784 = vst.msk [vmem:[%s1584_s3 + $0x1c] sm:$0xf] %vm776_vm1, %v770_v1  ;;  %v694_v4 = vadd.f32 %v693_v63, %v651_v2 }
 0x108   :  { %v738_v5 = vpop.f32.mrf.mxu0  ;;  %v610_v10 = vadd.f32 %v609_v3, %v1501_v22 }
 0x109   :  { %v737_v6 = vadd.f32 %v736_v61, %v694_v4 }
 0x10b   :  { %v758_v9 = vmax.f32 %v737_v6, 0.0 }
 0x10c   :  { %v652_v11 = vpop.f32.mrf.mxu2 }
 0x10d   :  { %v695_v8 = vpop.f32.mrf.mxu3  ;;  %v771_v13 = vpack.c.bf16 %v758_v9, %v758_v9  ;;  %v653_v14 = vadd.f32 %v652_v11, %v610_v10 }
 0x10f   :  { %v612_v16 = vpop.f32.mrf.mxu1  ;;  %785 = vst.msk [vmem:[%s1584_s3 + $0x20] sm:$0xf] %vm776_vm1, %v771_v13  ;;  %v696_v7 = vadd.f32 %v695_v8, %v653_v14 }
 0x110   :  { %v741_v18 = vpop.f32.mrf.mxu0  ;;  %v613_v25 = vadd.f32 %v612_v16, %v1506_v27 }
 0x111   :  { %v739_v19 = vadd.f32 %v738_v5, %v696_v7 }
 0x113   :  { %v759_v24 = vmax.f32 %v739_v19, 0.0 }
 0x114   :  { %v655_v26 = vpop.f32.mrf.mxu2 }
 0x115   :  { %v698_v21 = vpop.f32.mrf.mxu3  ;;  %v772_v29 = vpack.c.bf16 %v759_v24, %v759_v24  ;;  %v656_v30 = vadd.f32 %v655_v26, %v613_v25 }
 0x117   :  { %v614_v22 = vpop.f32.mrf.mxu1  ;;  %786 = vst.msk [vmem:[%s1584_s3 + $0x24] sm:$0xf] %vm776_vm1, %v772_v29  ;;  %v699_v32 = vadd.f32 %v698_v21, %v656_v30 }
 0x118   :  { %v743_v33 = vpop.f32.mrf.mxu0  ;;  %v615_v36 = vadd.f32 %v614_v22, %v1511_v31 }
 0x119   :  { %v742_v12 = vadd.f32 %v741_v18, %v699_v32 }
 0x11b   :  { %v760_v35 = vmax.f32 %v742_v12, 0.0 }
 0x11c   :  { %v657_v37 = vpop.f32.mrf.mxu2 }
 0x11d   :  { %v700_v34 = vpop.f32.mrf.mxu3  ;;  %v773_v38 = vpack.c.bf16 %v760_v35, %v760_v35  ;;  %v658_v39 = vadd.f32 %v657_v37, %v615_v36 }
 0x11f   :  { %v617_v27 = vpop.f32.mrf.mxu1  ;;  %787 = vst.msk [vmem:[%s1584_s3 + $0x28] sm:$0xf] %vm776_vm1, %v773_v38  ;;  %v701_v40 = vadd.f32 %v700_v34, %v658_v39 }
 0x120   :  { %v746_v41 = vpop.f32.mrf.mxu0  ;;  %v618_v44 = vadd.f32 %v617_v27, %v1498_v20 }
 0x121   :  { %v744_v42 = vadd.f32 %v743_v33, %v701_v40 }
 0x123   :  { %v761_v17 = vmax.f32 %v744_v42, 0.0 }
 0x124   :  { %v660_v45 = vpop.f32.mrf.mxu2 }
 0x125   :  { %v703_v43 = vpop.f32.mrf.mxu3  ;;  %v774_v46 = vpack.c.bf16 %v761_v17, %v761_v17  ;;  %v661_v47 = vadd.f32 %v660_v45, %v618_v44 }
 0x127   :  { %v619_v31 = vpop.f32.mrf.mxu1  ;;  %788 = vst.msk [vmem:[%s1584_s3 + $0x2c] sm:$0xf] %vm776_vm1, %v774_v46  ;;  %v704_v48 = vadd.f32 %v703_v43, %v661_v47 }
 0x128   :  { %v748_v49 = vpop.f32.mrf.mxu0 }
 0x129   :  { %v747_v50 = vadd.f32 %v746_v41, %v704_v48 }
 0x12b   :  { %v762_v52 = vmax.f32 %v747_v50, 0.0 }
 0x12c   :  { %v662_v53 = vpop.f32.mrf.mxu2 }
 0x12d   :  { %v705_v51 = vpop.f32.mrf.mxu3  ;;  %v775_v23 = vpack.c.bf16 %v762_v52, %v762_v52 }
 0x12f   :  { %790 = vst.msk [vmem:[%s1584_s3 + $0x30] sm:$0x1] %vm789_vm2, %v775_v23 }

// kernel: dueling_dqn_forward.7
= control target key start
LH: loop header
LB: loop body
LE: loop exit
PB: predicated region body
PF: predicated region fallthrough
CT: control target
= control target key end

     0   :  { %s3808_s0 = inlined_call_operand.vmem [shape: bf16[2,3136], index: 0, kind: input, shape index: {}]   ;;  %s3809_s1 = inlined_call_operand.vmem [shape: bf16[3136,64], index: 1, kind: input, shape index: {}]   ;;  %s3810_s2 = inlined_call_operand.vmem [shape: f32[1,64], index: 2, kind: input, shape index: {}]   ;;  %s3811_s3 = inlined_call_operand.vmem [shape: bf16[32,128], index: 3, kind: input, shape index: {}]   ;;  %s3812_s4 = inlined_call_operand.vmem [shape: f32[1,128], index: 4, kind: input, shape index: {}]   ;;  %s3813_s5 = inlined_call_operand.vmem [shape: bf16[32,128], index: 5, kind: input, shape index: {}]   ;;  %s3814_s6 = inlined_call_operand.vmem [shape: f32[1,128], index: 6, kind: input, shape index: {}]   ;;  %s3815_s7 = inlined_call_operand.hbm [shape: f32[2,128], index: 7, kind: output, shape index: {}]  }
   0x1   :  { %v2903_v0 = vld [vmem:[%s3809_s1 + $0x38] sm:$0xff]  ;;  %v2902_v4 = vld [vmem:[%s3809_s1 + $0x30] sm:$0xff]  ;;  %v2901_v8 = vld [vmem:[%s3809_s1 + $0x28] sm:$0xff] }
   0x2   :  { %v2919_v1 = vld [vmem:[%s3809_s1 + $0xb8] sm:$0xff]  ;;  %1664 = vmatpush.bf16.msra.mxu0 %v2903_v0  ;;  %v2918_v5 = vld [vmem:[%s3809_s1 + $0xb0] sm:$0xff]  ;;  %v2917_v9 = vld [vmem:[%s3809_s1 + $0xa8] sm:$0xff] }
   0x3   :  { %v2927_v2 = vld [vmem:[%s3809_s1 + $0xf8] sm:$0xff]  ;;  %1690 = vmatpush.bf16.msra.mxu2 %v2919_v1  ;;  %v2926_v6 = vld [vmem:[%s3809_s1 + $0xf0] sm:$0xff]  ;;  %v2925_v10 = vld [vmem:[%s3809_s1 + $0xe8] sm:$0xff] }
   0x4   :  { %v2911_v3 = vld [vmem:[%s3809_s1 + $0x78] sm:$0xff]  ;;  %1703 = vmatpush.bf16.msra.mxu3 %v2927_v2  ;;  %v2910_v7 = vld [vmem:[%s3809_s1 + $0x70] sm:$0xff]  ;;  %v2909_v11 = vld [vmem:[%s3809_s1 + $0x68] sm:$0xff] }
   0x5   :  { %1677 = vmatpush.bf16.msra.mxu1 %v2911_v3  ;;  %v2900_v12 = vld [vmem:[%s3809_s1 + $0x20] sm:$0xff]  ;;  %v2899_v16 = vld [vmem:[%s3809_s1 + $0x18] sm:$0xff]  ;;  %v2898_v20 = vld [vmem:[%s3809_s1 + $0x10] sm:$0xff] }
   0x6   :  { %1665 = vmatpush.bf16.msra.mxu0 %v2902_v4  ;;  %v2916_v13 = vld [vmem:[%s3809_s1 + $0xa0] sm:$0xff]  ;;  %v2915_v17 = vld [vmem:[%s3809_s1 + $0x98] sm:$0xff]  ;;  %v2914_v22 = vld [vmem:[%s3809_s1 + $0x90] sm:$0xff] }
   0x7   :  { %1691 = vmatpush.bf16.msra.mxu2 %v2918_v5  ;;  %v2924_v14 = vld [vmem:[%s3809_s1 + $0xe0] sm:$0xff]  ;;  %v2923_v18 = vld [vmem:[%s3809_s1 + $0xd8] sm:$0xff]  ;;  %v2922_v23 = vld [vmem:[%s3809_s1 + $0xd0] sm:$0xff] }
   0x8   :  { %1704 = vmatpush.bf16.msra.mxu3 %v2926_v6  ;;  %v2908_v15 = vld [vmem:[%s3809_s1 + $0x60] sm:$0xff]  ;;  %v2907_v19 = vld [vmem:[%s3809_s1 + $0x58] sm:$0xff]  ;;  %v2906_v24 = vld [vmem:[%s3809_s1 + $0x50] sm:$0xff] }
   0x9   :  { %1678 = vmatpush.bf16.msra.mxu1 %v2910_v7  ;;  %v28_v21 = vld [vmem:[%s3808_s0] sm:$0xff] }
   0xa   :  { %1666 = vmatpush.bf16.msra.mxu0 %v2901_v8  ;;  %429 = vst [vmem:[#allocation1] ss:$9 sm:$0xff] %v28_v21 }
   0xb   :  { %1692 = vmatpush.bf16.msra.mxu2 %v2917_v9 }
   0xc   :  { %1705 = vmatpush.bf16.msra.mxu3 %v2925_v10 }
   0xd   :  { %1679 = vmatpush.bf16.msra.mxu1 %v2909_v11 }
   0xe   :  { %1667 = vmatpush.bf16.msra.mxu0 %v2900_v12 }
   0xf   :  { %1693 = vmatpush.bf16.msra.mxu2 %v2916_v13 }
  0x10   :  { %1706 = vmatpush.bf16.msra.mxu3 %v2924_v14 }
  0x11   :  { %1680 = vmatpush.bf16.msra.mxu1 %v2908_v15 }
  0x12   :  { %1668 = vmatpush.bf16.msra.mxu0 %v2899_v16 }
  0x13   :  { %1694 = vmatpush.bf16.msra.mxu2 %v2915_v17 }
  0x14   :  { %1707 = vmatpush.bf16.msra.mxu3 %v2923_v18 }
  0x15   :  { %1681 = vmatpush.bf16.msra.mxu1 %v2907_v19 }
  0x16   :  { %12 = vsyncpa [#allocation3], 0  ;;  %1669 = vmatpush.bf16.msra.mxu0 %v2898_v20  ;;  %v2897_v25 = vld [vmem:[%s3809_s1 + $0x8] sm:$0xff]  ;;  %v2896_v29 = vld [vmem:[%s3809_s1] sm:$0xff]  ;;  %vm1661_vm0 = vcmask 523264   ;;  %vm2011_vm1 = vcmask 261120  }
  0x17   :  { %1695 = vmatpush.bf16.msra.mxu2 %v2914_v22  ;;  %v2913_v26 = vld [vmem:[%s3809_s1 + $0x88] sm:$0xff]  ;;  %v2912_v30 = vld [vmem:[%s3809_s1 + $0x80] sm:$0xff]  ;;  %v2935_v32 = vld [vmem:[%s3809_s1 + $0x138] sm:$0xff]  ;;  %vm2069_vm2 = vcmask 1041408   ;;  %s3128_s16 = smov [#allocation2]   ;;  %s2084_s20 = sshll.u32 %s3815_s7, 4  ;;  %s2085_s20 = int_to_ptr.hbm [resolvable:$true] %s2084_s20 }
  0x18   :  { %1708 = vmatpush.bf16.msra.mxu3 %v2922_v23  ;;  %v2921_v27 = vld [vmem:[%s3809_s1 + $0xc8] sm:$0xff]  ;;  %v2920_v31 = vld [vmem:[%s3809_s1 + $0xc0] sm:$0xff]  ;;  %v2951_v33 = vld [vmem:[%s3809_s1 + $0x1b8] sm:$0xff]  ;;  %s2082_s17 = sshll.u32 %s3128_s16, 4  ;;  %s2083_s17 = int_to_ptr.vmem [resolvable:$true] %s2082_s17 }
  0x19   :  { %1682 = vmatpush.bf16.msra.mxu1 %v2906_v24  ;;  %v2905_v28 = vld [vmem:[%s3809_s1 + $0x48] sm:$0xff]  ;;  %v2959_v34 = vld [vmem:[%s3809_s1 + $0x1f8] sm:$0xff]  ;;  %v2904_v35 = vld [vmem:[%s3809_s1 + $0x40] sm:$0xff] }
  0x1a   :  { %1670 = vmatpush.bf16.msra.mxu0 %v2897_v25  ;;  %v2943_v36 = vld [vmem:[%s3809_s1 + $0x178] sm:$0xff]  ;;  %v2934_v38 = vld [vmem:[%s3809_s1 + $0x130] sm:$0xff]  ;;  %v430_v39 = vld [vmem:[#allocation1] sm:$0xff] }
  0x1b   :  { %1696 = vmatpush.bf16.msra.mxu2 %v2913_v26  ;;  %v432_v37 = vld [vmem:[#allocation1 + $0x12] sm:$0xff]  ;;  %v433_v42 = vld [vmem:[#allocation1 + $0x1b] sm:$0xff]  ;;  %v431_v44 = vld [vmem:[#allocation1 + $0x9] sm:$0xff] }
  0x1c   :  { %1709 = vmatpush.bf16.msra.mxu3 %v2921_v27  ;;  %v2950_v40 = vld [vmem:[%s3809_s1 + $0x1b0] sm:$0xff]  ;;  %v2933_v45 = vld [vmem:[%s3809_s1 + $0x128] sm:$0xff]  ;;  %v437_v51 = vld [vmem:[#allocation1 + $0x3f] sm:$0xff] }
  0x1d   :  { %1683 = vmatpush.bf16.msra.mxu1 %v2905_v28  ;;  %v2958_v41 = vld [vmem:[%s3809_s1 + $0x1f0] sm:$0xff]  ;;  %v2949_v46 = vld [vmem:[%s3809_s1 + $0x1a8] sm:$0xff]  ;;  %v2932_v54 = vld [vmem:[%s3809_s1 + $0x120] sm:$0xff] }
  0x1e   :  { %1671 = vmatpush.bf16.msra.mxu0 %v2896_v29  ;;  %v2942_v43 = vld [vmem:[%s3809_s1 + $0x170] sm:$0xff]  ;;  %v2957_v47 = vld [vmem:[%s3809_s1 + $0x1e8] sm:$0xff]  ;;  %v2948_v55 = vld [vmem:[%s3809_s1 + $0x1a0] sm:$0xff] }
  0x1f   :  { %1697 = vmatpush.bf16.msra.mxu2 %v2912_v30  ;;  %v2941_v48 = vld [vmem:[%s3809_s1 + $0x168] sm:$0xff]  ;;  %v436_v49 = vld [vmem:[#allocation1 + $0x36] sm:$0xff]  ;;  %v2956_v56 = vld [vmem:[%s3809_s1 + $0x1e0] sm:$0xff] }
  0x20   :  { %1710 = vmatpush.bf16.msra.mxu3 %v2920_v31  ;;  %v434_v50 = vld [vmem:[#allocation1 + $0x24] sm:$0xff]  ;;  %v3307_v53 = vld [vmem:[#allocation1 + $0x2d] sm:$0xff]  ;;  %v2931_v58 = vld [vmem:[%s3809_s1 + $0x118] sm:$0xff] }
  0x21   :  { %1684 = vmatpush.bf16.msra.mxu1 %v2904_v35  ;;  %1672 = vmatmul.bf16.vlgmr.msra.gmra.mxu0 %v430_v39  ;;  %v29_v52 = vld [vmem:[%s3808_s0 + $0x8] sm:$0xff]  ;;  %v2940_v57 = vld [vmem:[%s3809_s1 + $0x160] sm:$0xff]  ;;  %v2947_v59 = vld [vmem:[%s3809_s1 + $0x198] sm:$0xff] }
  0x22   :  { %1716 = vmatpush.bf16.msrb.mxu0 %v2935_v32  ;;  %1698 = vmatmul.bf16.vlgmr.msra.gmra.mxu2 %v432_v37  ;;  %439 = vst [vmem:[#allocation1] ss:$9 sm:$0xff] %v29_v52  ;;  %v2955_v60 = vld [vmem:[%s3809_s1 + $0x1d8] sm:$0xff]  ;;  %v2930_v62 = vld [vmem:[%s3809_s1 + $0x110] sm:$0xff]  ;;  %v2929_v2 = vld [vmem:[%s3809_s1 + $0x108] sm:$0xff] }
  0x23   :  { %1742 = vmatpush.bf16.msrb.mxu2 %v2951_v33  ;;  %1711 = vmatmul.bf16.vlgmr.msra.gmra.mxu3 %v433_v42  ;;  %v2939_v61 = vld [vmem:[%s3809_s1 + $0x158] sm:$0xff]  ;;  %v2946_v63 = vld [vmem:[%s3809_s1 + $0x190] sm:$0xff]  ;;  %v2945_v3 = vld [vmem:[%s3809_s1 + $0x188] sm:$0xff] }
  0x24   :  { %1755 = vmatpush.bf16.msrb.mxu3 %v2959_v34  ;;  %1685 = vmatmul.bf16.vlgmr.msra.gmra.mxu1 %v431_v44  ;;  %v2954_v0 = vld [vmem:[%s3809_s1 + $0x1d0] sm:$0xff]  ;;  %v2953_v4 = vld [vmem:[%s3809_s1 + $0x1c8] sm:$0xff]  ;;  %v2928_v6 = vld [vmem:[%s3809_s1 + $0x100] sm:$0xff] }
  0x25   :  { %1729 = vmatpush.bf16.msrb.mxu1 %v2943_v36  ;;  %v2938_v1 = vld [vmem:[%s3809_s1 + $0x150] sm:$0xff]  ;;  %v2937_v5 = vld [vmem:[%s3809_s1 + $0x148] sm:$0xff]  ;;  %v2944_v7 = vld [vmem:[%s3809_s1 + $0x180] sm:$0xff] }
  0x26   :  { %1717 = vmatpush.bf16.msrb.mxu0 %v2934_v38  ;;  %v2952_v8 = vld [vmem:[%s3809_s1 + $0x1c0] sm:$0xff]  ;;  %v2967_v9 = vld [vmem:[%s3809_s1 + $0x238] sm:$0xff]  ;;  %v2966_v14 = vld [vmem:[%s3809_s1 + $0x230] sm:$0xff] }
  0x27   :  { %1743 = vmatpush.bf16.msrb.mxu2 %v2950_v40  ;;  %v2983_v10 = vld [vmem:[%s3809_s1 + $0x2b8] sm:$0xff]  ;;  %v2936_v12 = vld [vmem:[%s3809_s1 + $0x140] sm:$0xff]  ;;  %v2982_v15 = vld [vmem:[%s3809_s1 + $0x2b0] sm:$0xff] }
  0x28   :  { %1756 = vmatpush.bf16.msrb.mxu3 %v2958_v41  ;;  %v2991_v11 = vld [vmem:[%s3809_s1 + $0x2f8] sm:$0xff]  ;;  %v2990_v16 = vld [vmem:[%s3809_s1 + $0x2f0] sm:$0xff]  ;;  %v2965_v18 = vld [vmem:[%s3809_s1 + $0x228] sm:$0xff] }
  0x29   :  { %1730 = vmatpush.bf16.msrb.mxu1 %v2942_v43  ;;  %v2975_v13 = vld [vmem:[%s3809_s1 + $0x278] sm:$0xff]  ;;  %v2974_v17 = vld [vmem:[%s3809_s1 + $0x270] sm:$0xff]  ;;  %v2981_v19 = vld [vmem:[%s3809_s1 + $0x2a8] sm:$0xff] }
  0x2a   :  { %1718 = vmatpush.bf16.msrb.mxu0 %v2933_v45  ;;  %v2989_v20 = vld [vmem:[%s3809_s1 + $0x2e8] sm:$0xff]  ;;  %v2964_v22 = vld [vmem:[%s3809_s1 + $0x220] sm:$0xff]  ;;  %v2963_v26 = vld [vmem:[%s3809_s1 + $0x218] sm:$0xff] }
  0x2b   :  { %1744 = vmatpush.bf16.msrb.mxu2 %v2949_v46  ;;  %v2973_v21 = vld [vmem:[%s3809_s1 + $0x268] sm:$0xff]  ;;  %v2980_v23 = vld [vmem:[%s3809_s1 + $0x2a0] sm:$0xff]  ;;  %v2979_v27 = vld [vmem:[%s3809_s1 + $0x298] sm:$0xff] }
  0x2c   :  { %1757 = vmatpush.bf16.msrb.mxu3 %v2957_v47  ;;  %v2988_v24 = vld [vmem:[%s3809_s1 + $0x2e0] sm:$0xff]  ;;  %v2987_v28 = vld [vmem:[%s3809_s1 + $0x2d8] sm:$0xff]  ;;  %v2962_v30 = vld [vmem:[%s3809_s1 + $0x210] sm:$0xff] }
  0x2d   :  { %1731 = vmatpush.bf16.msrb.mxu1 %v2941_v48  ;;  %v2972_v25 = vld [vmem:[%s3809_s1 + $0x260] sm:$0xff]  ;;  %v2971_v29 = vld [vmem:[%s3809_s1 + $0x258] sm:$0xff]  ;;  %v2978_v31 = vld [vmem:[%s3809_s1 + $0x290] sm:$0xff] }
  0x2e   :  { %1719 = vmatpush.bf16.msrb.mxu0 %v2932_v54  ;;  %v2986_v32 = vld [vmem:[%s3809_s1 + $0x2d0] sm:$0xff]  ;;  %v2961_v34 = vld [vmem:[%s3809_s1 + $0x208] sm:$0xff]  ;;  %v2960_v38 = vld [vmem:[%s3809_s1 + $0x200] sm:$0xff] }
  0x2f   :  { %1745 = vmatpush.bf16.msrb.mxu2 %v2948_v55  ;;  %v2970_v33 = vld [vmem:[%s3809_s1 + $0x250] sm:$0xff]  ;;  %v2977_v35 = vld [vmem:[%s3809_s1 + $0x288] sm:$0xff]  ;;  %v2976_v39 = vld [vmem:[%s3809_s1 + $0x280] sm:$0xff] }
  0x30   :  { %1758 = vmatpush.bf16.msrb.mxu3 %v2956_v56  ;;  %v2985_v36 = vld [vmem:[%s3809_s1 + $0x2c8] sm:$0xff]  ;;  %v2984_v40 = vld [vmem:[%s3809_s1 + $0x2c0] sm:$0xff]  ;;  %v2999_v41 = vld [vmem:[%s3809_s1 + $0x338] sm:$0xff] }
  0x31   :  { %1732 = vmatpush.bf16.msrb.mxu1 %v2940_v57  ;;  %v2969_v37 = vld [vmem:[%s3809_s1 + $0x248] sm:$0xff]  ;;  %v3015_v42 = vld [vmem:[%s3809_s1 + $0x3b8] sm:$0xff]  ;;  %v2968_v44 = vld [vmem:[%s3809_s1 + $0x240] sm:$0xff] }
  0x32   :  { %1720 = vmatpush.bf16.msrb.mxu0 %v2931_v58  ;;  %v3023_v43 = vld [vmem:[%s3809_s1 + $0x3f8] sm:$0xff]  ;;  %v440_v45 = vld [vmem:[#allocation1] sm:$0xff]  ;;  %v2998_v48 = vld [vmem:[%s3809_s1 + $0x330] sm:$0xff] }
  0x33   :  { %1746 = vmatpush.bf16.msrb.mxu2 %v2947_v59  ;;  %v3007_v46 = vld [vmem:[%s3809_s1 + $0x378] sm:$0xff]  ;;  %v3022_v52 = vld [vmem:[%s3809_s1 + $0x3f0] sm:$0xff]  ;;  %v2997_v54 = vld [vmem:[%s3809_s1 + $0x328] sm:$0xff] }
  0x34   :  { %1759 = vmatpush.bf16.msrb.mxu3 %v2955_v60  ;;  %v442_v47 = vld [vmem:[#allocation1 + $0x12] sm:$0xff]  ;;  %v3013_v55 = vld [vmem:[%s3809_s1 + $0x3a8] sm:$0xff]  ;;  %v2996_v58 = vld [vmem:[%s3809_s1 + $0x320] sm:$0xff] }
  0x35   :  { %1733 = vmatpush.bf16.msrb.mxu1 %v2939_v61  ;;  %v3021_v56 = vld [vmem:[%s3809_s1 + $0x3e8] sm:$0xff]  ;;  %v3012_v59 = vld [vmem:[%s3809_s1 + $0x3a0] sm:$0xff] }
  0x36   :  { %1721 = vmatpush.bf16.msrb.mxu0 %v2930_v62  ;;  %v3005_v57 = vld [vmem:[%s3809_s1 + $0x368] sm:$0xff]  ;;  %v3020_v60 = vld [vmem:[%s3809_s1 + $0x3e0] sm:$0xff]  ;;  %v2995_v62 = vld [vmem:[%s3809_s1 + $0x318] sm:$0xff] }
  0x37   :  { %1747 = vmatpush.bf16.msrb.mxu2 %v2946_v63  ;;  %v3004_v61 = vld [vmem:[%s3809_s1 + $0x360] sm:$0xff]  ;;  %v3011_v63 = vld [vmem:[%s3809_s1 + $0x398] sm:$0xff] }
  0x38   :  { %1760 = vmatpush.bf16.msrb.mxu3 %v2954_v0  ;;  %v3019_v0 = vld [vmem:[%s3809_s1 + $0x3d8] sm:$0xff] }
  0x39   :  { %1734 = vmatpush.bf16.msrb.mxu1 %v2938_v1  ;;  %v3003_v1 = vld [vmem:[%s3809_s1 + $0x358] sm:$0xff] }
  0x3a   :  { %1722 = vmatpush.bf16.msrb.mxu0 %v2929_v2  ;;  %v2994_v2 = vld [vmem:[%s3809_s1 + $0x310] sm:$0xff] }
  0x3b   :  { %1748 = vmatpush.bf16.msrb.mxu2 %v2945_v3  ;;  %v3010_v3 = vld [vmem:[%s3809_s1 + $0x390] sm:$0xff] }
  0x3c   :  { %1761 = vmatpush.bf16.msrb.mxu3 %v2953_v4  ;;  %v3018_v4 = vld [vmem:[%s3809_s1 + $0x3d0] sm:$0xff] }
  0x3d   :  { %1735 = vmatpush.bf16.msrb.mxu1 %v2937_v5  ;;  %v3002_v5 = vld [vmem:[%s3809_s1 + $0x350] sm:$0xff] }
  0x3e   :  { %1723 = vmatpush.bf16.msrb.mxu0 %v2928_v6  ;;  %v2993_v6 = vld [vmem:[%s3809_s1 + $0x308] sm:$0xff] }
  0x3f   :  { %1749 = vmatpush.bf16.msrb.mxu2 %v2944_v7  ;;  %v3009_v7 = vld [vmem:[%s3809_s1 + $0x388] sm:$0xff] }
  0x40   :  { %1762 = vmatpush.bf16.msrb.mxu3 %v2952_v8  ;;  %v3017_v8 = vld [vmem:[%s3809_s1 + $0x3c8] sm:$0xff] }
  0x41   :  { %1736 = vmatpush.bf16.msrb.mxu1 %v2936_v12  ;;  %1724 = vmatmul.bf16.vlgmr.msrb.gmra.mxu0 %v434_v50  ;;  %v3014_v50 = vld [vmem:[%s3809_s1 + $0x3b0] sm:$0xff]  ;;  %v447_v12 = vld [vmem:[#allocation1 + $0x3f] sm:$0xff] }
  0x42   :  { %1768 = vmatpush.bf16.msra.mxu0 %v2967_v9  ;;  %1750 = vmatmul.bf16.vlgmr.msrb.gmra.mxu2 %v436_v49  ;;  %v443_v49 = vld [vmem:[#allocation1 + $0x1b] sm:$0xff]  ;;  %v444_v9 = vld [vmem:[#allocation1 + $0x24] sm:$0xff] }
  0x43   :  { %1794 = vmatpush.bf16.msra.mxu2 %v2983_v10  ;;  %1763 = vmatmul.bf16.vlgmr.msrb.gmra.mxu3 %v437_v51  ;;  %v441_v51 = vld [vmem:[#allocation1 + $0x9] sm:$0xff]  ;;  %v446_v10 = vld [vmem:[#allocation1 + $0x36] sm:$0xff] }
  0x44   :  { %1807 = vmatpush.bf16.msra.mxu3 %v2991_v11  ;;  %1737 = vmatmul.bf16.vlgmr.msrb.gmra.mxu1 %v3307_v53  ;;  %v3006_v53 = vld [vmem:[%s3809_s1 + $0x370] sm:$0xff] }
  0x45   :  { %1781 = vmatpush.bf16.msra.mxu1 %v2975_v13  ;;  %v445_v11 = vld [vmem:[#allocation1 + $0x2d] sm:$0xff] }
  0x46   :  { %1769 = vmatpush.bf16.msra.mxu0 %v2966_v14  ;;  %v30_v13 = vld [vmem:[%s3808_s0 + $0x10] sm:$0xff]  ;;  %v3001_v14 = vld [vmem:[%s3809_s1 + $0x348] sm:$0xff] }
  0x47   :  { %1795 = vmatpush.bf16.msra.mxu2 %v2982_v15  ;;  %449 = vst [vmem:[#allocation1] ss:$9 sm:$0xff] %v30_v13  ;;  %v2992_v15 = vld [vmem:[%s3809_s1 + $0x300] sm:$0xff] }
  0x48   :  { %1808 = vmatpush.bf16.msra.mxu3 %v2990_v16  ;;  %v3008_v16 = vld [vmem:[%s3809_s1 + $0x380] sm:$0xff] }
  0x49   :  { %1782 = vmatpush.bf16.msra.mxu1 %v2974_v17  ;;  %v3031_v17 = vld [vmem:[%s3809_s1 + $0x438] sm:$0xff] }
  0x4a   :  { %1770 = vmatpush.bf16.msra.mxu0 %v2965_v18  ;;  %v3016_v18 = vld [vmem:[%s3809_s1 + $0x3c0] sm:$0xff] }
  0x4b   :  { %1796 = vmatpush.bf16.msra.mxu2 %v2981_v19  ;;  %v3047_v19 = vld [vmem:[%s3809_s1 + $0x4b8] sm:$0xff] }
  0x4c   :  { %1809 = vmatpush.bf16.msra.mxu3 %v2989_v20  ;;  %v3055_v20 = vld [vmem:[%s3809_s1 + $0x4f8] sm:$0xff] }
  0x4d   :  { %1783 = vmatpush.bf16.msra.mxu1 %v2973_v21  ;;  %v3000_v21 = vld [vmem:[%s3809_s1 + $0x340] sm:$0xff] }
  0x4e   :  { %1771 = vmatpush.bf16.msra.mxu0 %v2964_v22  ;;  %v3039_v22 = vld [vmem:[%s3809_s1 + $0x478] sm:$0xff] }
  0x4f   :  { %1797 = vmatpush.bf16.msra.mxu2 %v2980_v23  ;;  %v3030_v23 = vld [vmem:[%s3809_s1 + $0x430] sm:$0xff] }
  0x50   :  { %1810 = vmatpush.bf16.msra.mxu3 %v2988_v24  ;;  %v3046_v24 = vld [vmem:[%s3809_s1 + $0x4b0] sm:$0xff] }
  0x51   :  { %1784 = vmatpush.bf16.msra.mxu1 %v2972_v25  ;;  %v3054_v25 = vld [vmem:[%s3809_s1 + $0x4f0] sm:$0xff] }
  0x52   :  { %1772 = vmatpush.bf16.msra.mxu0 %v2963_v26  ;;  %v3038_v26 = vld [vmem:[%s3809_s1 + $0x470] sm:$0xff] }
  0x53   :  { %1798 = vmatpush.bf16.msra.mxu2 %v2979_v27  ;;  %v3029_v27 = vld [vmem:[%s3809_s1 + $0x428] sm:$0xff] }
  0x54   :  { %1811 = vmatpush.bf16.msra.mxu3 %v2987_v28  ;;  %v3045_v28 = vld [vmem:[%s3809_s1 + $0x4a8] sm:$0xff] }
  0x55   :  { %1785 = vmatpush.bf16.msra.mxu1 %v2971_v29  ;;  %v3053_v29 = vld [vmem:[%s3809_s1 + $0x4e8] sm:$0xff] }
  0x56   :  { %1773 = vmatpush.bf16.msra.mxu0 %v2962_v30  ;;  %v3037_v30 = vld [vmem:[%s3809_s1 + $0x468] sm:$0xff] }
  0x57   :  { %1799 = vmatpush.bf16.msra.mxu2 %v2978_v31  ;;  %v3028_v31 = vld [vmem:[%s3809_s1 + $0x420] sm:$0xff] }
  0x58   :  { %1812 = vmatpush.bf16.msra.mxu3 %v2986_v32  ;;  %v3044_v32 = vld [vmem:[%s3809_s1 + $0x4a0] sm:$0xff] }
  0x59   :  { %1786 = vmatpush.bf16.msra.mxu1 %v2970_v33  ;;  %v3052_v33 = vld [vmem:[%s3809_s1 + $0x4e0] sm:$0xff] }
  0x5a   :  { %1774 = vmatpush.bf16.msra.mxu0 %v2961_v34  ;;  %v3036_v34 = vld [vmem:[%s3809_s1 + $0x460] sm:$0xff] }
  0x5b   :  { %1800 = vmatpush.bf16.msra.mxu2 %v2977_v35  ;;  %v3027_v35 = vld [vmem:[%s3809_s1 + $0x418] sm:$0xff] }
  0x5c   :  { %1813 = vmatpush.bf16.msra.mxu3 %v2985_v36  ;;  %v3043_v36 = vld [vmem:[%s3809_s1 + $0x498] sm:$0xff] }
  0x5d   :  { %1787 = vmatpush.bf16.msra.mxu1 %v2969_v37  ;;  %v3051_v37 = vld [vmem:[%s3809_s1 + $0x4d8] sm:$0xff] }
  0x5e   :  { %1775 = vmatpush.bf16.msra.mxu0 %v2960_v38  ;;  %v3035_v38 = vld [vmem:[%s3809_s1 + $0x458] sm:$0xff] }
  0x5f   :  { %1801 = vmatpush.bf16.msra.mxu2 %v2976_v39  ;;  %v3026_v39 = vld [vmem:[%s3809_s1 + $0x410] sm:$0xff] }
  0x60   :  { %1814 = vmatpush.bf16.msra.mxu3 %v2984_v40  ;;  %v3042_v40 = vld [vmem:[%s3809_s1 + $0x490] sm:$0xff] }
  0x61   :  { %1788 = vmatpush.bf16.msra.mxu1 %v2968_v44  ;;  %1776 = vmatmul.bf16.vlgmr.msra.gmra.mxu0 %v440_v45  ;;  %v3041_v44 = vld [vmem:[%s3809_s1 + $0x488] sm:$0xff] }
  0x62   :  { %1820 = vmatpush.bf16.msrb.mxu0 %v2999_v41  ;;  %1802 = vmatmul.bf16.vlgmr.msra.gmra.mxu2 %v442_v47  ;;  %v3050_v41 = vld [vmem:[%s3809_s1 + $0x4d0] sm:$0xff]  ;;  %v3049_v45 = vld [vmem:[%s3809_s1 + $0x4c8] sm:$0xff]  ;;  %v3024_v47 = vld [vmem:[%s3809_s1 + $0x400] sm:$0xff] }
  0x63   :  { %1846 = vmatpush.bf16.msrb.mxu2 %v3015_v42  ;;  %1815 = vmatmul.bf16.vlgmr.msra.gmra.mxu3 %v443_v49  ;;  %v3034_v42 = vld [vmem:[%s3809_s1 + $0x450] sm:$0xff]  ;;  %v3048_v49 = vld [vmem:[%s3809_s1 + $0x4c0] sm:$0xff] }
  0x64   :  { %1859 = vmatpush.bf16.msrb.mxu3 %v3023_v43  ;;  %1789 = vmatmul.bf16.vlgmr.msra.gmra.mxu1 %v441_v51  ;;  %v3025_v43 = vld [vmem:[%s3809_s1 + $0x408] sm:$0xff]  ;;  %v3079_v51 = vld [vmem:[%s3809_s1 + $0x5b8] sm:$0xff] }
  0x65   :  { %1833 = vmatpush.bf16.msrb.mxu1 %v3007_v46  ;;  %v3033_v46 = vld [vmem:[%s3809_s1 + $0x448] sm:$0xff] }
  0x66   :  { %1821 = vmatpush.bf16.msrb.mxu0 %v2998_v48  ;;  %v3040_v48 = vld [vmem:[%s3809_s1 + $0x480] sm:$0xff] }
  0x67   :  { %1847 = vmatpush.bf16.msrb.mxu2 %v3014_v50  ;;  %v3063_v50 = vld [vmem:[%s3809_s1 + $0x538] sm:$0xff] }
  0x68   :  { %1860 = vmatpush.bf16.msrb.mxu3 %v3022_v52  ;;  %v3087_v52 = vld [vmem:[%s3809_s1 + $0x5f8] sm:$0xff] }
  0x69   :  { %1834 = vmatpush.bf16.msrb.mxu1 %v3006_v53  ;;  %v3032_v53 = vld [vmem:[%s3809_s1 + $0x440] sm:$0xff] }
  0x6a   :  { %1822 = vmatpush.bf16.msrb.mxu0 %v2997_v54  ;;  %v450_v54 = vld [vmem:[#allocation1] sm:$0xff] }
  0x6b   :  { %1848 = vmatpush.bf16.msrb.mxu2 %v3013_v55  ;;  %v452_v55 = vld [vmem:[#allocation1 + $0x12] sm:$0xff] }
  0x6c   :  { %1861 = vmatpush.bf16.msrb.mxu3 %v3021_v56  ;;  %v3071_v56 = vld [vmem:[%s3809_s1 + $0x578] sm:$0xff] }
  0x6d   :  { %1835 = vmatpush.bf16.msrb.mxu1 %v3005_v57  ;;  %v453_v57 = vld [vmem:[#allocation1 + $0x1b] sm:$0xff] }
  0x6e   :  { %1823 = vmatpush.bf16.msrb.mxu0 %v2996_v58  ;;  %v3062_v58 = vld [vmem:[%s3809_s1 + $0x530] sm:$0xff] }
  0x6f   :  { %1849 = vmatpush.bf16.msrb.mxu2 %v3012_v59  ;;  %v451_v59 = vld [vmem:[#allocation1 + $0x9] sm:$0xff] }
  0x70   :  { %1862 = vmatpush.bf16.msrb.mxu3 %v3020_v60  ;;  %v3078_v60 = vld [vmem:[%s3809_s1 + $0x5b0] sm:$0xff] }
  0x71   :  { %1836 = vmatpush.bf16.msrb.mxu1 %v3004_v61  ;;  %v3086_v61 = vld [vmem:[%s3809_s1 + $0x5f0] sm:$0xff] }
  0x72   :  { %1824 = vmatpush.bf16.msrb.mxu0 %v2995_v62  ;;  %v3070_v62 = vld [vmem:[%s3809_s1 + $0x570] sm:$0xff] }
  0x73   :  { %1850 = vmatpush.bf16.msrb.mxu2 %v3011_v63  ;;  %v3061_v63 = vld [vmem:[%s3809_s1 + $0x528] sm:$0xff] }
  0x74   :  { %1863 = vmatpush.bf16.msrb.mxu3 %v3019_v0  ;;  %v3077_v0 = vld [vmem:[%s3809_s1 + $0x5a8] sm:$0xff] }
  0x75   :  { %1837 = vmatpush.bf16.msrb.mxu1 %v3003_v1  ;;  %v3085_v1 = vld [vmem:[%s3809_s1 + $0x5e8] sm:$0xff] }
  0x76   :  { %1825 = vmatpush.bf16.msrb.mxu0 %v2994_v2  ;;  %v3069_v2 = vld [vmem:[%s3809_s1 + $0x568] sm:$0xff] }
  0x77   :  { %1851 = vmatpush.bf16.msrb.mxu2 %v3010_v3  ;;  %v3098_v3 = vld [vmem:[%s3810_s2] ss:$0 sm:$0xff] }
  0x78   :  { %1864 = vmatpush.bf16.msrb.mxu3 %v3018_v4  ;;  %v3700_v4 = vld [vmem:[#allocation1 + $0x24] sm:$0xff] }
  0x79   :  { %1838 = vmatpush.bf16.msrb.mxu1 %v3002_v5  ;;  %v3702_v5 = vld [vmem:[#allocation1 + $0x36] sm:$0xff] }
  0x7a   :  { %1826 = vmatpush.bf16.msrb.mxu0 %v2993_v6  ;;  %v3704_v6 = vld [vmem:[#allocation1 + $0x3f] sm:$0xff] }
  0x7b   :  { %1852 = vmatpush.bf16.msrb.mxu2 %v3009_v7  ;;  %v3706_v7 = vld [vmem:[#allocation1 + $0x2d] sm:$0xff] }
  0x7c   :  { %1865 = vmatpush.bf16.msrb.mxu3 %v3017_v8  ;;  %v31_v8 = vld [vmem:[%s3808_s0 + $0x18] sm:$0x1] }
  0x7d   :  { %1839 = vmatpush.bf16.msrb.mxu1 %v3001_v14  ;;  %459 = vst [vmem:[#allocation1] ss:$9 sm:$0xff] %v31_v8  ;;  %v3068_v14 = vld [vmem:[%s3809_s1 + $0x560] sm:$0xff] }
  0x7e   :  { %1827 = vmatpush.bf16.msrb.mxu0 %v2992_v15  ;;  %v3059_v15 = vld [vmem:[%s3809_s1 + $0x518] sm:$0xff] }
  0x7f   :  { %1853 = vmatpush.bf16.msrb.mxu2 %v3008_v16 }
  0x80   :  { %1866 = vmatpush.bf16.msrb.mxu3 %v3016_v18  ;;  %v3083_v18 = vld [vmem:[%s3809_s1 + $0x5d8] sm:$0xff] }
  0x81   :  { %1840 = vmatpush.bf16.msrb.mxu1 %v3000_v21  ;;  %1828 = vmatmul.bf16.vlgmr.msrb.gmra.mxu0 %v444_v9  ;;  %v3060_v9 = vld [vmem:[%s3809_s1 + $0x520] sm:$0xff]  ;;  %v3067_v21 = vld [vmem:[%s3809_s1 + $0x558] sm:$0xff] }
  0x82   :  { %1872 = vmatpush.bf16.msra.mxu0 %v3031_v17  ;;  %1854 = vmatmul.bf16.vlgmr.msrb.gmra.mxu2 %v446_v10  ;;  %v3076_v10 = vld [vmem:[%s3809_s1 + $0x5a0] sm:$0xff]  ;;  %v3075_v17 = vld [vmem:[%s3809_s1 + $0x598] sm:$0xff] }
  0x83   :  { %1898 = vmatpush.bf16.msra.mxu2 %v3047_v19  ;;  %1867 = vmatmul.bf16.vlgmr.msrb.gmra.mxu3 %v447_v12 }
  0x84   :  { %1911 = vmatpush.bf16.msra.mxu3 %v3055_v20  ;;  %1841 = vmatmul.bf16.vlgmr.msrb.gmra.mxu1 %v445_v11  ;;  %v3084_v11 = vld [vmem:[%s3809_s1 + $0x5e0] sm:$0xff] }
  0x85   :  { %1885 = vmatpush.bf16.msra.mxu1 %v3039_v22 }
  0x86   :  { %1873 = vmatpush.bf16.msra.mxu0 %v3030_v23  ;;  %v3058_v23 = vld [vmem:[%s3809_s1 + $0x510] sm:$0xff] }
  0x87   :  { %1899 = vmatpush.bf16.msra.mxu2 %v3046_v24 }
  0x88   :  { %1912 = vmatpush.bf16.msra.mxu3 %v3054_v25  ;;  %v3074_v25 = vld [vmem:[%s3809_s1 + $0x590] sm:$0xff] }
  0x89   :  { %1886 = vmatpush.bf16.msra.mxu1 %v3038_v26  ;;  %v3082_v26 = vld [vmem:[%s3809_s1 + $0x5d0] sm:$0xff] }
  0x8a   :  { %1874 = vmatpush.bf16.msra.mxu0 %v3029_v27 }
  0x8b   :  { %1900 = vmatpush.bf16.msra.mxu2 %v3045_v28 }
  0x8c   :  { %1913 = vmatpush.bf16.msra.mxu3 %v3053_v29  ;;  %v3066_v29 = vld [vmem:[%s3809_s1 + $0x550] sm:$0xff] }
  0x8d   :  { %1887 = vmatpush.bf16.msra.mxu1 %v3037_v30  ;;  %v3057_v30 = vld [vmem:[%s3809_s1 + $0x508] sm:$0xff] }
  0x8e   :  { %1875 = vmatpush.bf16.msra.mxu0 %v3028_v31 }
  0x8f   :  { %1901 = vmatpush.bf16.msra.mxu2 %v3044_v32  ;;  %v3073_v32 = vld [vmem:[%s3809_s1 + $0x588] sm:$0xff] }
  0x90   :  { %1914 = vmatpush.bf16.msra.mxu3 %v3052_v33  ;;  %v3081_v33 = vld [vmem:[%s3809_s1 + $0x5c8] sm:$0xff] }
  0x91   :  { %1888 = vmatpush.bf16.msra.mxu1 %v3036_v34 }
  0x92   :  { %1876 = vmatpush.bf16.msra.mxu0 %v3027_v35  ;;  %v3065_v35 = vld [vmem:[%s3809_s1 + $0x548] sm:$0xff] }
  0x93   :  { %1902 = vmatpush.bf16.msra.mxu2 %v3043_v36  ;;  %v3056_v36 = vld [vmem:[%s3809_s1 + $0x500] sm:$0xff] }
  0x94   :  { %1915 = vmatpush.bf16.msra.mxu3 %v3051_v37 }
  0x95   :  { %1889 = vmatpush.bf16.msra.mxu1 %v3035_v38  ;;  %v3072_v38 = vld [vmem:[%s3809_s1 + $0x580] sm:$0xff] }
  0x96   :  { %1877 = vmatpush.bf16.msra.mxu0 %v3026_v39  ;;  %v3080_v39 = vld [vmem:[%s3809_s1 + $0x5c0] sm:$0xff] }
  0x97   :  { %1903 = vmatpush.bf16.msra.mxu2 %v3042_v40  ;;  %v3091_v40 = vld [vmem:[%s3809_s1 + $0x618] sm:$0xff] }
  0x98   :  { %1916 = vmatpush.bf16.msra.mxu3 %v3050_v41  ;;  %v3064_v41 = vld [vmem:[%s3809_s1 + $0x540] sm:$0xff] }
  0x99   :  { %1890 = vmatpush.bf16.msra.mxu1 %v3034_v42  ;;  %v3090_v42 = vld [vmem:[%s3809_s1 + $0x610] sm:$0xff] }
  0x9a   :  { %1878 = vmatpush.bf16.msra.mxu0 %v3025_v43  ;;  %v3089_v43 = vld [vmem:[%s3809_s1 + $0x608] sm:$0xff] }
  0x9b   :  { %1904 = vmatpush.bf16.msra.mxu2 %v3041_v44  ;;  %v3088_v44 = vld [vmem:[%s3809_s1 + $0x600] sm:$0xff] }
  0x9c   :  { %1917 = vmatpush.bf16.msra.mxu3 %v3049_v45 }
  0x9d   :  { %1891 = vmatpush.bf16.msra.mxu1 %v3033_v46 }
  0x9e   :  { %1879 = vmatpush.bf16.msra.mxu0 %v3024_v47  ;;  %v1673_v12 = vpop.f32.mrf.mxu0 }
  0x9f   :  { %1905 = vmatpush.bf16.msra.mxu2 %v3040_v48  ;;  %v1674_v13 = vadd.f32 %v3098_v3, %v1673_v12 }
  0xa0   :  { %1918 = vmatpush.bf16.msra.mxu3 %v3048_v49  ;;  %v460_v49 = vld [vmem:[#allocation1] sm:$0xff] }
  0xa1   :  { %1892 = vmatpush.bf16.msra.mxu1 %v3032_v53  ;;  %1880 = vmatmul.bf16.vlgmr.msra.gmra.mxu0 %v450_v54  ;;  %v1686_v16 = vpop.f32.mrf.mxu1 }
  0xa2   :  { %1924 = vmatpush.bf16.msrb.mxu0 %v3063_v50  ;;  %1906 = vmatmul.bf16.vlgmr.msra.gmra.mxu2 %v452_v55  ;;  %v1687_v19 = vadd.f32 %v1686_v16, %v1674_v13 }
  0xa3   :  { %1950 = vmatpush.bf16.msrb.mxu2 %v3079_v51  ;;  %1919 = vmatmul.bf16.vlgmr.msra.gmra.mxu3 %v453_v57 }
  0xa4   :  { %1963 = vmatpush.bf16.msrb.mxu3 %v3087_v52  ;;  %1893 = vmatmul.bf16.vlgmr.msra.gmra.mxu1 %v451_v59 }
  0xa5   :  { %1937 = vmatpush.bf16.msrb.mxu1 %v3071_v56  ;;  %v1699_v20 = vpop.f32.mrf.mxu2 }
  0xa6   :  { %1925 = vmatpush.bf16.msrb.mxu0 %v3062_v58  ;;  %v1700_v22 = vadd.f32 %v1699_v20, %v1687_v19  ;;  %v1712_v24 = vpop.f32.mrf.mxu3  ;;  %v1675_v28 = vpop.f32.mrf.mxu0 }
  0xa7   :  { %1951 = vmatpush.bf16.msrb.mxu2 %v3078_v60 }
  0xa8   :  { %1964 = vmatpush.bf16.msrb.mxu3 %v3086_v61  ;;  %v1713_v27 = vadd.f32 %v1712_v24, %v1700_v22 }
  0xa9   :  { %1938 = vmatpush.bf16.msrb.mxu1 %v3070_v62  ;;  %v1688_v31 = vpop.f32.mrf.mxu1 }
  0xaa   :  { %1926 = vmatpush.bf16.msrb.mxu0 %v3061_v63  ;;  %v3094_v31 = vld [vmem:[%s3813_s5] sm:$0xff] }
  0xab   :  { %1952 = vmatpush.bf16.msrb.mxu2 %v3077_v0 }
  0xac   :  { %1965 = vmatpush.bf16.msrb.mxu3 %v3085_v1 }
  0xad   :  { %1939 = vmatpush.bf16.msrb.mxu1 %v3069_v2  ;;  %v1701_v34 = vpop.f32.mrf.mxu2 }
  0xae   :  { %1927 = vmatpush.bf16.msrb.mxu0 %v3060_v9  ;;  %v1714_v37 = vpop.f32.mrf.mxu3 }
  0xaf   :  { %1953 = vmatpush.bf16.msrb.mxu2 %v3076_v10 }
  0xb0   :  { %1966 = vmatpush.bf16.msrb.mxu3 %v3084_v11 }
  0xb1   :  { %1940 = vmatpush.bf16.msrb.mxu1 %v3068_v14 }
  0xb2   :  { %1928 = vmatpush.bf16.msrb.mxu0 %v3059_v15 }
  0xb3   :  { %1954 = vmatpush.bf16.msrb.mxu2 %v3075_v17 }
  0xb4   :  { %1967 = vmatpush.bf16.msrb.mxu3 %v3083_v18 }
  0xb5   :  { %1941 = vmatpush.bf16.msrb.mxu1 %v3067_v21  ;;  %v3093_v21 = vld [vmem:[%s3811_s3 + $0x8] sm:$0xff] }
  0xb6   :  { %1929 = vmatpush.bf16.msrb.mxu0 %v3058_v23 }
  0xb7   :  { %1955 = vmatpush.bf16.msrb.mxu2 %v3074_v25 }
  0xb8   :  { %1968 = vmatpush.bf16.msrb.mxu3 %v3082_v26  ;;  %v3092_v26 = vld [vmem:[%s3811_s3] sm:$0xff]  ;;  %s3127_s3 = smov 96  }
  0xb9   :  { %1942 = vmatpush.bf16.msrb.mxu1 %v3066_v29  ;;  %v3095_v29 = vld [vmem:[%s3813_s5 + $0x8] sm:$0xff] }
  0xba   :  { %1930 = vmatpush.bf16.msrb.mxu0 %v3057_v30 }
  0xbb   :  { %1956 = vmatpush.bf16.msrb.mxu2 %v3073_v32 }
  0xbc   :  { %1969 = vmatpush.bf16.msrb.mxu3 %v3081_v33 }
  0xbd   :  { %1943 = vmatpush.bf16.msrb.mxu1 %v3065_v35 }
  0xbe   :  { %1931 = vmatpush.bf16.msrb.mxu0 %v3056_v36  ;;  %v1725_v45 = vpop.f32.mrf.mxu0 }
  0xbf   :  { %1957 = vmatpush.bf16.msrb.mxu2 %v3072_v38  ;;  %v1726_v46 = vadd.f32 %v1725_v45, %v1713_v27 }
  0xc0   :  { %1970 = vmatpush.bf16.msrb.mxu3 %v3080_v39 }
  0xc1   :  { %1944 = vmatpush.bf16.msrb.mxu1 %v3064_v41  ;;  %1932 = vmatmul.bf16.vlgmr.msrb.gmra.mxu0 %v3700_v4  ;;  %v1738_v47 = vpop.f32.mrf.mxu1 }
  0xc2   :  { %1980 = vmatpush.bf16.msra.mxu0 %v3091_v40  ;;  %1958 = vmatmul.bf16.vlgmr.msrb.gmra.mxu2 %v3702_v5  ;;  %v1739_v48 = vadd.f32 %v1738_v47, %v1726_v46 }
  0xc3   :  { %1971 = vmatmul.bf16.vlgmr.msrb.gmra.mxu3 %v3704_v6  ;;  %2062 = vmatpush.bf16.msra.mxu2 %v3095_v29 }
  0xc4   :  { %1945 = vmatmul.bf16.vlgmr.msrb.gmra.mxu1 %v3706_v7 }
  0xc5   :  { %v1751_v50 = vpop.f32.mrf.mxu2  ;;  %2021 = vmatpush.bf16.msra.mxu1 %v3093_v21 }
  0xc6   :  { %1981 = vmatpush.bf16.msra.mxu0 %v3090_v42  ;;  %v1752_v51 = vadd.f32 %v1751_v50, %v1739_v48  ;;  %v1764_v52 = vpop.f32.mrf.mxu3  ;;  %v1727_v54 = vpop.f32.mrf.mxu0 }
  0xc7   :  { %2063 = vmatpush.bf16.msra.mxu2 %v3094_v31 }
  0xc8   :  { %v1765_v53 = vadd.f32 %v1764_v52, %v1752_v51 }
  0xc9   :  { %v1740_v55 = vpop.f32.mrf.mxu1  ;;  %2022 = vmatpush.bf16.msra.mxu1 %v3092_v26 }
  0xca   :  { %1982 = vmatpush.bf16.msra.mxu0 %v3089_v43 }
  0xcd   :  { %v1753_v56 = vpop.f32.mrf.mxu2 }
  0xce   :  { %1983 = vmatpush.bf16.msra.mxu0 %v3088_v44  ;;  %v1766_v57 = vpop.f32.mrf.mxu3  ;;  %v3099_v56 = vld [vmem:[%s3812_s4] ss:$0 sm:$0xff] }
  0xcf   :  { %v3100_v57 = vld [vmem:[%s3814_s6] ss:$0 sm:$0xff] }
  0xd1   :  { %2877 = vmatmul.msk.bf16.vlgmr.msra.gmra.mxu0 %vm1661_vm0, %v460_v49 }
  0xde   :  { %v1777_v58 = vpop.f32.mrf.mxu0 }
  0xdf   :  { %v1778_v59 = vadd.f32 %v1777_v58, %v1765_v53 }
  0xe1   :  { %v1790_v60 = vpop.f32.mrf.mxu1 }
  0xe2   :  { %v1791_v61 = vadd.f32 %v1790_v60, %v1778_v59 }
  0xe5   :  { %v1803_v62 = vpop.f32.mrf.mxu2 }
  0xe6   :  { %v1804_v63 = vadd.f32 %v1803_v62, %v1791_v61  ;;  %v1816_v0 = vpop.f32.mrf.mxu3  ;;  %v1779_v1 = vpop.f32.mrf.mxu0 }
  0xe8   :  { %v1817_v2 = vadd.f32 %v1816_v0, %v1804_v63 }
  0xe9   :  { %v1792_v3 = vpop.f32.mrf.mxu1 }
  0xed   :  { %v1805_v4 = vpop.f32.mrf.mxu2 }
  0xee   :  { %v1818_v5 = vpop.f32.mrf.mxu3 }
  0xfe   :  { %v1829_v6 = vpop.f32.mrf.mxu0 }
  0xff   :  { %v1830_v19 = vadd.f32 %v1829_v6, %v1817_v2 }
 0x101   :  { %v1842_v7 = vpop.f32.mrf.mxu1 }
 0x102   :  { %v1843_v22 = vadd.f32 %v1842_v7, %v1830_v19 }
 0x105   :  { %v1855_v8 = vpop.f32.mrf.mxu2 }
 0x106   :  { %v1868_v9 = vpop.f32.mrf.mxu3  ;;  %v1831_v10 = vpop.f32.mrf.mxu0  ;;  %v1856_v25 = vadd.f32 %v1855_v8, %v1843_v22 }
 0x108   :  { %v1869_v27 = vadd.f32 %v1868_v9, %v1856_v25 }
 0x109   :  { %v1844_v11 = vpop.f32.mrf.mxu1 }
 0x10d   :  { %v1857_v12 = vpop.f32.mrf.mxu2 }
 0x10e   :  { %v1870_v13 = vpop.f32.mrf.mxu3 }
 0x11e   :  { %v1881_v14 = vpop.f32.mrf.mxu0 }
 0x11f   :  { %v1882_v28 = vadd.f32 %v1881_v14, %v1869_v27 }
 0x121   :  { %v1894_v15 = vpop.f32.mrf.mxu1 }
 0x122   :  { %v1895_v30 = vadd.f32 %v1894_v15, %v1882_v28 }
 0x125   :  { %v1907_v16 = vpop.f32.mrf.mxu2 }
 0x126   :  { %v1920_v17 = vpop.f32.mrf.mxu3  ;;  %v1883_v18 = vpop.f32.mrf.mxu0  ;;  %v1908_v32 = vadd.f32 %v1907_v16, %v1895_v30 }
 0x128   :  { %v1921_v34 = vadd.f32 %v1920_v17, %v1908_v32 }
 0x129   :  { %v1896_v20 = vpop.f32.mrf.mxu1 }
 0x12d   :  { %v1909_v23 = vpop.f32.mrf.mxu2 }
 0x12e   :  { %v1922_v24 = vpop.f32.mrf.mxu3 }
 0x13e   :  { %v1933_v33 = vpop.f32.mrf.mxu0 }
 0x13f   :  { %v1934_v36 = vadd.f32 %v1933_v33, %v1921_v34 }
 0x141   :  { %v1946_v35 = vpop.f32.mrf.mxu1 }
 0x142   :  { %v1947_v40 = vadd.f32 %v1946_v35, %v1934_v36 }
 0x145   :  { %v1959_v37 = vpop.f32.mrf.mxu2 }
 0x146   :  { %v1972_v38 = vpop.f32.mrf.mxu3  ;;  %v1935_v39 = vpop.f32.mrf.mxu0  ;;  %v1960_v41 = vadd.f32 %v1959_v37, %v1947_v40 }
 0x148   :  { %v1973_v43 = vadd.f32 %v1972_v38, %v1960_v41 }
 0x149   :  { %v1948_v42 = vpop.f32.mrf.mxu1 }
 0x14d   :  { %v1961_v44 = vpop.f32.mrf.mxu2 }
 0x14e   :  { %v1974_v45 = vpop.f32.mrf.mxu3  ;;  %v1985_v46 = vpop.f32.mrf.mxu0 }
 0x14f   :  { %v1986_v47 = vadd.f32 %v1985_v46, %v1973_v43 }
 0x151   :  { %v1989_v48 = vmax.f32 %v1986_v47, 0.0 }
 0x153   :  { %v1990_v49 = vpack.c.bf16 %v1989_v48, %v1989_v48 }
 0x155   :  { %2886 = vmatmul.msk.bf16.vlgmr.msra.gmra.mxu1 %vm2011_vm1, %v1990_v49  ;;  %v2037_v50 = vunpack.c.l.b16 %v1990_v49 }
 0x156   :  { %v1987_v51 = vpop.f32.mrf.mxu0 }
 0x157   :  { %v2038_v52 = vpack.c.b16 %v2037_v50, %v2037_v50 }
 0x159   :  { %2039 = vrot.lane.b32.xlu0 %v2038_v52, %s3127_s3 }
 0x1cb   :  { %v2040_v53 = vpop.permute.xlu0 %2039 }
 0x1cc   :  { %2895 = vmatmul.msk.bf16.vlgmr.msra.gmra.mxu2 %vm2011_vm1, %v2040_v53 }
 0x1d2   :  { %v2024_v54 = vpop.f32.mrf.mxu1 }
 0x1d3   :  { %v2025_v59 = vadd.f32 %v3099_v56, %v2024_v54 }
 0x1da   :  { %v2026_v55 = vpop.f32.mrf.mxu1 }
 0x24f   :  { %v2065_v58 = vpop.f32.mrf.mxu2 }
 0x250   :  { %v2066_v60 = vadd.f32 %v3100_v57, %v2065_v58 }
 0x252   :  { %v2074_v61 = vadd.f32 %v2066_v60, %v2025_v59  ;;  %v2070_v62 = vsel %vm2069_vm2, %v2066_v60, 0.0 }
 0x253   :  { %2071 = vadd.xlane.f32.xlu0 %v2070_v62 }
 0x257   :  { %v2067_v63 = vpop.f32.mrf.mxu2 }
 0x2c6   :  { %v2072_v0 = vpop.xlane.xlu0 %2071 }
 0x2c7   :  { %v2073_v1 = vmul.f32 0.16666667, %v2072_v0 }
 0x2c9   :  { %v2075_v2 = vsub.f32 %v2074_v61, %v2073_v1 }
 0x2cb   :  { %2076 = vst [vmem:[#allocation2] sm:$0x3] %v2075_v2 }
 0x2cc   :  { %2087 = dma.vmem_to_hbm [thread:$0]  %s2083_s17, 32, %s2085_s20, [#allocation3]  }
 0x2cd   :  { %3125 = dma.done.wait [#allocation3], 32  }
 0x2ce   :  { %3126 = vsyncadd [#allocation3], 4294967264 }
 0x2cf   :  { %2092 = vsyncpa [#allocation3], 1 }

</bundles_post_ra>
